<compile_context>
chip_gen: v7x
topology: tpu7x:2x2x1
jax: 0.10.0
libtpu: 0.0.40
codegen_flags: <defaults>
</compile_context>

<pallas_src>
import functools
import math

import jax
import jax.numpy as jnp
from jax.experimental import pallas as pl
from jax.experimental.pallas import tpu as pltpu


# ---------------------------------------------------------------------------
# Pallas kernel: fused conv(kxk, stride 1) + bias + ReLU + AvgPool2d(2)
# ---------------------------------------------------------------------------
def _downblock_kernel(x_ref, w_ref, b_ref, p_ref, o_ref, *, kh, kw, trp, wpo):
    """One (batch, pooled-row-block) grid cell.

    x_ref: (1, Hp, Wp, Cin)            bf16  whole padded image of this batch item
    w_ref: (kh*kw, Cin, Cout_p)        bf16  per-tap weight matrices
    b_ref: (1, Cout_p)                 f32
    p_ref: (trp*wpo, (2*trp)*(2*wpo))  f32   constant 2x2 average-pooling matrix
    o_ref: (1, trp*wpo, Cout_p)        f32   pooled output rows (flattened spatial)
    """
    rows = 2 * trp          # conv output rows produced by this block
    wo2 = 2 * wpo           # conv output cols actually consumed by the pool
    cin = x_ref.shape[-1]
    cout_p = o_ref.shape[-1]

    rb = pl.program_id(1)
    r0 = pl.multiple_of(rb * rows, rows)      # first conv output row of the block

    # Tap-folded convolution: accumulate kh*kw shifted-slice matmuls in f32.
    acc = jnp.zeros((rows * wo2, cout_p), jnp.float32)
    for dy in range(kh):
        for dx in range(kw):
            a = x_ref[0, pl.ds(r0 + dy, rows), pl.ds(dx, wo2), :]   # (rows, wo2, Cin) bf16
            a = a.reshape(rows * wo2, cin)
            acc = acc + jnp.dot(a, w_ref[dy * kw + dx],
                                preferred_element_type=jnp.float32)

    acc = jnp.maximum(acc + b_ref[...], 0.0)                        # bias + ReLU

    # Fused AvgPool2d(2): pooled = P @ relu(conv), P has four 0.25 entries per row.
    o_ref[0] = jnp.dot(p_ref[...], acc, preferred_element_type=jnp.float32)


# ---------------------------------------------------------------------------
# Wrapper
# ---------------------------------------------------------------------------
def _pick_row_tile(hpo, wpo, max_pool_rows):
    """Largest divisor of hpo (<= max_pool_rows) whose flattened pooled tile is
    8-sublane aligned, or the full extent."""
    for d in range(min(hpo, max_pool_rows), 0, -1):
        if hpo % d == 0 and (d == hpo or (d * wpo) % 8 == 0):
            return d
    return hpo


def down_block2d(x, w, b, *, padding=1, block_pool_rows=64):
    """DownBlock2d forward: AvgPool2d(2)(ReLU(Conv2d(x, w, b, padding=padding))).

    x: (N, Cin, H, W) f32     w: (Cout, Cin, kh, kw) f32     b: (Cout,) f32
    Returns (N, Cout, Ho//2, Wo//2) f32 (PyTorch NCHW layout, floor pooling).
    """
    n, cin, h, wd = x.shape
    cout, cin_w, kh, kw = w.shape
    assert cin_w == cin, "grouped conv (groups > 1) not supported"

    ho = h + 2 * padding - kh + 1
    wo = wd + 2 * padding - kw + 1
    hpo, wpo = ho // 2, wo // 2                 # AvgPool2d(2) floor semantics
    assert hpo > 0 and wpo > 0

    hp, wp = h + 2 * padding, wd + 2 * padding
    cout_p = max(128, ((cout + 127) // 128) * 128)   # lane-dense output channels

    # NHWC, bf16, spatially padded activation (the only activation copy we make).
    x_nhwc = jnp.transpose(x, (0, 2, 3, 1)).astype(jnp.bfloat16)
    x_pad = jnp.pad(x_nhwc, ((0, 0), (padding, padding), (padding, padding), (0, 0)))

    # Per-tap weights (kh*kw, Cin, Cout_p) bf16; bias (1, Cout_p) f32.
    w_t = jnp.transpose(w, (2, 3, 1, 0)).reshape(kh * kw, cin, cout)
    w_t = jnp.pad(w_t, ((0, 0), (0, 0), (0, cout_p - cout))).astype(jnp.bfloat16)
    b_p = jnp.pad(b.astype(jnp.float32), (0, cout_p - cout)).reshape(1, cout_p)

    # Tile pooled output rows.
    trp = _pick_row_tile(hpo, wpo, block_pool_rows)
    rows, wo2 = 2 * trp, 2 * wpo
    grid = (n, hpo // trp)

    # Constant 2x2 average-pooling matrix for one block:
    # conv flat index j = r*wo2 + w maps to pooled flat index (r//2)*wpo + w//2.
    j_idx = jnp.arange(rows * wo2)
    tgt = (j_idx // (2 * wo2)) * wpo + (j_idx % wo2) // 2
    i_idx = jnp.arange(trp * wpo)[:, None]
    pmat = jnp.where(i_idx == tgt[None, :], 0.25, 0.0).astype(jnp.float32)

    out = pl.pallas_call(
        functools.partial(_downblock_kernel, kh=kh, kw=kw, trp=trp, wpo=wpo),
        out_shape=jax.ShapeDtypeStruct((n, hpo * wpo, cout_p), jnp.float32),
        grid=grid,
        in_specs=[
            pl.BlockSpec((1, hp, wp, cin), lambda i, j: (i, 0, 0, 0)),
            pl.BlockSpec((kh * kw, cin, cout_p), lambda i, j: (0, 0, 0)),
            pl.BlockSpec((1, cout_p), lambda i, j: (0, 0)),
            pl.BlockSpec((trp * wpo, rows * wo2), lambda i, j: (0, 0)),
        ],
        out_specs=pl.BlockSpec((1, trp * wpo, cout_p), lambda i, j: (i, j, 0)),
        compiler_params=pltpu.CompilerParams(
            dimension_semantics=("parallel", "parallel")),
    )(x_pad, w_t, b_p, pmat)

    out = out[:, :, :cout].reshape(n, hpo, wpo, cout)
    return jnp.transpose(out, (0, 3, 1, 2))


# ---------------------------------------------------------------------------
# Pure-JAX reference (f32) for correctness checking
# ---------------------------------------------------------------------------
def down_block2d_ref(x, w, b, *, padding=1):
    out = jax.lax.conv_general_dilated(
        x, w, window_strides=(1, 1),
        padding=((padding, padding), (padding, padding)),
        dimension_numbers=("NCHW", "OIHW", "NCHW"),
        precision=jax.lax.Precision.HIGHEST)
    out = jnp.maximum(out + b[None, :, None, None], 0.0)
    n, c, ho, wo = out.shape
    out = out[:, :, : (ho // 2) * 2, : (wo // 2) * 2]
    return out.reshape(n, c, ho // 2, 2, wo // 2, 2).mean(axis=(3, 5))


# ---------------------------------------------------------------------------
if __name__ == "__main__":
    root = jax.random.PRNGKey(0)

    def run_case(bsz, cin, cout, h, wdim, k, pad, block_pool_rows, key):
        kx, kw_, kb = jax.random.split(key, 3)
        x = jax.random.normal(kx, (bsz, cin, h, wdim), jnp.float32)
        w = jax.random.normal(kw_, (cout, cin, k, k), jnp.float32) / math.sqrt(cin * k * k)
        bias = 0.01 * jax.random.normal(kb, (cout,), jnp.float32)

        fwd = jax.jit(functools.partial(down_block2d, padding=pad,
                                        block_pool_rows=block_pool_rows))
        out = fwd(x, w, bias)
        jax.block_until_ready(out)

        ref = down_block2d_ref(x, w, bias, padding=pad)
        assert out.shape == ref.shape, (out.shape, ref.shape)
        assert bool(jnp.all(jnp.isfinite(out)))
        err = float(jnp.max(jnp.abs(out - ref)))
        assert err < 5e-2, f"max abs err {err}"
        return err

    # Case 1: 32 -> 64 channels, 32x32 image, grid = (2 batches x 2 row blocks).
    run_case(2, 32, 64, 32, 32, 3, 1, 8, jax.random.fold_in(root, 0))
    # Case 2: 16 -> 128 channels, 16x16 image, single row block per batch item.
    run_case(2, 16, 128, 16, 16, 3, 1, 64, jax.random.fold_in(root, 1))

    print("KERNEL_OK")
</pallas_src>

<mosaic_0001>
module attributes {stable_mosaic.version = 11 : i64} {
  func.func @_downblock_kernel(%arg0: i32, %arg1: i32, %arg2: memref<1x34x34x32xbf16, #tpu.memory_space<vmem>>, %arg3: memref<9x32x128xbf16, #tpu.memory_space<vmem>>, %arg4: memref<1x128xf32, #tpu.memory_space<vmem>>, %arg5: memref<128x512xf32, #tpu.memory_space<vmem>>, %arg6: memref<1x128x128xf32, #tpu.memory_space<vmem>>) attributes {dimension_semantics = [#tpu.dimension_semantics<parallel>, #tpu.dimension_semantics<parallel>], iteration_bounds = array<i64: 2, 2>, scalar_prefetch = 0 : i64, scratch_operands = 0 : i64, tpu.core_type = #tpu.core_type<tc>, window_params = [{transform_indices = @transform_0, window_bounds = array<i64: 1, 34, 34, 32>}, {pipeline_mode = #tpu.pipeline_mode<synchronous>, transform_indices = @transform_1, window_bounds = array<i64: 9, 32, 128>}, {pipeline_mode = #tpu.pipeline_mode<synchronous>, transform_indices = @transform_2, window_bounds = array<i64: 1, 128>}, {pipeline_mode = #tpu.pipeline_mode<synchronous>, transform_indices = @transform_3, window_bounds = array<i64: 128, 512>}, {transform_indices = @transform_4, window_bounds = array<i64: 1, 128, 128>}]} {
    %c16_i32 = arith.constant 16 : i32
    %0 = arith.muli %arg1, %c16_i32 : i32
    %1 = tpu.assume_multiple %0, 16 : i32
    %cst = arith.constant 0.000000e+00 : f32
    %2 = vector.broadcast %cst : f32 to vector<512x128xf32>
    %c0_i32 = arith.constant 0 : i32
    %3 = arith.addi %1, %c0_i32 : i32
    %c0 = arith.constant 0 : index
    %4 = arith.index_cast %3 : i32 to index
    %c0_0 = arith.constant 0 : index
    %c0_1 = arith.constant 0 : index
    %5 = vector.load %arg2[%c0, %4, %c0_0, %c0_1] : memref<1x34x34x32xbf16, #tpu.memory_space<vmem>>, vector<1x16x32x32xbf16>
    %6 = vector.shape_cast %5 : vector<1x16x32x32xbf16> to vector<16x32x32xbf16>
    %7 = vector.shape_cast %6 : vector<16x32x32xbf16> to vector<512x32xbf16>
    %c0_2 = arith.constant 0 : index
    %c0_3 = arith.constant 0 : index
    %c0_4 = arith.constant 0 : index
    %8 = vector.load %arg3[%c0_2, %c0_3, %c0_4] : memref<9x32x128xbf16, #tpu.memory_space<vmem>>, vector<1x32x128xbf16>
    %9 = vector.shape_cast %8 : vector<1x32x128xbf16> to vector<32x128xbf16>
    %cst_5 = arith.constant dense<0.000000e+00> : vector<512x128xf32>
    %10 = tpu.matmul %7, %9, %cst_5 {dimension_numbers = #tpu.dot_dimension_numbers<[1], [0], [0], [1], [0, 0, 1, 1], [], []>} : vector<512x32xbf16>, vector<32x128xbf16>, vector<512x128xf32> -> vector<512x128xf32>
    %11 = arith.addf %2, %10 : vector<512x128xf32>
    %c0_i32_6 = arith.constant 0 : i32
    %12 = arith.addi %1, %c0_i32_6 : i32
    %c0_7 = arith.constant 0 : index
    %13 = arith.index_cast %12 : i32 to index
    %c1 = arith.constant 1 : index
    %c0_8 = arith.constant 0 : index
    %14 = vector.load %arg2[%c0_7, %13, %c1, %c0_8] : memref<1x34x34x32xbf16, #tpu.memory_space<vmem>>, vector<1x16x32x32xbf16>
    %15 = vector.shape_cast %14 : vector<1x16x32x32xbf16> to vector<16x32x32xbf16>
    %16 = vector.shape_cast %15 : vector<16x32x32xbf16> to vector<512x32xbf16>
    %c1_9 = arith.constant 1 : index
    %c0_10 = arith.constant 0 : index
    %c0_11 = arith.constant 0 : index
    %17 = vector.load %arg3[%c1_9, %c0_10, %c0_11] : memref<9x32x128xbf16, #tpu.memory_space<vmem>>, vector<1x32x128xbf16>
    %18 = vector.shape_cast %17 : vector<1x32x128xbf16> to vector<32x128xbf16>
    %cst_12 = arith.constant dense<0.000000e+00> : vector<512x128xf32>
    %19 = tpu.matmul %16, %18, %cst_12 {dimension_numbers = #tpu.dot_dimension_numbers<[1], [0], [0], [1], [0, 0, 1, 1], [], []>} : vector<512x32xbf16>, vector<32x128xbf16>, vector<512x128xf32> -> vector<512x128xf32>
    %20 = arith.addf %11, %19 : vector<512x128xf32>
    %c0_i32_13 = arith.constant 0 : i32
    %21 = arith.addi %1, %c0_i32_13 : i32
    %c0_14 = arith.constant 0 : index
    %22 = arith.index_cast %21 : i32 to index
    %c2 = arith.constant 2 : index
    %c0_15 = arith.constant 0 : index
    %23 = vector.load %arg2[%c0_14, %22, %c2, %c0_15] : memref<1x34x34x32xbf16, #tpu.memory_space<vmem>>, vector<1x16x32x32xbf16>
    %24 = vector.shape_cast %23 : vector<1x16x32x32xbf16> to vector<16x32x32xbf16>
    %25 = vector.shape_cast %24 : vector<16x32x32xbf16> to vector<512x32xbf16>
    %c2_16 = arith.constant 2 : index
    %c0_17 = arith.constant 0 : index
    %c0_18 = arith.constant 0 : index
    %26 = vector.load %arg3[%c2_16, %c0_17, %c0_18] : memref<9x32x128xbf16, #tpu.memory_space<vmem>>, vector<1x32x128xbf16>
    %27 = vector.shape_cast %26 : vector<1x32x128xbf16> to vector<32x128xbf16>
    %cst_19 = arith.constant dense<0.000000e+00> : vector<512x128xf32>
    %28 = tpu.matmul %25, %27, %cst_19 {dimension_numbers = #tpu.dot_dimension_numbers<[1], [0], [0], [1], [0, 0, 1, 1], [], []>} : vector<512x32xbf16>, vector<32x128xbf16>, vector<512x128xf32> -> vector<512x128xf32>
    %29 = arith.addf %20, %28 : vector<512x128xf32>
    %c1_i32 = arith.constant 1 : i32
    %30 = arith.addi %1, %c1_i32 : i32
    %c0_20 = arith.constant 0 : index
    %31 = arith.index_cast %30 : i32 to index
    %c0_21 = arith.constant 0 : index
    %c0_22 = arith.constant 0 : index
    %32 = vector.load %arg2[%c0_20, %31, %c0_21, %c0_22] : memref<1x34x34x32xbf16, #tpu.memory_space<vmem>>, vector<1x16x32x32xbf16>
    %33 = vector.shape_cast %32 : vector<1x16x32x32xbf16> to vector<16x32x32xbf16>
    %34 = vector.shape_cast %33 : vector<16x32x32xbf16> to vector<512x32xbf16>
    %c3 = arith.constant 3 : index
    %c0_23 = arith.constant 0 : index
    %c0_24 = arith.constant 0 : index
    %35 = vector.load %arg3[%c3, %c0_23, %c0_24] : memref<9x32x128xbf16, #tpu.memory_space<vmem>>, vector<1x32x128xbf16>
    %36 = vector.shape_cast %35 : vector<1x32x128xbf16> to vector<32x128xbf16>
    %cst_25 = arith.constant dense<0.000000e+00> : vector<512x128xf32>
    %37 = tpu.matmul %34, %36, %cst_25 {dimension_numbers = #tpu.dot_dimension_numbers<[1], [0], [0], [1], [0, 0, 1, 1], [], []>} : vector<512x32xbf16>, vector<32x128xbf16>, vector<512x128xf32> -> vector<512x128xf32>
    %38 = arith.addf %29, %37 : vector<512x128xf32>
    %c1_i32_26 = arith.constant 1 : i32
    %39 = arith.addi %1, %c1_i32_26 : i32
    %c0_27 = arith.constant 0 : index
    %40 = arith.index_cast %39 : i32 to index
    %c1_28 = arith.constant 1 : index
    %c0_29 = arith.constant 0 : index
    %41 = vector.load %arg2[%c0_27, %40, %c1_28, %c0_29] : memref<1x34x34x32xbf16, #tpu.memory_space<vmem>>, vector<1x16x32x32xbf16>
    %42 = vector.shape_cast %41 : vector<1x16x32x32xbf16> to vector<16x32x32xbf16>
    %43 = vector.shape_cast %42 : vector<16x32x32xbf16> to vector<512x32xbf16>
    %c4 = arith.constant 4 : index
    %c0_30 = arith.constant 0 : index
    %c0_31 = arith.constant 0 : index
    %44 = vector.load %arg3[%c4, %c0_30, %c0_31] : memref<9x32x128xbf16, #tpu.memory_space<vmem>>, vector<1x32x128xbf16>
    %45 = vector.shape_cast %44 : vector<1x32x128xbf16> to vector<32x128xbf16>
    %cst_32 = arith.constant dense<0.000000e+00> : vector<512x128xf32>
    %46 = tpu.matmul %43, %45, %cst_32 {dimension_numbers = #tpu.dot_dimension_numbers<[1], [0], [0], [1], [0, 0, 1, 1], [], []>} : vector<512x32xbf16>, vector<32x128xbf16>, vector<512x128xf32> -> vector<512x128xf32>
    %47 = arith.addf %38, %46 : vector<512x128xf32>
    %c1_i32_33 = arith.constant 1 : i32
    %48 = arith.addi %1, %c1_i32_33 : i32
    %c0_34 = arith.constant 0 : index
    %49 = arith.index_cast %48 : i32 to index
    %c2_35 = arith.constant 2 : index
    %c0_36 = arith.constant 0 : index
    %50 = vector.load %arg2[%c0_34, %49, %c2_35, %c0_36] : memref<1x34x34x32xbf16, #tpu.memory_space<vmem>>, vector<1x16x32x32xbf16>
    %51 = vector.shape_cast %50 : vector<1x16x32x32xbf16> to vector<16x32x32xbf16>
    %52 = vector.shape_cast %51 : vector<16x32x32xbf16> to vector<512x32xbf16>
    %c5 = arith.constant 5 : index
    %c0_37 = arith.constant 0 : index
    %c0_38 = arith.constant 0 : index
    %53 = vector.load %arg3[%c5, %c0_37, %c0_38] : memref<9x32x128xbf16, #tpu.memory_space<vmem>>, vector<1x32x128xbf16>
    %54 = vector.shape_cast %53 : vector<1x32x128xbf16> to vector<32x128xbf16>
    %cst_39 = arith.constant dense<0.000000e+00> : vector<512x128xf32>
    %55 = tpu.matmul %52, %54, %cst_39 {dimension_numbers = #tpu.dot_dimension_numbers<[1], [0], [0], [1], [0, 0, 1, 1], [], []>} : vector<512x32xbf16>, vector<32x128xbf16>, vector<512x128xf32> -> vector<512x128xf32>
    %56 = arith.addf %47, %55 : vector<512x128xf32>
    %c2_i32 = arith.constant 2 : i32
    %57 = arith.addi %1, %c2_i32 : i32
    %c0_40 = arith.constant 0 : index
    %58 = arith.index_cast %57 : i32 to index
    %c0_41 = arith.constant 0 : index
    %c0_42 = arith.constant 0 : index
    %59 = vector.load %arg2[%c0_40, %58, %c0_41, %c0_42] : memref<1x34x34x32xbf16, #tpu.memory_space<vmem>>, vector<1x16x32x32xbf16>
    %60 = vector.shape_cast %59 : vector<1x16x32x32xbf16> to vector<16x32x32xbf16>
    %61 = vector.shape_cast %60 : vector<16x32x32xbf16> to vector<512x32xbf16>
    %c6 = arith.constant 6 : index
    %c0_43 = arith.constant 0 : index
    %c0_44 = arith.constant 0 : index
    %62 = vector.load %arg3[%c6, %c0_43, %c0_44] : memref<9x32x128xbf16, #tpu.memory_space<vmem>>, vector<1x32x128xbf16>
    %63 = vector.shape_cast %62 : vector<1x32x128xbf16> to vector<32x128xbf16>
    %cst_45 = arith.constant dense<0.000000e+00> : vector<512x128xf32>
    %64 = tpu.matmul %61, %63, %cst_45 {dimension_numbers = #tpu.dot_dimension_numbers<[1], [0], [0], [1], [0, 0, 1, 1], [], []>} : vector<512x32xbf16>, vector<32x128xbf16>, vector<512x128xf32> -> vector<512x128xf32>
    %65 = arith.addf %56, %64 : vector<512x128xf32>
    %c2_i32_46 = arith.constant 2 : i32
    %66 = arith.addi %1, %c2_i32_46 : i32
    %c0_47 = arith.constant 0 : index
    %67 = arith.index_cast %66 : i32 to index
    %c1_48 = arith.constant 1 : index
    %c0_49 = arith.constant 0 : index
    %68 = vector.load %arg2[%c0_47, %67, %c1_48, %c0_49] : memref<1x34x34x32xbf16, #tpu.memory_space<vmem>>, vector<1x16x32x32xbf16>
    %69 = vector.shape_cast %68 : vector<1x16x32x32xbf16> to vector<16x32x32xbf16>
    %70 = vector.shape_cast %69 : vector<16x32x32xbf16> to vector<512x32xbf16>
    %c7 = arith.constant 7 : index
    %c0_50 = arith.constant 0 : index
    %c0_51 = arith.constant 0 : index
    %71 = vector.load %arg3[%c7, %c0_50, %c0_51] : memref<9x32x128xbf16, #tpu.memory_space<vmem>>, vector<1x32x128xbf16>
    %72 = vector.shape_cast %71 : vector<1x32x128xbf16> to vector<32x128xbf16>
    %cst_52 = arith.constant dense<0.000000e+00> : vector<512x128xf32>
    %73 = tpu.matmul %70, %72, %cst_52 {dimension_numbers = #tpu.dot_dimension_numbers<[1], [0], [0], [1], [0, 0, 1, 1], [], []>} : vector<512x32xbf16>, vector<32x128xbf16>, vector<512x128xf32> -> vector<512x128xf32>
    %74 = arith.addf %65, %73 : vector<512x128xf32>
    %c2_i32_53 = arith.constant 2 : i32
    %75 = arith.addi %1, %c2_i32_53 : i32
    %c0_54 = arith.constant 0 : index
    %76 = arith.index_cast %75 : i32 to index
    %c2_55 = arith.constant 2 : index
    %c0_56 = arith.constant 0 : index
    %77 = vector.load %arg2[%c0_54, %76, %c2_55, %c0_56] : memref<1x34x34x32xbf16, #tpu.memory_space<vmem>>, vector<1x16x32x32xbf16>
    %78 = vector.shape_cast %77 : vector<1x16x32x32xbf16> to vector<16x32x32xbf16>
    %79 = vector.shape_cast %78 : vector<16x32x32xbf16> to vector<512x32xbf16>
    %c8 = arith.constant 8 : index
    %c0_57 = arith.constant 0 : index
    %c0_58 = arith.constant 0 : index
    %80 = vector.load %arg3[%c8, %c0_57, %c0_58] : memref<9x32x128xbf16, #tpu.memory_space<vmem>>, vector<1x32x128xbf16>
    %81 = vector.shape_cast %80 : vector<1x32x128xbf16> to vector<32x128xbf16>
    %cst_59 = arith.constant dense<0.000000e+00> : vector<512x128xf32>
    %82 = tpu.matmul %79, %81, %cst_59 {dimension_numbers = #tpu.dot_dimension_numbers<[1], [0], [0], [1], [0, 0, 1, 1], [], []>} : vector<512x32xbf16>, vector<32x128xbf16>, vector<512x128xf32> -> vector<512x128xf32>
    %83 = arith.addf %74, %82 : vector<512x128xf32>
    %c0_60 = arith.constant 0 : index
    %c0_61 = arith.constant 0 : index
    %84 = vector.load %arg4[%c0_60, %c0_61] : memref<1x128xf32, #tpu.memory_space<vmem>>, vector<1x128xf32>
    %85 = vector.broadcast %84 : vector<1x128xf32> to vector<512x128xf32>
    %86 = arith.addf %83, %85 : vector<512x128xf32>
    %cst_62 = arith.constant 0.000000e+00 : f32
    %87 = vector.broadcast %cst_62 : f32 to vector<512x128xf32>
    %88 = arith.maximumf %86, %87 : vector<512x128xf32>
    %c0_63 = arith.constant 0 : index
    %c0_64 = arith.constant 0 : index
    %89 = vector.load %arg5[%c0_63, %c0_64] : memref<128x512xf32, #tpu.memory_space<vmem>>, vector<128x512xf32>
    %cst_65 = arith.constant dense<0.000000e+00> : vector<128x128xf32>
    %90 = tpu.matmul %89, %88, %cst_65 {dimension_numbers = #tpu.dot_dimension_numbers<[1], [0], [0], [1], [0, 0, 1, 1], [], []>} : vector<128x512xf32>, vector<512x128xf32>, vector<128x128xf32> -> vector<128x128xf32>
    %c0_66 = arith.constant 0 : index
    %c0_67 = arith.constant 0 : index
    %c0_68 = arith.constant 0 : index
    %91 = vector.load %arg6[%c0_66, %c0_67, %c0_68] : memref<1x128x128xf32, #tpu.memory_space<vmem>>, vector<1x128x128xf32>
    %92 = vector.shape_cast %91 : vector<1x128x128xf32> to vector<128x128xf32>
    %93 = vector.shape_cast %90 : vector<128x128xf32> to vector<1x128x128xf32>
    tpu.vector_store %arg6[%c0_66, %c0_67, %c0_68], %93 {strides = array<i32>} : memref<1x128x128xf32, #tpu.memory_space<vmem>>, vector<1x128x128xf32>,
    return
  }
  func.func @transform_0(%arg0: i32, %arg1: i32) -> (i32, i32, i32, i32) {
    %c0_i32 = arith.constant 0 : i32
    %c0_i32_0 = arith.constant 0 : i32
    %c0_i32_1 = arith.constant 0 : i32
    %c0_i32_2 = arith.constant 0 : i32
    return %arg0, %c0_i32, %c0_i32_0, %c0_i32_1 : i32, i32, i32, i32
  }
  func.func @transform_1(%arg0: i32, %arg1: i32) -> (i32, i32, i32) {
    %c0_i32 = arith.constant 0 : i32
    %c0_i32_0 = arith.constant 0 : i32
    %c0_i32_1 = arith.constant 0 : i32
    %c0_i32_2 = arith.constant 0 : i32
    return %c0_i32, %c0_i32_0, %c0_i32_1 : i32, i32, i32
  }
  func.func @transform_2(%arg0: i32, %arg1: i32) -> (i32, i32) {
    %c0_i32 = arith.constant 0 : i32
    %c0_i32_0 = arith.constant 0 : i32
    %c0_i32_1 = arith.constant 0 : i32
    return %c0_i32, %c0_i32_0 : i32, i32
  }
  func.func @transform_3(%arg0: i32, %arg1: i32) -> (i32, i32) {
    %c0_i32 = arith.constant 0 : i32
    %c0_i32_0 = arith.constant 0 : i32
    %c0_i32_1 = arith.constant 0 : i32
    return %c0_i32, %c0_i32_0 : i32, i32
  }
  func.func @transform_4(%arg0: i32, %arg1: i32) -> (i32, i32, i32) {
    %c0_i32 = arith.constant 0 : i32
    %c0_i32_0 = arith.constant 0 : i32
    return %arg0, %arg1, %c0_i32 : i32, i32, i32
  }
}

</mosaic_0001>

<bundles_post_ra>
// kernel: down_block2d.1
= control target key start
LH: loop header
LB: loop body
LE: loop exit
PB: predicated region body
PF: predicated region fallthrough
CT: control target
= control target key end

     0   :  { %9 = vsyncpa [#allocation3], 0  ;;  %s15383_s0 = inlined_call_operand.vmem [shape: bf16[2,34,34,32], index: 0, kind: input, shape index: {}]   ;;  %s15384_s1 = inlined_call_operand.vmem [shape: bf16[9,32,128], index: 1, kind: input, shape index: {}]   ;;  %s15385_s2 = inlined_call_operand.vmem [shape: f32[1,128], index: 2, kind: input, shape index: {}]   ;;  %s15386_s3 = inlined_call_operand.vmem [shape: f32[128,512], index: 3, kind: input, shape index: {}]   ;;  %s15387_s4 = inlined_call_operand.hbm [shape: f32[2,256,128], index: 4, kind: output, shape index: {}]  }
   0x1   :  { %11 = vsyncpa [#allocation3 + $0x1], 0  ;;  %s12448_s15 = smov 0   ;;  %s12450_s16 = smov 0  }
   0x2   :  { %s12452_s17 = smov 0   ;;  %s12454_s18 = smov 0  }
   0x3   :  { %s12456_s19 = smov 0   ;;  %s12458_s20 = smov 0  }
   0x4   :  { %s12460_s21 = smov 0   ;;  %s12462_s22 = smov 0  }
   0x5 LB: > { %s9303_s23 = sadd.s32 4294967295, %s12418_s22   ;;  %s9304_s24 = sadd.s32 4294967294, %s12418_s22   ;;  %s12418_s22 = sphi %s12462_s22, %s17_s22   ;;  %s12414_s21 = sphi %s12460_s21, %s15472_s21   ;;  %s12410_s20 = sphi %s12458_s20, %s15471_s20   ;;  %s12406_s19 = sphi %s12456_s19, %s15470_s19   ;;  %s12402_s18 = sphi %s12454_s18, %s15469_s18   ;;  %s12398_s17 = sphi %s12452_s17, %s15468_s17   ;;  %s12394_s16 = sphi %s12450_s16, %s15467_s16   ;;  %s12390_s15 = sphi %s12448_s15, %s15466_s15  }
   0x6   : > { %s26_s25 = sadd.s32 1, %s12410_s20  ;;  %s29_s26 = sadd.s32 1, %s12414_s21 }
   0x7   : > { %p27_p0 = scmp.ge.s32.totalorder %s26_s25, 2  ;;  %p137_p1 = scmp.ne.s32.totalorder %s12398_s17, %s12394_s16 }
   0x8   : > { %p138_p2 = scmp.eq.s32.totalorder %s9303_s23, 3  ;;  %p143_p5 = scmp.ne.s32.totalorder %s12394_s16, %s12390_s15 }
   0x9   : > { %s15474_s25 = smov (%p27_p0, %s26_s25), 0  ;;  %s15476_s26 = smov (!%p27_p0, %s29_s26), %s12414_s21 }
   0xa   : > { %s123_s27 = ssub.s32 %s12410_s20, %s15474_s25  ;;  %p12499_p3 = por %p138_p2, %p137_p1 }
   0xb   : > { %p31_p4 = scmp.ge.s32.totalorder %s15476_s26, 2  ;;  %p144_p6 = scmp.eq.s32.totalorder %s9304_s24, 3 }
   0xc   : > { %p9307_p7 = scmp.ge.s32.totalorder %s12418_s22, 1  ;;  %p179_p9 = scmp.lt.s32.totalorder %s12418_s22, 5 }
   0xd   : > { %s15478_s26 = smov (%p31_p4, %s15476_s26), 0  ;;  %p12508_p8 = por %p144_p6, %p143_p5 }
   0xe   : > { %s122_s30 = ssub.s32 %s12414_s21, %s15478_s26  ;;  %s127_s5 = sadd.s32 1, %s12398_s17 }
   0xf   : > { %s124_s6 = sor.u32 %s123_s27, %s122_s30  ;;  %p180_p10 = pnand %p9307_p7, %p179_p9 }
  0x10   : > { %p125_p11 = scmp.eq.s32.totalorder %s124_s6, 0 }
  0x11   : > { %183 = sbr.rel (%p180_p10) target bundleno = 1332 (0x534), region = 36 }
  0x12   : > { %s12517_s7 = scalar_select %p125_p11, %s12398_s17, %s127_s5  }
  0x18   : > { %v12047_v0 = vld [vmem:[%s15384_s1 + $0x10] sm:$0xff]   ;;  %p205_p12 = scmp.lt.s32.totalorder %s12406_s19, 1  ;;  %v12048_v1 = vld [vmem:[%s15384_s1 + $0x40] sm:$0xff]   ;;  %v12049_v2 = vld [vmem:[%s15384_s1 + $0x18] sm:$0xff]   ;;  %s10318_s27 = smul.u32 320, %s12402_s18  ;;  %vm1120_vm2 = vcmask 261120  }
  0x19   : > { %10785 = vmatprep.subr.bf16.mxu1 %v12047_v0  ;;  %11057 = vmatprep.subr.bf16.mxu0 %v12048_v1  ;;  %v12050_v3 = vld [vmem:[%s15384_s1 + $0x48] sm:$0xff]   ;;  %vm300_vm0 = vsmask.f32 3328  ;;  %vm301_vm1 = vsmask.f32 7440  ;;  %v15404_v28 = vmov 0 }
  0x1a   : > { %s206_s14 = scalar_select %p205_p12, %s12406_s19, 1  ;;  %10786 = vmatpush3.bf16.msra.mxu1 %v12047_v0  ;;  %11058 = vmatpush3.bf16.msra.mxu0 %v12048_v1  ;;  %vm12553_vm3 = vmor %vm300_vm0, %vm301_vm1  ;;  %vm2111_vm4 = vcmask 1042432   ;;  %vm2112_vm5 = vcmask 1046532  }
  0x1b   : > { %10787 = vmatprep.subr.bf16.mxu1 %v12049_v2  ;;  %11059 = vmatprep.subr.bf16.mxu0 %v12050_v3  ;;  %v15405_v28 = vsel %vm12553_vm3, 4294967295, %v15404_v28  ;;  %vm13130_vm6 = vmor %vm2111_vm4, %vm2112_vm5  ;;  %s10313_s24 = sshll.u32 %s12402_s18, 4  ;;  %s12420_s12 = smov [#allocation2]  }
  0x1c   : > { %s11973_s30 = smul.u32 680, %s206_s14  ;;  %15406 = vst [vmem:[#allocation5_spill] sm:$0xff] %v15405_v28  ;;  %s12328_s13 = sshll.u32 %s12420_s12, 4  ;;  %s12329_s13 = int_to_ptr.vmem [resolvable:$false] %s12328_s13 }
  0x1e   : > { %s209_s8 = scalar_lea.vmem %s15383_s0, %s11973_s30  ;;  %10788 = vmatpush3.bf16.msra.mxu1 %v12049_v2  ;;  %11060 = vmatpush3.bf16.msra.mxu0 %v12050_v3 }
  0x1f   : > { %s12537_s9 = scalar_lea.vmem %s209_s8, %s10318_s27  ;;  %s10314_s27 = sshll.u32 %s12406_s19, 5 }
  0x20   : > { %v216_v4 = vld [vmem:[%s12537_s9] sm:$0xf]  ;;  %v217_v5 = vld [vmem:[%s12537_s9 + $0x4] sm:$0xf]  ;;  %v218_v6 = vld [vmem:[%s12537_s9 + $0x8] sm:$0xf]  ;;  %s9214_s30 = sadd.s32 %s10314_s27, %s10313_s24 }
  0x21   : > { %v304_v7 = vshrl.u32 %v216_v4, 16  ;;  %v307_v8 = vshll.u32 %v216_v4, 16  ;;  %v313_v9 = vshll.u32 %v217_v5, 16  ;;  %v317_v10 = vshrl.u32 %v217_v5, 16  ;;  %v9671_v13 = vld [vmem:[%s12537_s9 + $0x14] sm:$0xf] }
  0x22   : > { %v323_v11 = vshll.u32 %v218_v6, 16  ;;  %v327_v12 = vshrl.u32 %v218_v6, 16  ;;  %v12544_v14 = vld [vmem:[%s12537_s9 + $0x18] sm:$0xf]  ;;  %v12547_v19 = vld [vmem:[%s12537_s9 + $0x1c] sm:$0xf] }
  0x23   : > { %v306_v15 = vrot.slane %v304_v7, 4  ;;  %v309_v16 = vrot.slane %v307_v8, 5  ;;  %v315_v17 = vrot.slane %v313_v9, 5  ;;  %v319_v18 = vrot.slane %v317_v10, 4  ;;  %v219_v37 = vld [vmem:[%s12537_s9 + $0xc] sm:$0xf] }
  0x24   : > { %v325_v20 = vrot.slane %v323_v11, 5  ;;  %v329_v21 = vrot.slane %v327_v12, 4  ;;  %v3659_v22 = vshrl.u32 %v9671_v13, 16  ;;  %v3662_v23 = vshll.u32 %v9671_v13, 16  ;;  %v284_v41 = vld [vmem:[%s12537_s9 + $0x10] sm:$0x1] }
  0x25   : > { %v310_v24 = vor.u32 %v309_v16, %v306_v15  ;;  %v320_v25 = vor.u32 %v319_v18, %v315_v17  ;;  %v3668_v26 = vshll.u32 %v12544_v14, 16  ;;  %v3672_v27 = vshrl.u32 %v12544_v14, 16  ;;  %v12567_v54 = vld [vmem:[%s12537_s9 + $0x20] sm:$0xf]  ;;  %v12574_v58 = vld [vmem:[%s12537_s9 + $0x24] sm:$0x1] }
  0x26   : > { %v330_v29 = vor.u32 %v329_v21, %v325_v20  ;;  %v3661_v30 = vrot.slane %v3659_v22, 4  ;;  %v3664_v31 = vrot.slane %v3662_v23, 5  ;;  %v3678_v32 = vshll.u32 %v12547_v19, 16  ;;  %v220_v63 = vld [vmem:[%s12537_s9 + $0x14] sm:$0xf]  ;;  %s10315_s5 = sshll.u32 %s9214_s30, 7 }
  0x27   : > { %v311_v33 = vrot.slane %v310_v24, 4  ;;  %v321_v34 = vrot.slane %v320_v25, 4  ;;  %v3670_v35 = vrot.slane %v3668_v26, 5  ;;  %v3674_v36 = vrot.slane %v3672_v27, 4  ;;  %v221_v8 = vld [vmem:[%s12537_s9 + $0x18] sm:$0xf]  ;;  %s15323_s8 = scalar_lea.hbm %s15387_s4, %s10315_s5 }
  0x28   : > { %v3665_v38 = vor.u32 %v3664_v31, %v3661_v30  ;;  %v3680_v39 = vrot.slane %v3678_v32, 5  ;;  %v3682_v40 = vshrl.u32 %v12547_v19, 16  ;;  %v331_v44 = vrot.slane %v330_v29, 4  ;;  %v222_v12 = vld [vmem:[%s12537_s9 + $0x1c] sm:$0xf] }
  0x29   : > { %v316_v42 = vsel %vm12553_vm3, %v311_v33, %v315_v17  ;;  %v326_v43 = vsel %vm12553_vm3, %v321_v34, %v325_v20  ;;  %v3675_v45 = vor.u32 %v3674_v36, %v3670_v35  ;;  %v5025_v49 = vrot.slane %v12547_v19, 5  ;;  %v9676_v20 = vld [vmem:[%s12537_s9 + $0x28] sm:$0xf]  ;;  %v9677_v30 = vld [vmem:[%s12537_s9 + $0x2c] sm:$0xf] }
  0x2a   : > { %v9317_v46 = vcombine.low %v316_v42, %v326_v43  ;;  %v3666_v47 = vrot.slane %v3665_v38, 4  ;;  %v3684_v48 = vrot.slane %v3682_v40, 4  ;;  %v333_v51 = vshll.u32 %v219_v37, 16  ;;  %v9678_v38 = vld [vmem:[%s12537_s9 + $0x30] sm:$0xf] }
  0x2b   : > { %v3676_v50 = vrot.slane %v3675_v45, 4  ;;  %v337_v52 = vshrl.u32 %v219_v37, 16  ;;  %v343_v53 = vshll.u32 %v284_v41, 16  ;;  %v5022_v57 = vrot.slane %v12544_v14, 5  ;;  %v13438_v28 = vld [vmem:[%s12537_s9 + $0xbc] sm:$0xf] }
  0x2c   : > { %10789 = vmatprep.mubr.msk.bf16.mxu1 %vm1120_vm2, %v9317_v46  ;;  %v3671_v55 = vsel %vm12553_vm3, %v3666_v47, %v3670_v35  ;;  %v3685_v56 = vor.u32 %v3684_v48, %v3680_v39  ;;  %v12580_v60 = vrot.slane %v5025_v49, 4  ;;  %v335_v61 = vrot.slane %v333_v51, 5  ;;  %15412 = vst [vmem:[#allocation9_spill] sm:$0xff] %v13438_v28 }
  0x2d   : > { %v3681_v59 = vsel %vm12553_vm3, %v3676_v50, %v3680_v39  ;;  %v339_v62 = vrot.slane %v337_v52, 4  ;;  %v3688_v2 = vshll.u32 %v12567_v54, 16  ;;  %v3692_v3 = vshrl.u32 %v12567_v54, 16 }
  0x2e   : > { %v3686_v0 = vrot.slane %v3685_v56, 4  ;;  %v9755_v1 = vcombine.low %v3671_v55, %v3681_v59  ;;  %v336_v4 = vsel %vm12553_vm3, %v331_v44, %v335_v61  ;;  %v345_v6 = vrot.slane %v343_v53, 5  ;;  %v223_v44 = vld [vmem:[%s12537_s9 + $0x20] sm:$0xf]  ;;  %v285_v53 = vld [vmem:[%s12537_s9 + $0x24] sm:$0x1] }
  0x2f   : > { %v340_v5 = vor.u32 %v339_v62, %v335_v61  ;;  %v3698_v7 = vshll.u32 %v12574_v58, 16  ;;  %v3690_v9 = vrot.slane %v3688_v2, 5  ;;  %v3694_v10 = vrot.slane %v3692_v3, 4  ;;  %v9679_v3 = vld [vmem:[%s12537_s9 + $0x34] sm:$0xf] }
  0x30   : > { %11061 = vmatprep.mubr.msk.bf16.mxu0 %vm1120_vm2, %v9755_v1  ;;  %v5028_v11 = vrot.slane %v12567_v54, 5  ;;  %v348_v13 = vshrl.u32 %v220_v63, 16  ;;  %v5031_v17 = vrot.slane %v12574_v58, 5  ;;  %v351_v18 = vshll.u32 %v220_v63, 16  ;;  %v12163_v58 = vld [vmem:[%s12537_s9 + $0x2c] sm:$0xf] }
  0x31   : > { %v341_v15 = vrot.slane %v340_v5, 4  ;;  %v3700_v16 = vrot.slane %v3698_v7, 5  ;;  %v3691_v21 = vsel %vm12553_vm3, %v3686_v0, %v3690_v9  ;;  %v3695_v22 = vor.u32 %v3694_v10, %v3690_v9 }
  0x32   : > { %v350_v23 = vrot.slane %v348_v13, 4  ;;  %v357_v24 = vshll.u32 %v221_v8, 16  ;;  %v353_v26 = vrot.slane %v351_v18, 5  ;;  %v361_v27 = vshrl.u32 %v221_v8, 16  ;;  %v9680_v13 = vld [vmem:[%s12537_s9 + $0x38] sm:$0x1] }
  0x33   : > { %v346_v25 = vsel %vm12553_vm3, %v341_v15, %v345_v6  ;;  %v367_v29 = vshll.u32 %v222_v12, 16  ;;  %v3696_v32 = vrot.slane %v3695_v22, 4  ;;  %v3703_v34 = vshrl.u32 %v9676_v20, 16 }
  0x34   : > { %v9318_v31 = vcombine.low %v336_v4, %v346_v25  ;;  %v359_v33 = vrot.slane %v357_v24, 5  ;;  %v354_v35 = vor.u32 %v353_v26, %v350_v23  ;;  %v363_v36 = vrot.slane %v361_v27, 4  ;;  %v225_v26 = vld [vmem:[%s12537_s9 + $0x2c] sm:$0xf] }
  0x35   : > { %v369_v37 = vrot.slane %v367_v29, 5  ;;  %v3706_v39 = vshll.u32 %v9676_v20, 16  ;;  %v3701_v40 = vsel %vm12553_vm3, %v3696_v32, %v3700_v16  ;;  %v3705_v41 = vrot.slane %v3703_v34, 4 }
  0x36   : > { %10790 = vmatmul.mubr.msk.bf16.vlgmr.msra.gmra.mrb[0].mxu1 %vm1120_vm2, %v9318_v31  ;;  %v3712_v42 = vshll.u32 %v9677_v30, 16  ;;  %v3716_v43 = vshrl.u32 %v9677_v30, 16  ;;  %v9756_v45 = vcombine.low %v3691_v21, %v3701_v40  ;;  %v355_v46 = vrot.slane %v354_v35, 4  ;;  %v224_v21 = vld [vmem:[%s12537_s9 + $0x28] sm:$0xf] }
  0x37   : > { %v364_v47 = vor.u32 %v363_v36, %v359_v33  ;;  %v3708_v48 = vrot.slane %v3706_v39, 5  ;;  %v3722_v52 = vshll.u32 %v9678_v38, 16  ;;  %v371_v55 = vshrl.u32 %v222_v12, 16  ;;  %v226_v35 = vld [vmem:[%s12537_s9 + $0x30] sm:$0xf] }
  0x38   : > { %v3714_v50 = vrot.slane %v3712_v42, 5  ;;  %v3718_v51 = vrot.slane %v3716_v43, 4  ;;  %11062 = vmatmul.mubr.msk.bf16.vlgmr.msra.gmra.mrb[0].mxu0 %vm1120_vm2, %v9756_v45  ;;  %v360_v56 = vsel %vm12553_vm3, %v355_v46, %v359_v33  ;;  %v377_v62 = vshll.u32 %v223_v44, 16  ;;  %v9682_v46 = vld [vmem:[%s12537_s9 + $0x40] sm:$0xf] }
  0x39   : > { %v365_v59 = vrot.slane %v364_v47, 4  ;;  %v3709_v61 = vor.u32 %v3708_v48, %v3705_v41  ;;  %v3724_v0 = vrot.slane %v3722_v52, 5  ;;  %v373_v1 = vrot.slane %v371_v55, 4  ;;  %v9681_v41 = vld [vmem:[%s12537_s9 + $0x3c] sm:$0xf] }
  0x3a   : > { %v3719_v63 = vor.u32 %v3718_v51, %v3714_v50  ;;  %v381_v2 = vshrl.u32 %v223_v44, 16  ;;  %v379_v6 = vrot.slane %v377_v62, 5  ;;  %v387_v7 = vshll.u32 %v285_v53, 16  ;;  %v9683_v62 = vld [vmem:[%s12537_s9 + $0x44] sm:$0xf] }
  0x3b   : > { %v370_v4 = vsel %vm12553_vm3, %v365_v59, %v369_v37  ;;  %v3710_v5 = vrot.slane %v3709_v61, 4  ;;  %v374_v10 = vor.u32 %v373_v1, %v369_v37  ;;  %v3726_v18 = vshrl.u32 %v9678_v38, 16 }
  0x3c   : > { %v9319_v8 = vcombine.low %v360_v56, %v370_v4  ;;  %v3720_v9 = vrot.slane %v3719_v63, 4  ;;  %v383_v12 = vrot.slane %v381_v2, 4  ;;  %v389_v16 = vrot.slane %v387_v7, 5 }
  0x3d   : > { %v3715_v15 = vsel %vm12553_vm3, %v3710_v5, %v3714_v50  ;;  %v3732_v20 = vshll.u32 %v9679_v3, 16  ;;  %v375_v23 = vrot.slane %v374_v10, 4  ;;  %v3736_v25 = vshrl.u32 %v9679_v3, 16  ;;  %v227_v5 = vld [vmem:[%s12537_s9 + $0x34] sm:$0xf] }
  0x3e   : > { %10793 = vmatprep.mubr.msk.bf16.mxu1 %vm1120_vm2, %v9319_v8  ;;  %v3725_v22 = vsel %vm12553_vm3, %v3720_v9, %v3724_v0  ;;  %v384_v24 = vor.u32 %v383_v12, %v379_v6  ;;  %v3728_v29 = vrot.slane %v3726_v18, 4  ;;  %v3742_v31 = vshll.u32 %v9680_v13, 16 }
  0x3f   : > { %v9757_v27 = vcombine.low %v3715_v15, %v3725_v22  ;;  %v3734_v30 = vrot.slane %v3732_v20, 5  ;;  %v380_v32 = vsel %vm12553_vm3, %v375_v23, %v379_v6  ;;  %v3738_v34 = vrot.slane %v3736_v25, 4  ;;  %v286_v20 = vld [vmem:[%s12537_s9 + $0x38] sm:$0x1] }
  0x40   : > { %v385_v33 = vrot.slane %v384_v24, 4  ;;  %v392_v36 = vshrl.u32 %v224_v21, 16  ;;  %v3729_v37 = vor.u32 %v3728_v29, %v3724_v0  ;;  %v3744_v38 = vrot.slane %v3742_v31, 5 }
  0x41   : > { %11065 = vmatprep.mubr.msk.bf16.mxu0 %vm1120_vm2, %v9757_v27  ;;  %v395_v39 = vshll.u32 %v224_v21, 16  ;;  %v401_v40 = vshll.u32 %v225_v26, 16  ;;  %v3739_v43 = vor.u32 %v3738_v34, %v3734_v30  ;;  %v405_v45 = vshrl.u32 %v225_v26, 16  ;;  %v9684_v27 = vld [vmem:[%s12537_s9 + $0x48] sm:$0xf] }
  0x42   : > { %v390_v42 = vsel %vm12553_vm3, %v385_v33, %v389_v16  ;;  %v394_v44 = vrot.slane %v392_v36, 4  ;;  %v3730_v48 = vrot.slane %v3729_v37, 4  ;;  %v411_v55 = vshll.u32 %v226_v35, 16  ;;  %v9685_v36 = vld [vmem:[%s12537_s9 + $0x4c] sm:$0x1] }
  0x43   : > { %v9320_v47 = vcombine.low %v380_v32, %v390_v42  ;;  %v397_v50 = vrot.slane %v395_v39, 5  ;;  %v403_v51 = vrot.slane %v401_v40, 5  ;;  %v3740_v52 = vrot.slane %v3739_v43, 4  ;;  %v228_v42 = vld [vmem:[%s12537_s9 + $0x3c] sm:$0xf] }
  0x44   : > { %v407_v53 = vrot.slane %v405_v45, 4  ;;  %v3747_v56 = vshrl.u32 %v9681_v41, 16  ;;  %v3735_v59 = vsel %vm12553_vm3, %v3730_v48, %v3734_v30  ;;  %v3750_v63 = vshll.u32 %v9681_v41, 16 }
  0x45   : > { %10794 = vmatmul.mubr.msk.bf16.gmra.mrb[4].mxu1 %vm1120_vm2, %v9320_v47  ;;  %v398_v61 = vor.u32 %v397_v50, %v394_v44  ;;  %v3756_v0 = vshll.u32 %v9682_v46, 16  ;;  %v3745_v1 = vsel %vm12553_vm3, %v3740_v52, %v3744_v38  ;;  %v413_v3 = vrot.slane %v411_v55, 5 }
  0x46   : > { %v408_v2 = vor.u32 %v407_v53, %v403_v51  ;;  %v3749_v4 = vrot.slane %v3747_v56, 4  ;;  %v9758_v6 = vcombine.low %v3735_v59, %v3745_v1  ;;  %v3752_v8 = vrot.slane %v3750_v63, 5  ;;  %v229_v56 = vld [vmem:[%s12537_s9 + $0x40] sm:$0xf]  ;;  %v230_v59 = vld [vmem:[%s12537_s9 + $0x44] sm:$0xf] }
  0x47   : > { %v399_v7 = vrot.slane %v398_v61, 4  ;;  %v3758_v9 = vrot.slane %v3756_v0, 5  ;;  %v3760_v12 = vshrl.u32 %v9682_v46, 16  ;;  %v3766_v13 = vshll.u32 %v9683_v62, 16 }
  0x48   : > { %v409_v10 = vrot.slane %v408_v2, 4  ;;  %v415_v15 = vshrl.u32 %v226_v35, 16  ;;  %11066 = vmatmul.mubr.msk.bf16.gmra.mrb[4].mxu0 %vm1120_vm2, %v9758_v6  ;;  %v3753_v18 = vor.u32 %v3752_v8, %v3749_v4  ;;  %v421_v21 = vshll.u32 %v227_v5, 16  ;;  %v9686_v2 = vld [vmem:[%s12537_s9 + $0x50] sm:$0xf] }
  0x49   : > { %v404_v16 = vsel %vm12553_vm3, %v399_v7, %v403_v51  ;;  %v425_v22 = vshrl.u32 %v227_v5, 16  ;;  %v3762_v24 = vrot.slane %v3760_v12, 4  ;;  %v3768_v25 = vrot.slane %v3766_v13, 5  ;;  %v9687_v12 = vld [vmem:[%s12537_s9 + $0x54] sm:$0xf] }
  0x4a   : > { %v414_v23 = vsel %vm12553_vm3, %v409_v10, %v413_v3  ;;  %v417_v26 = vrot.slane %v415_v15, 4  ;;  %v3754_v30 = vrot.slane %v3753_v18, 4  ;;  %v423_v31 = vrot.slane %v421_v21, 5 }
  0x4b   : > { %v9321_v29 = vcombine.low %v404_v16, %v414_v23  ;;  %v427_v32 = vrot.slane %v425_v22, 4  ;;  %v3763_v33 = vor.u32 %v3762_v24, %v3758_v9  ;;  %v431_v35 = vshll.u32 %v286_v20, 16  ;;  %v9688_v16 = vld [vmem:[%s12537_s9 + $0x58] sm:$0xf] }
  0x4c   : > { %v418_v34 = vor.u32 %v417_v26, %v413_v3  ;;  %v3770_v37 = vshrl.u32 %v9683_v62, 16  ;;  %v3759_v38 = vsel %vm12553_vm3, %v3754_v30, %v3758_v9  ;;  %v3776_v40 = vshll.u32 %v9684_v27, 16 }
  0x4d   : > { %10797 = vmatprep.mubr.msk.bf16.mxu1 %vm1120_vm2, %v9321_v29  ;;  %v428_v39 = vor.u32 %v427_v32, %v423_v31  ;;  %v3780_v41 = vshrl.u32 %v9684_v27, 16  ;;  %v3764_v43 = vrot.slane %v3763_v33, 4  ;;  %v433_v45 = vrot.slane %v431_v35, 5 }
  0x4e   : > { %v419_v44 = vrot.slane %v418_v34, 4  ;;  %v3772_v46 = vrot.slane %v3770_v37, 4  ;;  %v3778_v48 = vrot.slane %v3776_v40, 5  ;;  %v3786_v51 = vshll.u32 %v9685_v36, 16  ;;  %v287_v37 = vld [vmem:[%s12537_s9 + $0x4c] sm:$0x1] }
  0x4f   : > { %v429_v47 = vrot.slane %v428_v39, 4  ;;  %v3782_v50 = vrot.slane %v3780_v41, 4  ;;  %v3769_v52 = vsel %vm12553_vm3, %v3764_v43, %v3768_v25  ;;  %v436_v61 = vshrl.u32 %v228_v42, 16 }
  0x50   : > { %v424_v53 = vsel %vm12553_vm3, %v419_v44, %v423_v31  ;;  %v3773_v55 = vor.u32 %v3772_v46, %v3768_v25  ;;  %v9759_v62 = vcombine.low %v3759_v38, %v3769_v52  ;;  %v3788_v1 = vrot.slane %v3786_v51, 5  ;;  %v231_v25 = vld [vmem:[%s12537_s9 + $0x48] sm:$0xf] }
  0x51   : > { %v434_v63 = vsel %vm12553_vm3, %v429_v47, %v433_v45  ;;  %v3783_v0 = vor.u32 %v3782_v50, %v3778_v48  ;;  %v438_v5 = vrot.slane %v436_v61, 4  ;;  %v439_v6 = vshll.u32 %v228_v42, 16 }
  0x52   : > { %v9322_v3 = vcombine.low %v424_v53, %v434_v63  ;;  %v3774_v4 = vrot.slane %v3773_v55, 4  ;;  %11069 = vmatprep.mubr.msk.bf16.mxu0 %vm1120_vm2, %v9759_v62  ;;  %v445_v8 = vshll.u32 %v229_v56, 16  ;;  %v449_v9 = vshrl.u32 %v229_v56, 16  ;;  %v9690_v55 = vld [vmem:[%s12537_s9 + $0x60] sm:$0x1] }
  0x53   : > { %v3784_v7 = vrot.slane %v3783_v0, 4  ;;  %v455_v10 = vshll.u32 %v230_v59, 16  ;;  %v441_v15 = vrot.slane %v439_v6, 5  ;;  %v3791_v18 = vshrl.u32 %v9686_v2, 16  ;;  %v232_v63 = vld [vmem:[%s12537_s9 + $0x50] sm:$0xf] }
  0x54   : > { %10798 = vmatmul.mubr.msk.bf16.gmra.mrb[8].mxu1 %vm1120_vm2, %v9322_v3  ;;  %v3779_v13 = vsel %vm12553_vm3, %v3774_v4, %v3778_v48  ;;  %v3794_v20 = vshll.u32 %v9686_v2, 16  ;;  %v447_v22 = vrot.slane %v445_v8, 5  ;;  %v451_v23 = vrot.slane %v449_v9, 4  ;;  %v9689_v48 = vld [vmem:[%s12537_s9 + $0x5c] sm:$0xf] }
  0x55   : > { %v3789_v21 = vsel %vm12553_vm3, %v3784_v7, %v3788_v1  ;;  %v457_v24 = vrot.slane %v455_v10, 5  ;;  %v442_v27 = vor.u32 %v441_v15, %v438_v5  ;;  %v3793_v29 = vrot.slane %v3791_v18, 4 }
  0x56   : > { %v9760_v26 = vcombine.low %v3779_v13, %v3789_v21  ;;  %v3796_v30 = vrot.slane %v3794_v20, 5  ;;  %v452_v31 = vor.u32 %v451_v23, %v447_v22  ;;  %v3800_v32 = vshll.u32 %v9687_v12, 16  ;;  %v234_v21 = vld [vmem:[%s12537_s9 + $0x58] sm:$0xf] }
  0x57   : > { %v3804_v33 = vshrl.u32 %v9687_v12, 16  ;;  %v3810_v34 = vshll.u32 %v9688_v16, 16  ;;  %v443_v35 = vrot.slane %v442_v27, 4  ;;  %v459_v38 = vshrl.u32 %v230_v59, 16  ;;  %v233_v12 = vld [vmem:[%s12537_s9 + $0x54] sm:$0xf] }
  0x58   : > { %11070 = vmatmul.mubr.msk.bf16.gmra.mrb[8].mxu0 %vm1120_vm2, %v9760_v26  ;;  %v3797_v36 = vor.u32 %v3796_v30, %v3793_v29  ;;  %v465_v39 = vshll.u32 %v231_v25, 16  ;;  %v453_v40 = vrot.slane %v452_v31, 4  ;;  %v3802_v41 = vrot.slane %v3800_v32, 5 }
  0x59   : > { %v3806_v42 = vrot.slane %v3804_v33, 4  ;;  %v3812_v43 = vrot.slane %v3810_v34, 5  ;;  %v448_v44 = vsel %vm12553_vm3, %v443_v35, %v447_v22  ;;  %v461_v46 = vrot.slane %v459_v38, 4  ;;  %v9691_v22 = vld [vmem:[%s12537_s9 + $0x64] sm:$0xf] }
  0x5a   : > { %v3798_v45 = vrot.slane %v3797_v36, 4  ;;  %v467_v47 = vrot.slane %v465_v39, 5  ;;  %v458_v50 = vsel %vm12553_vm3, %v453_v40, %v457_v24  ;;  %v469_v52 = vshrl.u32 %v231_v25, 16  ;;  %v9692_v35 = vld [vmem:[%s12537_s9 + $0x68] sm:$0xf] }
  0x5b   : > { %v3807_v51 = vor.u32 %v3806_v42, %v3802_v41  ;;  %v475_v53 = vshll.u32 %v287_v37, 16  ;;  %v9323_v56 = vcombine.low %v448_v44, %v458_v50  ;;  %v462_v61 = vor.u32 %v461_v46, %v457_v24 }
  0x5c   : > { %v3803_v59 = vsel %vm12553_vm3, %v3798_v45, %v3802_v41  ;;  %v3814_v62 = vshrl.u32 %v9688_v16, 16  ;;  %v471_v1 = vrot.slane %v469_v52, 4  ;;  %v3820_v3 = vshll.u32 %v9689_v48, 16  ;;  %v9693_v41 = vld [vmem:[%s12537_s9 + $0x6c] sm:$0xf] }
  0x5d   : > { %v3808_v0 = vrot.slane %v3807_v51, 4  ;;  %v477_v2 = vrot.slane %v475_v53, 5  ;;  %10801 = vmatprep.mubr.msk.bf16.mxu1 %vm1120_vm2, %v9323_v56  ;;  %v463_v4 = vrot.slane %v462_v61, 4  ;;  %v3824_v6 = vshrl.u32 %v9689_v48, 16  ;;  %v235_v51 = vld [vmem:[%s12537_s9 + $0x5c] sm:$0xf] }
  0x5e   : > { %v3816_v5 = vrot.slane %v3814_v62, 4  ;;  %v3830_v7 = vshll.u32 %v9690_v55, 16  ;;  %v472_v9 = vor.u32 %v471_v1, %v467_v47  ;;  %v3822_v10 = vrot.slane %v3820_v3, 5 }
  0x5f   : > { %v3813_v8 = vsel %vm12553_vm3, %v3808_v0, %v3812_v43  ;;  %v480_v13 = vshrl.u32 %v232_v63, 16  ;;  %v468_v16 = vsel %vm12553_vm3, %v463_v4, %v467_v47  ;;  %v3826_v20 = vrot.slane %v3824_v6, 4 }
  0x60   : > { %v9761_v15 = vcombine.low %v3803_v59, %v3813_v8  ;;  %v3817_v18 = vor.u32 %v3816_v5, %v3812_v43  ;;  %v473_v23 = vrot.slane %v472_v9, 4  ;;  %v3832_v24 = vrot.slane %v3830_v7, 5  ;;  %v9694_v9 = vld [vmem:[%s12537_s9 + $0x70] sm:$0xf] }
  0x61   : > { %v482_v25 = vrot.slane %v480_v13, 4  ;;  %v483_v26 = vshll.u32 %v232_v63, 16  ;;  %v3827_v29 = vor.u32 %v3826_v20, %v3822_v10  ;;  %v489_v30 = vshll.u32 %v233_v12, 16  ;;  %v288_v63 = vld [vmem:[%s12537_s9 + $0x60] sm:$0x1] }
  0x62   : > { %11073 = vmatprep.mubr.msk.bf16.mxu0 %vm1120_vm2, %v9761_v15  ;;  %v3818_v27 = vrot.slane %v3817_v18, 4  ;;  %v493_v31 = vshrl.u32 %v233_v12, 16  ;;  %v478_v32 = vsel %vm12553_vm3, %v473_v23, %v477_v2  ;;  %v499_v34 = vshll.u32 %v234_v21, 16 }
  0x63   : > { %v485_v33 = vrot.slane %v483_v26, 5  ;;  %v3835_v36 = vshrl.u32 %v9691_v22, 16  ;;  %v9324_v37 = vcombine.low %v468_v16, %v478_v32  ;;  %v3828_v39 = vrot.slane %v3827_v29, 4 }
  0x64   : > { %v3823_v38 = vsel %vm12553_vm3, %v3818_v27, %v3822_v10  ;;  %v491_v40 = vrot.slane %v489_v30, 5  ;;  %v495_v43 = vrot.slane %v493_v31, 4  ;;  %v501_v44 = vrot.slane %v499_v34, 5  ;;  %v236_v27 = vld [vmem:[%s12537_s9 + $0x64] sm:$0xf] }
  0x65   : > { %v486_v42 = vor.u32 %v485_v33, %v482_v25  ;;  %v3837_v45 = vrot.slane %v3835_v36, 4  ;;  %10802 = vmatmul.mubr.msk.bf16.gmra.mrb[12].mxu1 %vm1120_vm2, %v9324_v37  ;;  %v3833_v46 = vsel %vm12553_vm3, %v3828_v39, %v3832_v24  ;;  %v3838_v47 = vshll.u32 %v9691_v22, 16  ;;  %v9695_v22 = vld [vmem:[%s12537_s9 + $0x74] sm:$0x1]  ;;  %v237_v33 = vld [vmem:[%s12537_s9 + $0x68] sm:$0xf] }
  0x66   : > { %v3844_v48 = vshll.u32 %v9692_v35, 16  ;;  %v3848_v50 = vshrl.u32 %v9692_v35, 16  ;;  %v9762_v52 = vcombine.low %v3823_v38, %v3833_v46  ;;  %v496_v55 = vor.u32 %v495_v43, %v491_v40 }
  0x67   : > { %v487_v53 = vrot.slane %v486_v42, 4  ;;  %v3854_v56 = vshll.u32 %v9693_v41, 16  ;;  %v3840_v59 = vrot.slane %v3838_v47, 5  ;;  %v503_v0 = vshrl.u32 %v234_v21, 16  ;;  %v9696_v47 = vld [vmem:[%s12537_s9 + $0x78] sm:$0xf] }
  0x68   : > { %v3846_v61 = vrot.slane %v3844_v48, 5  ;;  %v3850_v62 = vrot.slane %v3848_v50, 4  ;;  %11074 = vmatmul.mubr.msk.bf16.gmra.mrb[12].mxu0 %vm1120_vm2, %v9762_v52  ;;  %v497_v2 = vrot.slane %v496_v55, 4  ;;  %v509_v4 = vshll.u32 %v235_v51, 16 }
  0x69   : > { %v492_v1 = vsel %vm12553_vm3, %v487_v53, %v491_v40  ;;  %v3856_v3 = vrot.slane %v3854_v56, 5  ;;  %v3841_v5 = vor.u32 %v3840_v59, %v3837_v45  ;;  %v505_v7 = vrot.slane %v503_v0, 4  ;;  %v9697_v53 = vld [vmem:[%s12537_s9 + $0x7c] sm:$0xf] }
  0x6a   : > { %v3851_v6 = vor.u32 %v3850_v62, %v3846_v61  ;;  %v513_v8 = vshrl.u32 %v235_v51, 16  ;;  %v502_v10 = vsel %vm12553_vm3, %v497_v2, %v501_v44  ;;  %v511_v12 = vrot.slane %v509_v4, 5 }
  0x6b   : > { %v519_v13 = vshll.u32 %v288_v63, 16  ;;  %v3858_v15 = vshrl.u32 %v9693_v41, 16  ;;  %v9325_v16 = vcombine.low %v492_v1, %v502_v10  ;;  %v3842_v18 = vrot.slane %v3841_v5, 4  ;;  %v238_v41 = vld [vmem:[%s12537_s9 + $0x6c] sm:$0xf] }
  0x6c   : > { %v3852_v20 = vrot.slane %v3851_v6, 4  ;;  %v506_v21 = vor.u32 %v505_v7, %v501_v44  ;;  %v515_v23 = vrot.slane %v513_v8, 4  ;;  %v3864_v26 = vshll.u32 %v9694_v9, 16 }
  0x6d   : > { %v521_v24 = vrot.slane %v519_v13, 5  ;;  %v3860_v25 = vrot.slane %v3858_v15, 4  ;;  %10805 = vmatprep.mubr.msk.bf16.mxu1 %vm1120_vm2, %v9325_v16  ;;  %v3847_v29 = vsel %vm12553_vm3, %v3842_v18, %v3846_v61  ;;  %v3868_v32 = vshrl.u32 %v9694_v9, 16 }
  0x6e   : > { %v3857_v30 = vsel %vm12553_vm3, %v3852_v20, %v3856_v3  ;;  %v507_v31 = vrot.slane %v506_v21, 4  ;;  %v516_v35 = vor.u32 %v515_v23, %v511_v12  ;;  %v3866_v37 = vrot.slane %v3864_v26, 5  ;;  %v289_v26 = vld [vmem:[%s12537_s9 + $0x74] sm:$0x1] }
  0x6f   : > { %v9763_v34 = vcombine.low %v3847_v29, %v3857_v30  ;;  %v3861_v36 = vor.u32 %v3860_v25, %v3856_v3  ;;  %v3870_v39 = vrot.slane %v3868_v32, 4  ;;  %v3874_v40 = vshll.u32 %v9695_v22, 16  ;;  %v9698_v3 = vld [vmem:[%s12537_s9 + $0x80] sm:$0xf] }
  0x70   : > { %v512_v38 = vsel %vm12553_vm3, %v507_v31, %v511_v12  ;;  %v524_v42 = vshrl.u32 %v236_v27, 16  ;;  %v517_v43 = vrot.slane %v516_v35, 4  ;;  %v527_v45 = vshll.u32 %v236_v27, 16  ;;  %v239_v12 = vld [vmem:[%s12537_s9 + $0x70] sm:$0xf] }
  0x71   : > { %11077 = vmatprep.mubr.msk.bf16.mxu0 %vm1120_vm2, %v9763_v34  ;;  %v3862_v44 = vrot.slane %v3861_v36, 4  ;;  %v533_v46 = vshll.u32 %v237_v33, 16  ;;  %v3871_v48 = vor.u32 %v3870_v39, %v3866_v37  ;;  %v3876_v50 = vrot.slane %v3874_v40, 5  ;;  %v9699_v34 = vld [vmem:[%s12537_s9 + $0x84] sm:$0xf]  ;;  %v12052_v39 = vld [vmem:[%s15384_s1 + $0x50] sm:$0xff]  }
  0x72   : > { %v526_v51 = vrot.slane %v524_v42, 4  ;;  %v537_v52 = vshrl.u32 %v237_v33, 16  ;;  %v522_v55 = vsel %vm12553_vm3, %v517_v43, %v521_v24  ;;  %v529_v59 = vrot.slane %v527_v45, 5  ;;  %11125 = vmatprep.subr.bf16.mxu0 %v12052_v39 }
  0x73   : > { %v3867_v56 = vsel %vm12553_vm3, %v3862_v44, %v3866_v37  ;;  %v535_v61 = vrot.slane %v533_v46, 5  ;;  %v9326_v62 = vcombine.low %v512_v38, %v522_v55  ;;  %v3872_v63 = vrot.slane %v3871_v48, 4  ;;  %v9700_v46 = vld [vmem:[%s12537_s9 + $0x88] sm:$0x1]  ;;  %11126 = vmatpush3.bf16.msra.mxu0 %v12052_v39 }
  0x74   : > { %v539_v0 = vrot.slane %v537_v52, 4  ;;  %v543_v1 = vshll.u32 %v238_v41, 16  ;;  %v530_v2 = vor.u32 %v529_v59, %v526_v51  ;;  %v3879_v4 = vshrl.u32 %v9696_v47, 16 }
  0x75   : > { %v3882_v5 = vshll.u32 %v9696_v47, 16  ;;  %v3888_v6 = vshll.u32 %v9697_v53, 16  ;;  %10806 = vmatmul.mubr.msk.bf16.gmra.mrb[16].mxu1 %vm1120_vm2, %v9326_v62  ;;  %v3877_v7 = vsel %vm12553_vm3, %v3872_v63, %v3876_v50  ;;  %v3892_v10 = vshrl.u32 %v9697_v53, 16  ;;  %v240_v50 = vld [vmem:[%s12537_s9 + $0x78] sm:$0xf] }
  0x76   : > { %v540_v8 = vor.u32 %v539_v0, %v535_v61  ;;  %v545_v9 = vrot.slane %v543_v1, 5  ;;  %v9764_v13 = vcombine.low %v3867_v56, %v3877_v7  ;;  %v531_v15 = vrot.slane %v530_v2, 4  ;;  %v241_v56 = vld [vmem:[%s12537_s9 + $0x7c] sm:$0xf] }
  0x77   : > { %v3881_v16 = vrot.slane %v3879_v4, 4  ;;  %v3884_v18 = vrot.slane %v3882_v5, 5  ;;  %v3890_v21 = vrot.slane %v3888_v6, 5  ;;  %v3894_v22 = vrot.slane %v3892_v10, 4  ;;  %v242_v6 = vld [vmem:[%s12537_s9 + $0x80] sm:$0xf] }
  0x78   : > { %v541_v20 = vrot.slane %v540_v8, 4  ;;  %v3898_v23 = vshll.u32 %v9698_v3, 16  ;;  %11078 = vmatmul.mubr.msk.bf16.gmra.mrb[16].mxu0 %vm1120_vm2, %v9764_v13  ;;  %v536_v24 = vsel %vm12553_vm3, %v531_v15, %v535_v61  ;;  %v547_v27 = vshrl.u32 %v238_v41, 16 }
  0x79   : > { %v3885_v25 = vor.u32 %v3884_v18, %v3881_v16  ;;  %v553_v29 = vshll.u32 %v239_v12, 16  ;;  %v3895_v31 = vor.u32 %v3894_v22, %v3890_v21  ;;  %v557_v33 = vshrl.u32 %v239_v12, 16  ;;  %v9702_v16 = vld [vmem:[%s12537_s9 + $0x90] sm:$0xf] }
  0x7a   : > { %v546_v30 = vsel %vm12553_vm3, %v541_v20, %v545_v9  ;;  %v3900_v32 = vrot.slane %v3898_v23, 5  ;;  %v549_v37 = vrot.slane %v547_v27, 4  ;;  %v563_v42 = vshll.u32 %v289_v26, 16 }
  0x7b   : > { %v9327_v35 = vcombine.low %v536_v24, %v546_v30  ;;  %v3886_v36 = vrot.slane %v3885_v25, 4  ;;  %v555_v38 = vrot.slane %v553_v29, 5  ;;  %v3896_v40 = vrot.slane %v3895_v31, 4  ;;  %v9703_v30 = vld [vmem:[%s12537_s9 + $0x94] sm:$0xf] }
  0x7c   : > { %v559_v41 = vrot.slane %v557_v33, 4  ;;  %v3902_v43 = vshrl.u32 %v9698_v3, 16  ;;  %v550_v45 = vor.u32 %v549_v37, %v545_v9  ;;  %v3908_v47 = vshll.u32 %v9699_v34, 16  ;;  %v9701_v9 = vld [vmem:[%s12537_s9 + $0x8c] sm:$0xf] }
  0x7d   : > { %10809 = vmatprep.mubr.msk.bf16.mxu1 %vm1120_vm2, %v9327_v35  ;;  %v3891_v44 = vsel %vm12553_vm3, %v3886_v36, %v3890_v21  ;;  %v3912_v48 = vshrl.u32 %v9699_v34, 16  ;;  %v3901_v51 = vsel %vm12553_vm3, %v3896_v40, %v3900_v32  ;;  %v565_v53 = vrot.slane %v563_v42, 5  ;;  %v243_v33 = vld [vmem:[%s12537_s9 + $0x84] sm:$0xf] }
  0x7e   : > { %v560_v52 = vor.u32 %v559_v41, %v555_v38  ;;  %v3904_v55 = vrot.slane %v3902_v43, 4  ;;  %v9765_v59 = vcombine.low %v3891_v44, %v3901_v51  ;;  %v551_v61 = vrot.slane %v550_v45, 4  ;;  %v290_v44 = vld [vmem:[%s12537_s9 + $0x88] sm:$0x1] }
  0x7f   : > { %v3910_v62 = vrot.slane %v3908_v47, 5  ;;  %v3914_v63 = vrot.slane %v3912_v48, 4  ;;  %v3918_v2 = vshll.u32 %v9700_v46, 16  ;;  %v568_v3 = vshrl.u32 %v240_v50, 16 }
  0x80   : > { %v561_v0 = vrot.slane %v560_v52, 4  ;;  %v3905_v1 = vor.u32 %v3904_v55, %v3900_v32  ;;  %11081 = vmatprep.mubr.msk.bf16.mxu0 %vm1120_vm2, %v9765_v59  ;;  %v556_v4 = vsel %vm12553_vm3, %v551_v61, %v555_v38  ;;  %v571_v7 = vshll.u32 %v240_v50, 16  ;;  %v9704_v52 = vld [vmem:[%s12537_s9 + $0x98] sm:$0xf] }
  0x81   : > { %v3915_v5 = vor.u32 %v3914_v63, %v3910_v62  ;;  %v577_v8 = vshll.u32 %v241_v56, 16  ;;  %v3920_v13 = vrot.slane %v3918_v2, 5  ;;  %v570_v15 = vrot.slane %v568_v3, 4 }
  0x82   : > { %v566_v10 = vsel %vm12553_vm3, %v561_v0, %v565_v53  ;;  %v3906_v12 = vrot.slane %v3905_v1, 4  ;;  %v573_v21 = vrot.slane %v571_v7, 5  ;;  %v581_v24 = vshrl.u32 %v241_v56, 16  ;;  %v9705_v1 = vld [vmem:[%s12537_s9 + $0x9c] sm:$0x1] }
  0x83   : > { %v9328_v18 = vcombine.low %v556_v4, %v566_v10  ;;  %v3916_v20 = vrot.slane %v3915_v5, 4  ;;  %v579_v22 = vrot.slane %v577_v8, 5  ;;  %v587_v25 = vshll.u32 %v242_v6, 16 }
  0x84   : > { %v3911_v23 = vsel %vm12553_vm3, %v3906_v12, %v3910_v62  ;;  %v3923_v26 = vshrl.u32 %v9701_v9, 16  ;;  %v574_v29 = vor.u32 %v573_v21, %v570_v15  ;;  %v3926_v31 = vshll.u32 %v9701_v9, 16  ;;  %v245_v12 = vld [vmem:[%s12537_s9 + $0x90] sm:$0xf] }
  0x85   : > { %10810 = vmatmul.mubr.msk.bf16.gmra.mrb[20].mxu1 %vm1120_vm2, %v9328_v18  ;;  %v3921_v27 = vsel %vm12553_vm3, %v3916_v20, %v3920_v13  ;;  %v3932_v32 = vshll.u32 %v9702_v16, 16  ;;  %v583_v35 = vrot.slane %v581_v24, 4  ;;  %v589_v36 = vrot.slane %v587_v25, 5  ;;  %v246_v20 = vld [vmem:[%s12537_s9 + $0x94] sm:$0xf] }
  0x86   : > { %v9766_v34 = vcombine.low %v3911_v23, %v3921_v27  ;;  %v3925_v37 = vrot.slane %v3923_v26, 4  ;;  %v575_v38 = vrot.slane %v574_v29, 4  ;;  %v3928_v39 = vrot.slane %v3926_v31, 5  ;;  %v9706_v25 = vld [vmem:[%s12537_s9 + $0xa0] sm:$0xf] }
  0x87   : > { %v3934_v40 = vrot.slane %v3932_v32, 5  ;;  %v3936_v41 = vshrl.u32 %v9702_v16, 16  ;;  %v584_v42 = vor.u32 %v583_v35, %v579_v22  ;;  %v3942_v43 = vshll.u32 %v9703_v30, 16 }
  0x88   : > { %11082 = vmatmul.mubr.msk.bf16.gmra.mrb[20].mxu0 %vm1120_vm2, %v9766_v34  ;;  %v591_v45 = vshrl.u32 %v242_v6, 16  ;;  %v597_v46 = vshll.u32 %v243_v33, 16  ;;  %v580_v47 = vsel %vm12553_vm3, %v575_v38, %v579_v22  ;;  %v3929_v48 = vor.u32 %v3928_v39, %v3925_v37  ;;  %v244_v6 = vld [vmem:[%s12537_s9 + $0x8c] sm:$0xf] }
  0x89   : > { %v3938_v50 = vrot.slane %v3936_v41, 4  ;;  %v601_v51 = vshrl.u32 %v243_v33, 16  ;;  %v585_v53 = vrot.slane %v584_v42, 4  ;;  %v3944_v55 = vrot.slane %v3942_v43, 5  ;;  %v9707_v43 = vld [vmem:[%s12537_s9 + $0xa4] sm:$0xf] }
  0x8a   : > { %v593_v56 = vrot.slane %v591_v45, 4  ;;  %v599_v59 = vrot.slane %v597_v46, 5  ;;  %v3930_v61 = vrot.slane %v3929_v48, 4  ;;  %v607_v0 = vshll.u32 %v290_v44, 16  ;;  %v9708_v46 = vld [vmem:[%s12537_s9 + $0xa8] sm:$0xf] }
  0x8b   : > { %v3939_v62 = vor.u32 %v3938_v50, %v3934_v40  ;;  %v603_v63 = vrot.slane %v601_v51, 4  ;;  %v590_v2 = vsel %vm12553_vm3, %v585_v53, %v589_v36  ;;  %v3946_v4 = vshrl.u32 %v9703_v30, 16 }
  0x8c   : > { %v594_v3 = vor.u32 %v593_v56, %v589_v36  ;;  %v3952_v5 = vshll.u32 %v9704_v52, 16  ;;  %v9329_v7 = vcombine.low %v580_v47, %v590_v2  ;;  %v3935_v8 = vsel %vm12553_vm3, %v3930_v61, %v3934_v40  ;;  %v247_v2 = vld [vmem:[%s12537_s9 + $0x98] sm:$0xf] }
  0x8d   : > { %v3940_v9 = vrot.slane %v3939_v62, 4  ;;  %v604_v10 = vor.u32 %v603_v63, %v599_v59  ;;  %v609_v15 = vrot.slane %v607_v0, 5  ;;  %v3948_v16 = vrot.slane %v3946_v4, 4 }
  0x8e   : > { %v595_v13 = vrot.slane %v594_v3, 4  ;;  %v3954_v18 = vrot.slane %v3952_v5, 5  ;;  %10813 = vmatprep.mubr.msk.bf16.mxu1 %vm1120_vm2, %v9329_v7  ;;  %v3956_v23 = vshrl.u32 %v9704_v52, 16  ;;  %v3962_v24 = vshll.u32 %v9705_v1, 16  ;;  %v291_v7 = vld [vmem:[%s12537_s9 + $0x9c] sm:$0x1] }
  0x8f   : > { %v3945_v21 = vsel %vm12553_vm3, %v3940_v9, %v3944_v55  ;;  %v605_v22 = vrot.slane %v604_v10, 4  ;;  %v3949_v29 = vor.u32 %v3948_v16, %v3944_v55  ;;  %v612_v30 = vshrl.u32 %v244_v6, 16 }
  0x90   : > { %v9767_v26 = vcombine.low %v3935_v8, %v3945_v21  ;;  %v600_v27 = vsel %vm12553_vm3, %v595_v13, %v599_v59  ;;  %v3958_v32 = vrot.slane %v3956_v23, 4  ;;  %v3964_v33 = vrot.slane %v3962_v24, 5  ;;  %v9709_v13 = vld [vmem:[%s12537_s9 + $0xac] sm:$0xf] }
  0x91   : > { %v610_v31 = vsel %vm12553_vm3, %v605_v22, %v609_v15  ;;  %v615_v34 = vshll.u32 %v244_v6, 16  ;;  %v3950_v36 = vrot.slane %v3949_v29, 4  ;;  %v614_v37 = vrot.slane %v612_v30, 4 }
  0x92   : > { %11085 = vmatprep.mubr.msk.bf16.mxu0 %vm1120_vm2, %v9767_v26  ;;  %v9330_v35 = vcombine.low %v600_v27, %v610_v31  ;;  %v621_v38 = vshll.u32 %v245_v12, 16  ;;  %v3959_v39 = vor.u32 %v3958_v32, %v3954_v18  ;;  %v625_v41 = vshrl.u32 %v245_v12, 16  ;;  %v248_v31 = vld [vmem:[%s12537_s9 + $0xa0] sm:$0xf] }
  0x93   : > { %v617_v40 = vrot.slane %v615_v34, 5  ;;  %v631_v42 = vshll.u32 %v246_v20, 16  ;;  %v3955_v44 = vsel %vm12553_vm3, %v3950_v36, %v3954_v18  ;;  %v3967_v47 = vshrl.u32 %v9706_v25, 16  ;;  %v249_v36 = vld [vmem:[%s12537_s9 + $0xa4] sm:$0xf] }
  0x94   : > { %10814 = vmatmul.mubr.msk.bf16.gmra.mrb[24].mxu1 %vm1120_vm2, %v9330_v35  ;;  %v623_v45 = vrot.slane %v621_v38, 5  ;;  %v3970_v48 = vshll.u32 %v9706_v25, 16  ;;  %v3960_v50 = vrot.slane %v3959_v39, 4  ;;  %v627_v52 = vrot.slane %v625_v41, 4  ;;  %v9710_v25 = vld [vmem:[%s12537_s9 + $0xb0] sm:$0x1] }
  0x95   : > { %v618_v51 = vor.u32 %v617_v40, %v614_v37  ;;  %v633_v53 = vrot.slane %v631_v42, 5  ;;  %v3969_v55 = vrot.slane %v3967_v47, 4  ;;  %v3976_v59 = vshll.u32 %v9707_v43, 16  ;;  %v12803_v41 = vld [vmem:[%s12537_s9 + $0xa8] sm:$0xf] }
  0x96   : > { %v3972_v56 = vrot.slane %v3970_v48, 5  ;;  %v3980_v61 = vshrl.u32 %v9707_v43, 16  ;;  %v3965_v62 = vsel %vm12553_vm3, %v3960_v50, %v3964_v33  ;;  %v628_v0 = vor.u32 %v627_v52, %v623_v45 }
  0x97   : > { %v619_v63 = vrot.slane %v618_v51, 4  ;;  %v3986_v1 = vshll.u32 %v9708_v46, 16  ;;  %v9768_v3 = vcombine.low %v3955_v44, %v3965_v62  ;;  %v3978_v5 = vrot.slane %v3976_v59, 5  ;;  %v9711_v51 = vld [vmem:[%s12537_s9 + $0xb4] sm:$0xf] }
  0x98   : > { %v3973_v4 = vor.u32 %v3972_v56, %v3969_v55  ;;  %v3982_v6 = vrot.slane %v3980_v61, 4  ;;  %v629_v9 = vrot.slane %v628_v0, 4  ;;  %v635_v12 = vshrl.u32 %v246_v20, 16  ;;  %v9712_v59 = vld [vmem:[%s12537_s9 + $0xb8] sm:$0xf] }
  0x99   : > { %v624_v8 = vsel %vm12553_vm3, %v619_v63, %v623_v45  ;;  %v3988_v10 = vrot.slane %v3986_v1, 5  ;;  %11086 = vmatmul.mubr.msk.bf16.gmra.mrb[24].mxu0 %vm1120_vm2, %v9768_v3  ;;  %v641_v18 = vshll.u32 %v247_v2, 16  ;;  %v645_v21 = vshrl.u32 %v247_v2, 16  ;;  %v12053_v1 = vld [vmem:[%s15384_s1] sm:$0xff]  }
  0x9a   : > { %v3974_v15 = vrot.slane %v3973_v4, 4  ;;  %v3983_v16 = vor.u32 %v3982_v6, %v3978_v5  ;;  %v634_v22 = vsel %vm12553_vm3, %v629_v9, %v633_v53  ;;  %v637_v23 = vrot.slane %v635_v12, 4  ;;  %v9713_v6 = vld [vmem:[%s12537_s9 + $0xbc] sm:$0xf]  ;;  %v251_v12 = vld [vmem:[%s12537_s9 + $0xac] sm:$0xf]  ;;  %10853 = vmatprep.subr.bf16.mxu1 %v12053_v1 }
  0x9b   : > { %v651_v24 = vshll.u32 %v291_v7, 16  ;;  %v3990_v26 = vshrl.u32 %v9708_v46, 16  ;;  %v9331_v27 = vcombine.low %v624_v8, %v634_v22  ;;  %v643_v30 = vrot.slane %v641_v18, 5  ;;  %10854 = vmatpush3.bf16.msra.mxu1 %v12053_v1 }
  0x9c   : > { %v3979_v20 = vsel %vm12553_vm3, %v3974_v15, %v3978_v5  ;;  %v3984_v29 = vrot.slane %v3983_v16, 4  ;;  %v638_v32 = vor.u32 %v637_v23, %v633_v53  ;;  %v647_v33 = vrot.slane %v645_v21, 4 }
  0x9d   : > { %v653_v34 = vrot.slane %v651_v24, 5  ;;  %v3992_v35 = vrot.slane %v3990_v26, 4  ;;  %10817 = vmatprep.mubr.msk.bf16.mxu1 %vm1120_vm2, %v9331_v27  ;;  %v3996_v38 = vshll.u32 %v9709_v13, 16  ;;  %v4000_v39 = vshrl.u32 %v9709_v13, 16 }
  0x9e   : > { %v3989_v37 = vsel %vm12553_vm3, %v3984_v29, %v3988_v10  ;;  %v4006_v40 = vshll.u32 %v9710_v25, 16  ;;  %v639_v43 = vrot.slane %v638_v32, 4  ;;  %v648_v44 = vor.u32 %v647_v33, %v643_v30  ;;  %v292_v29 = vld [vmem:[%s12537_s9 + $0xb0] sm:$0x1] }
  0x9f   : > { %v9769_v42 = vcombine.low %v3979_v20, %v3989_v37  ;;  %v3993_v45 = vor.u32 %v3992_v35, %v3988_v10  ;;  %v3998_v46 = vrot.slane %v3996_v38, 5  ;;  %v4002_v47 = vrot.slane %v4000_v39, 4 }
  0xa0   : > { %v4008_v48 = vrot.slane %v4006_v40, 5  ;;  %v656_v50 = vshrl.u32 %v248_v31, 16  ;;  %v644_v52 = vsel %vm12553_vm3, %v639_v43, %v643_v30  ;;  %v649_v53 = vrot.slane %v648_v44, 4  ;;  %v9714_v43 = vld [vmem:[%s12537_s9 + $0xc0] sm:$0xf]  ;;  %v12054_v44 = vld [vmem:[%s15384_s1 + $0x8] sm:$0xff]  }
  0xa1   : > { %11089 = vmatprep.mubr.msk.bf16.mxu0 %vm1120_vm2, %v9769_v42  ;;  %v3994_v55 = vrot.slane %v3993_v45, 4  ;;  %v659_v56 = vshll.u32 %v248_v31, 16  ;;  %v4003_v61 = vor.u32 %v4002_v47, %v3998_v46  ;;  %v665_v63 = vshll.u32 %v249_v36, 16  ;;  %v12055_v45 = vld [vmem:[%s15384_s1 + $0x58] sm:$0xff]   ;;  %10855 = vmatprep.subr.bf16.mxu1 %v12054_v44 }
  0xa2   : > { %v658_v62 = vrot.slane %v656_v50, 4  ;;  %v669_v0 = vshrl.u32 %v249_v36, 16  ;;  %v654_v2 = vsel %vm12553_vm3, %v649_v53, %v653_v34  ;;  %v675_v5 = vshll.u32 %v12803_v41, 16  ;;  %v9715_v50 = vld [vmem:[%s12537_s9 + $0xc4] sm:$0x1]  ;;  %11127 = vmatprep.subr.bf16.mxu0 %v12055_v45  ;;  %10856 = vmatpush3.bf16.msra.mxu1 %v12054_v44 }
  0xa3   : > { %v3999_v3 = vsel %vm12553_vm3, %v3994_v55, %v3998_v46  ;;  %v661_v4 = vrot.slane %v659_v56, 5  ;;  %v9332_v7 = vcombine.low %v644_v52, %v654_v2  ;;  %v4004_v8 = vrot.slane %v4003_v61, 4  ;;  %11128 = vmatpush3.bf16.msra.mxu0 %v12055_v45 }
  0xa4   : > { %v667_v9 = vrot.slane %v665_v63, 5  ;;  %v671_v10 = vrot.slane %v669_v0, 4  ;;  %v677_v15 = vrot.slane %v675_v5, 5  ;;  %v4011_v16 = vshrl.u32 %v9711_v51, 16 }
  0xa5   : > { %v662_v13 = vor.u32 %v661_v4, %v658_v62  ;;  %v4014_v18 = vshll.u32 %v9711_v51, 16  ;;  %10818 = vmatmul.mubr.msk.bf16.gmra.mrb[28].mxu1 %vm1120_vm2, %v9332_v7  ;;  %v4009_v21 = vsel %vm12553_vm3, %v4004_v8, %v4008_v48  ;;  %v4020_v23 = vshll.u32 %v9712_v59, 16  ;;  %v252_v51 = vld [vmem:[%s12537_s9 + $0xb4] sm:$0xf] }
  0xa6   : > { %v672_v22 = vor.u32 %v671_v10, %v667_v9  ;;  %v4024_v24 = vshrl.u32 %v9712_v59, 16  ;;  %v9770_v25 = vcombine.low %v3999_v3, %v4009_v21  ;;  %v4013_v27 = vrot.slane %v4011_v16, 4  ;;  %v253_v59 = vld [vmem:[%s12537_s9 + $0xb8] sm:$0xf]  ;;  %v9716_v10 = vld [vmem:[%s12537_s9 + $0xc8] sm:$0xf] }
  0xa7   : > { %v663_v26 = vrot.slane %v662_v13, 4  ;;  %v4016_v20 = vrot.slane %v4014_v18, 5  ;;  %v4022_v31 = vrot.slane %v4020_v23, 5  ;;  %v4030_v33 = vshll.u32 %v9713_v6, 16 }
  0xa8   : > { %v673_v30 = vrot.slane %v672_v22, 4  ;;  %v4026_v32 = vrot.slane %v4024_v24, 4  ;;  %11090 = vmatmul.mubr.msk.bf16.gmra.mrb[28].mxu0 %vm1120_vm2, %v9770_v25  ;;  %v679_v36 = vshrl.u32 %v12803_v41, 16  ;;  %v685_v37 = vshll.u32 %v251_v12, 16 }
  0xa9   : > { %v668_v34 = vsel %vm12553_vm3, %v663_v26, %v667_v9  ;;  %v4017_v35 = vor.u32 %v4016_v20, %v4013_v27  ;;  %v4032_v40 = vrot.slane %v4030_v33, 5  ;;  %v689_v42 = vshrl.u32 %v251_v12, 16  ;;  %v254_v9 = vld [vmem:[%s12537_s9 + $0xbc] sm:$0xf]  ;;  %v9717_v20 = vld [vmem:[%s12537_s9 + $0xcc] sm:$0xf] }
  0xaa   : > { %v678_v38 = vsel %vm12553_vm3, %v673_v30, %v677_v15  ;;  %v4027_v39 = vor.u32 %v4026_v32, %v4022_v31  ;;  %v681_v41 = vrot.slane %v679_v36, 4  ;;  %v687_v48 = vrot.slane %v685_v37, 5  ;;  %v9718_v33 = vld [vmem:[%s12537_s9 + $0xd0] sm:$0xf] }
  0xab   : > { %v9333_v46 = vcombine.low %v668_v34, %v678_v38  ;;  %v4018_v47 = vrot.slane %v4017_v35, 4  ;;  %v691_v53 = vrot.slane %v689_v42, 4  ;;  %v695_v55 = vshll.u32 %v292_v29, 16  ;;  %v255_v34 = vld [vmem:[%s12537_s9 + $0xc0] sm:$0xf] }
  0xac   : > { %v4028_v52 = vrot.slane %v4027_v39, 4  ;;  %v4034_v56 = vshrl.u32 %v9713_v6, 16  ;;  %v682_v62 = vor.u32 %v681_v41, %v677_v15  ;;  %v4040_v63 = vshll.u32 %v9714_v43, 16  ;;  %v293_v41 = vld [vmem:[%s12537_s9 + $0xc4] sm:$0x1] }
  0xad   : > { %10821 = vmatprep.mubr.msk.bf16.mxu1 %vm1120_vm2, %v9333_v46  ;;  %v4023_v61 = vsel %vm12553_vm3, %v4018_v47, %v4022_v31  ;;  %v4044_v0 = vshrl.u32 %v9714_v43, 16  ;;  %v692_v2 = vor.u32 %v691_v53, %v687_v48  ;;  %v697_v3 = vrot.slane %v695_v55, 5  ;;  %v9719_v53 = vld [vmem:[%s12537_s9 + $0xd4] sm:$0xf] }
  0xae   : > { %v4033_v1 = vsel %vm12553_vm3, %v4028_v52, %v4032_v40  ;;  %v4036_v4 = vrot.slane %v4034_v56, 4  ;;  %v683_v6 = vrot.slane %v682_v62, 4  ;;  %v4042_v7 = vrot.slane %v4040_v63, 5 }
  0xaf   : > { %v9771_v5 = vcombine.low %v4023_v61, %v4033_v1  ;;  %v4046_v8 = vrot.slane %v4044_v0, 4  ;;  %v693_v12 = vrot.slane %v692_v2, 4  ;;  %v4050_v15 = vshll.u32 %v9715_v50, 16 }
  0xb0   : > { %v4037_v13 = vor.u32 %v4036_v4, %v4032_v40  ;;  %v700_v16 = vshrl.u32 %v252_v51, 16  ;;  %v688_v18 = vsel %vm12553_vm3, %v683_v6, %v687_v48  ;;  %v703_v22 = vshll.u32 %v252_v51, 16  ;;  %v9720_v6 = vld [vmem:[%s12537_s9 + $0xd8] sm:$0x1] }
  0xb1   : > { %11093 = vmatprep.mubr.msk.bf16.mxu0 %vm1120_vm2, %v9771_v5  ;;  %v4047_v21 = vor.u32 %v4046_v8, %v4042_v7  ;;  %v709_v23 = vshll.u32 %v253_v59, 16  ;;  %v698_v24 = vsel %vm12553_vm3, %v693_v12, %v697_v3  ;;  %v4052_v26 = vrot.slane %v4050_v15, 5 }
  0xb2   : > { %v4038_v25 = vrot.slane %v4037_v13, 4  ;;  %v702_v27 = vrot.slane %v700_v16, 4  ;;  %v9334_v29 = vcombine.low %v688_v18, %v698_v24  ;;  %v705_v31 = vrot.slane %v703_v22, 5  ;;  %v256_v13 = vld [vmem:[%s12537_s9 + $0xc8] sm:$0xf] }
  0xb3   : > { %v4048_v30 = vrot.slane %v4047_v21, 4  ;;  %v711_v32 = vrot.slane %v709_v23, 5  ;;  %v713_v36 = vshrl.u32 %v253_v59, 16  ;;  %v719_v37 = vshll.u32 %v254_v9, 16 }
  0xb4   : > { %v4043_v35 = vsel %vm12553_vm3, %v4038_v25, %v4042_v7  ;;  %v4055_v38 = vshrl.u32 %v9716_v10, 16  ;;  %10822 = vmatmul.mubr.msk.bf16.gmra.mrb[32].mxu1 %vm1120_vm2, %v9334_v29  ;;  %v706_v40 = vor.u32 %v705_v31, %v702_v27  ;;  %v4058_v42 = vshll.u32 %v9716_v10, 16  ;;  %v257_v25 = vld [vmem:[%s12537_s9 + $0xcc] sm:$0xf] }
  0xb5   : > { %v4053_v39 = vsel %vm12553_vm3, %v4048_v30, %v4052_v26  ;;  %v4064_v43 = vshll.u32 %v9717_v20, 16  ;;  %v715_v45 = vrot.slane %v713_v36, 4  ;;  %v721_v46 = vrot.slane %v719_v37, 5  ;;  %v258_v30 = vld [vmem:[%s12537_s9 + $0xd0] sm:$0xf] }
  0xb6   : > { %v9772_v44 = vcombine.low %v4043_v35, %v4053_v39  ;;  %v4057_v47 = vrot.slane %v4055_v38, 4  ;;  %v707_v48 = vrot.slane %v706_v40, 4  ;;  %v4060_v50 = vrot.slane %v4058_v42, 5  ;;  %v9721_v35 = vld [vmem:[%s12537_s9 + $0xdc] sm:$0xf] }
  0xb7   : > { %v4066_v51 = vrot.slane %v4064_v43, 5  ;;  %v4068_v52 = vshrl.u32 %v9717_v20, 16  ;;  %v716_v55 = vor.u32 %v715_v45, %v711_v32  ;;  %v4074_v56 = vshll.u32 %v9718_v33, 16  ;;  %v9722_v45 = vld [vmem:[%s12537_s9 + $0xe0] sm:$0xf] }
  0xb8   : > { %11094 = vmatmul.mubr.msk.bf16.gmra.mrb[32].mxu0 %vm1120_vm2, %v9772_v44  ;;  %v723_v59 = vshrl.u32 %v254_v9, 16  ;;  %v729_v61 = vshll.u32 %v255_v34, 16  ;;  %v712_v62 = vsel %vm12553_vm3, %v707_v48, %v711_v32  ;;  %v4061_v63 = vor.u32 %v4060_v50, %v4057_v47  ;;  %v9723_v50 = vld [vmem:[%s12537_s9 + $0xe4] sm:$0xf] }
  0xb9   : > { %v4070_v0 = vrot.slane %v4068_v52, 4  ;;  %v733_v1 = vshrl.u32 %v255_v34, 16  ;;  %v717_v2 = vrot.slane %v716_v55, 4  ;;  %v4076_v3 = vrot.slane %v4074_v56, 5 }
  0xba   : > { %v725_v4 = vrot.slane %v723_v59, 4  ;;  %v731_v5 = vrot.slane %v729_v61, 5  ;;  %v4062_v7 = vrot.slane %v4061_v63, 4  ;;  %v739_v12 = vshll.u32 %v293_v41, 16 }
  0xbb   : > { %v4071_v8 = vor.u32 %v4070_v0, %v4066_v51  ;;  %v735_v10 = vrot.slane %v733_v1, 4  ;;  %v722_v9 = vsel %vm12553_vm3, %v717_v2, %v721_v46  ;;  %v4078_v16 = vshrl.u32 %v9718_v33, 16 }
  0xbc   : > { %v726_v15 = vor.u32 %v725_v4, %v721_v46  ;;  %v4084_v18 = vshll.u32 %v9719_v53, 16  ;;  %v9335_v21 = vcombine.low %v712_v62, %v722_v9  ;;  %v4067_v22 = vsel %vm12553_vm3, %v4062_v7, %v4066_v51 }
  0xbd   : > { %v4072_v23 = vrot.slane %v4071_v8, 4  ;;  %v736_v24 = vor.u32 %v735_v10, %v731_v5  ;;  %v741_v27 = vrot.slane %v739_v12, 5  ;;  %v4080_v20 = vrot.slane %v4078_v16, 4  ;;  %v294_v8 = vld [vmem:[%s12537_s9 + $0xd8] sm:$0x1] }
  0xbe   : > { %v727_v26 = vrot.slane %v726_v15, 4  ;;  %v4086_v29 = vrot.slane %v4084_v18, 5  ;;  %10825 = vmatprep.mubr.msk.bf16.mxu1 %vm1120_vm2, %v9335_v21  ;;  %v4088_v33 = vshrl.u32 %v9719_v53, 16  ;;  %v4094_v34 = vshll.u32 %v9720_v6, 16 }
  0xbf   : > { %v4077_v31 = vsel %vm12553_vm3, %v4072_v23, %v4076_v3  ;;  %v737_v32 = vrot.slane %v736_v24, 4  ;;  %v4081_v38 = vor.u32 %v4080_v20, %v4076_v3  ;;  %v744_v39 = vshrl.u32 %v256_v13, 16  ;;  %v259_v3 = vld [vmem:[%s12537_s9 + $0xd4] sm:$0xf] }
  0xc0   : > { %v9773_v36 = vcombine.low %v4067_v22, %v4077_v31  ;;  %v732_v37 = vsel %vm12553_vm3, %v727_v26, %v731_v5  ;;  %v4090_v42 = vrot.slane %v4088_v33, 4  ;;  %v4096_v43 = vrot.slane %v4094_v34, 5  ;;  %v9724_v26 = vld [vmem:[%s12537_s9 + $0xe8] sm:$0xf] }
  0xc1   : > { %v742_v40 = vsel %vm12553_vm3, %v737_v32, %v741_v27  ;;  %v747_v44 = vshll.u32 %v256_v13, 16  ;;  %v4082_v47 = vrot.slane %v4081_v38, 4  ;;  %v746_v41 = vrot.slane %v744_v39, 4  ;;  %v9725_v32 = vld [vmem:[%s12537_s9 + $0xec] sm:$0x1] }
  0xc2   : > { %11097 = vmatprep.mubr.msk.bf16.mxu0 %vm1120_vm2, %v9773_v36  ;;  %v9336_v46 = vcombine.low %v732_v37, %v742_v40  ;;  %v753_v48 = vshll.u32 %v257_v25, 16  ;;  %v4091_v51 = vor.u32 %v4090_v42, %v4086_v29  ;;  %v757_v53 = vshrl.u32 %v257_v25, 16  ;;  %v260_v37 = vld [vmem:[%s12537_s9 + $0xdc] sm:$0xf] }
  0xc3   : > { %v749_v52 = vrot.slane %v747_v44, 5  ;;  %v763_v55 = vshll.u32 %v258_v30, 16  ;;  %v4087_v56 = vsel %vm12553_vm3, %v4082_v47, %v4086_v29  ;;  %v4099_v61 = vshrl.u32 %v9721_v35, 16 }
  0xc4   : > { %10826 = vmatmul.mubr.msk.bf16.gmra.mrb[36].mxu1 %vm1120_vm2, %v9336_v46  ;;  %v755_v59 = vrot.slane %v753_v48, 5  ;;  %v4102_v62 = vshll.u32 %v9721_v35, 16  ;;  %v4092_v63 = vrot.slane %v4091_v51, 4  ;;  %v759_v1 = vrot.slane %v757_v53, 4  ;;  %v261_v46 = vld [vmem:[%s12537_s9 + $0xe0] sm:$0xf] }
  0xc5   : > { %v750_v0 = vor.u32 %v749_v52, %v746_v41  ;;  %v765_v2 = vrot.slane %v763_v55, 5  ;;  %v4101_v4 = vrot.slane %v4099_v61, 4  ;;  %v4108_v6 = vshll.u32 %v9722_v45, 16  ;;  %v262_v51 = vld [vmem:[%s12537_s9 + $0xe4] sm:$0xf] }
  0xc6   : > { %v4104_v5 = vrot.slane %v4102_v62, 5  ;;  %v4112_v7 = vshrl.u32 %v9722_v45, 16  ;;  %v4097_v10 = vsel %vm12553_vm3, %v4092_v63, %v4096_v43  ;;  %v760_v13 = vor.u32 %v759_v1, %v755_v59 }
  0xc7   : > { %v751_v12 = vrot.slane %v750_v0, 4  ;;  %v4118_v9 = vshll.u32 %v9723_v50, 16  ;;  %v9774_v15 = vcombine.low %v4087_v56, %v4097_v10  ;;  %v4110_v18 = vrot.slane %v4108_v6, 5  ;;  %v9726_v0 = vld [vmem:[%s12537_s9 + $0xf0] sm:$0xf] }
  0xc8   : > { %v4105_v16 = vor.u32 %v4104_v5, %v4101_v4  ;;  %v4114_v21 = vrot.slane %v4112_v7, 4  ;;  %v761_v23 = vrot.slane %v760_v13, 4  ;;  %v767_v25 = vshrl.u32 %v258_v30, 16  ;;  %v9727_v10 = vld [vmem:[%s12537_s9 + $0xf4] sm:$0xf] }
  0xc9   : > { %v756_v22 = vsel %vm12553_vm3, %v751_v12, %v755_v59  ;;  %v4120_v24 = vrot.slane %v4118_v9, 5  ;;  %11098 = vmatmul.mubr.msk.bf16.gmra.mrb[36].mxu0 %vm1120_vm2, %v9774_v15  ;;  %v773_v29 = vshll.u32 %v259_v3, 16  ;;  %v777_v31 = vshrl.u32 %v259_v3, 16 }
  0xca   : > { %v4106_v27 = vrot.slane %v4105_v16, 4  ;;  %v4115_v20 = vor.u32 %v4114_v21, %v4110_v18  ;;  %v766_v33 = vsel %vm12553_vm3, %v761_v23, %v765_v2  ;;  %v769_v34 = vrot.slane %v767_v25, 4  ;;  %v9728_v16 = vld [vmem:[%s12537_s9 + $0xf8] sm:$0xf] }
  0xcb   : > { %v783_v35 = vshll.u32 %v294_v8, 16  ;;  %v4122_v36 = vshrl.u32 %v9723_v50, 16  ;;  %v9337_v38 = vcombine.low %v756_v22, %v766_v33  ;;  %v775_v40 = vrot.slane %v773_v29, 5 }
  0xcc   : > { %v4111_v30 = vsel %vm12553_vm3, %v4106_v27, %v4110_v18  ;;  %v4116_v39 = vrot.slane %v4115_v20, 4  ;;  %v770_v42 = vor.u32 %v769_v34, %v765_v2  ;;  %v779_v43 = vrot.slane %v777_v31, 4 }
  0xcd   : > { %v785_v44 = vrot.slane %v783_v35, 5  ;;  %v4124_v45 = vrot.slane %v4122_v36, 4  ;;  %10829 = vmatprep.mubr.msk.bf16.mxu1 %vm1120_vm2, %v9337_v38  ;;  %v4128_v41 = vshll.u32 %v9724_v26, 16  ;;  %v4132_v48 = vshrl.u32 %v9724_v26, 16  ;;  %v295_v38 = vld [vmem:[%s12537_s9 + $0xec] sm:$0x1] }
  0xce   : > { %v4121_v47 = vsel %vm12553_vm3, %v4116_v39, %v4120_v24  ;;  %v4138_v50 = vshll.u32 %v9725_v32, 16  ;;  %v771_v53 = vrot.slane %v770_v42, 4  ;;  %v780_v55 = vor.u32 %v779_v43, %v775_v40 }
  0xcf   : > { %v9775_v52 = vcombine.low %v4111_v30, %v4121_v47  ;;  %v4125_v56 = vor.u32 %v4124_v45, %v4120_v24  ;;  %v4130_v59 = vrot.slane %v4128_v41, 5  ;;  %v4134_v61 = vrot.slane %v4132_v48, 4  ;;  %v263_v24 = vld [vmem:[%s12537_s9 + $0xe8] sm:$0xf] }
  0xd0   : > { %v4140_v62 = vrot.slane %v4138_v50, 5  ;;  %v788_v63 = vshrl.u32 %v260_v37, 16  ;;  %v776_v1 = vsel %vm12553_vm3, %v771_v53, %v775_v40  ;;  %v781_v2 = vrot.slane %v780_v55, 4 }
  0xd1   : > { %11101 = vmatprep.mubr.msk.bf16.mxu0 %vm1120_vm2, %v9775_v52  ;;  %v4126_v3 = vrot.slane %v4125_v56, 4  ;;  %v791_v4 = vshll.u32 %v260_v37, 16  ;;  %v4135_v5 = vor.u32 %v4134_v61, %v4130_v59  ;;  %v797_v7 = vshll.u32 %v261_v46, 16  ;;  %v9729_v52 = vld [vmem:[%s12537_s9 + $0xfc] sm:$0xf] }
  0xd2   : > { %v790_v6 = vrot.slane %v788_v63, 4  ;;  %v801_v8 = vshrl.u32 %v261_v46, 16  ;;  %v786_v12 = vsel %vm12553_vm3, %v781_v2, %v785_v44  ;;  %v807_v15 = vshll.u32 %v262_v51, 16  ;;  %v9730_v61 = vld [vmem:[%s12537_s9 + $0x100] sm:$0x1] }
  0xd3   : > { %v4131_v13 = vsel %vm12553_vm3, %v4126_v3, %v4130_v59  ;;  %v793_v9 = vrot.slane %v791_v4, 5  ;;  %v9338_v18 = vcombine.low %v776_v1, %v786_v12  ;;  %v4136_v21 = vrot.slane %v4135_v5, 4  ;;  %v265_v2 = vld [vmem:[%s12537_s9 + $0xf4] sm:$0xf] }
  0xd4   : > { %v799_v22 = vrot.slane %v797_v7, 5  ;;  %v803_v23 = vrot.slane %v801_v8, 4  ;;  %v809_v26 = vrot.slane %v807_v15, 5  ;;  %v4143_v27 = vshrl.u32 %v9726_v0, 16 }
  0xd5   : > { %v794_v25 = vor.u32 %v793_v9, %v790_v6  ;;  %v4146_v20 = vshll.u32 %v9726_v0, 16  ;;  %10830 = vmatmul.mubr.msk.bf16.gmra.mrb[40].mxu1 %vm1120_vm2, %v9338_v18  ;;  %v4141_v29 = vsel %vm12553_vm3, %v4136_v21, %v4140_v62  ;;  %v4152_v32 = vshll.u32 %v9727_v10, 16  ;;  %v264_v62 = vld [vmem:[%s12537_s9 + $0xf0] sm:$0xf]  ;;  %v266_v18 = vld [vmem:[%s12537_s9 + $0xf8] sm:$0xf] }
  0xd6   : > { %v804_v31 = vor.u32 %v803_v23, %v799_v22  ;;  %v4156_v33 = vshrl.u32 %v9727_v10, 16  ;;  %v9776_v34 = vcombine.low %v4131_v13, %v4141_v29  ;;  %v4145_v36 = vrot.slane %v4143_v27, 4  ;;  %v9731_v21 = vld [vmem:[%s12537_s9 + $0x104] sm:$0xf] }
  0xd7   : > { %v795_v35 = vrot.slane %v794_v25, 4  ;;  %v4148_v37 = vrot.slane %v4146_v20, 5  ;;  %v4154_v39 = vrot.slane %v4152_v32, 5  ;;  %v4162_v42 = vshll.u32 %v9728_v16, 16 }
  0xd8   : > { %v805_v30 = vrot.slane %v804_v31, 4  ;;  %v4158_v40 = vrot.slane %v4156_v33, 4  ;;  %11102 = vmatmul.mubr.msk.bf16.gmra.mrb[40].mxu0 %vm1120_vm2, %v9776_v34  ;;  %v811_v45 = vshrl.u32 %v262_v51, 16  ;;  %v817_v46 = vshll.u32 %v263_v24, 16 }
  0xd9   : > { %v800_v43 = vsel %vm12553_vm3, %v795_v35, %v799_v22  ;;  %v4149_v44 = vor.u32 %v4148_v37, %v4145_v36  ;;  %v4164_v48 = vrot.slane %v4162_v42, 5  ;;  %v821_v50 = vshrl.u32 %v263_v24, 16  ;;  %v9732_v35 = vld [vmem:[%s12537_s9 + $0x108] sm:$0xf] }
  0xda   : > { %v810_v47 = vsel %vm12553_vm3, %v805_v30, %v809_v26  ;;  %v4159_v41 = vor.u32 %v4158_v40, %v4154_v39  ;;  %v813_v56 = vrot.slane %v811_v45, 4  ;;  %v819_v59 = vrot.slane %v817_v46, 5  ;;  %v267_v40 = vld [vmem:[%s12537_s9 + $0xfc] sm:$0xf] }
  0xdb   : > { %v9339_v53 = vcombine.low %v800_v43, %v810_v47  ;;  %v4150_v55 = vrot.slane %v4149_v44, 4  ;;  %v823_v0 = vrot.slane %v821_v50, 4  ;;  %v827_v1 = vshll.u32 %v295_v38, 16 }
  0xdc   : > { %v4160_v63 = vrot.slane %v4159_v41, 4  ;;  %v4166_v51 = vshrl.u32 %v9728_v16, 16  ;;  %v814_v4 = vor.u32 %v813_v56, %v809_v26  ;;  %v4172_v5 = vshll.u32 %v9729_v52, 16  ;;  %v296_v56 = vld [vmem:[%s12537_s9 + $0x100] sm:$0x1] }
  0xdd   : > { %10833 = vmatprep.mubr.msk.bf16.mxu1 %vm1120_vm2, %v9339_v53  ;;  %v4155_v3 = vsel %vm12553_vm3, %v4150_v55, %v4154_v39  ;;  %v4176_v6 = vshrl.u32 %v9729_v52, 16  ;;  %v824_v8 = vor.u32 %v823_v0, %v819_v59  ;;  %v829_v10 = vrot.slane %v827_v1, 5  ;;  %v9733_v39 = vld [vmem:[%s12537_s9 + $0x10c] sm:$0xf]  ;;  %v9734_v0 = vld [vmem:[%s12537_s9 + $0x110] sm:$0xf] }
  0xde   : > { %v4165_v7 = vsel %vm12553_vm3, %v4160_v63, %v4164_v48  ;;  %v4168_v12 = vrot.slane %v4166_v51, 4  ;;  %v815_v9 = vrot.slane %v814_v4, 4  ;;  %v4174_v15 = vrot.slane %v4172_v5, 5 }
  0xdf   : > { %v9777_v13 = vcombine.low %v4155_v3, %v4165_v7  ;;  %v4178_v16 = vrot.slane %v4176_v6, 4  ;;  %v825_v22 = vrot.slane %v824_v8, 4  ;;  %v4182_v24 = vshll.u32 %v9730_v61, 16 }
  0xe0   : > { %v4169_v23 = vor.u32 %v4168_v12, %v4164_v48  ;;  %v832_v25 = vshrl.u32 %v264_v62, 16  ;;  %v820_v26 = vsel %vm12553_vm3, %v815_v9, %v819_v59  ;;  %v835_v20 = vshll.u32 %v264_v62, 16  ;;  %v9735_v9 = vld [vmem:[%s12537_s9 + $0x114] sm:$0x1] }
  0xe1   : > { %11105 = vmatprep.mubr.msk.bf16.mxu0 %vm1120_vm2, %v9777_v13  ;;  %v4179_v27 = vor.u32 %v4178_v16, %v4174_v15  ;;  %v841_v29 = vshll.u32 %v265_v2, 16  ;;  %v830_v31 = vsel %vm12553_vm3, %v825_v22, %v829_v10  ;;  %v4184_v33 = vrot.slane %v4182_v24, 5 }
  0xe2   : > { %v4170_v32 = vrot.slane %v4169_v23, 4  ;;  %v834_v34 = vrot.slane %v832_v25, 4  ;;  %v9340_v36 = vcombine.low %v820_v26, %v830_v31  ;;  %v837_v38 = vrot.slane %v835_v20, 5  ;;  %v268_v23 = vld [vmem:[%s12537_s9 + $0x104] sm:$0xf] }
  0xe3   : > { %v4180_v37 = vrot.slane %v4179_v27, 4  ;;  %v843_v30 = vrot.slane %v841_v29, 5  ;;  %v845_v43 = vshrl.u32 %v265_v2, 16  ;;  %v851_v44 = vshll.u32 %v266_v18, 16 }
  0xe4   : > { %v4175_v42 = vsel %vm12553_vm3, %v4170_v32, %v4174_v15  ;;  %v4187_v45 = vshrl.u32 %v9731_v21, 16  ;;  %10834 = vmatmul.mubr.msk.bf16.gmra.mrb[44].mxu1 %vm1120_vm2, %v9340_v36  ;;  %v838_v47 = vor.u32 %v837_v38, %v834_v34  ;;  %v4190_v41 = vshll.u32 %v9731_v21, 16  ;;  %v269_v32 = vld [vmem:[%s12537_s9 + $0x108] sm:$0xf] }
  0xe5   : > { %v4185_v46 = vsel %vm12553_vm3, %v4180_v37, %v4184_v33  ;;  %v4196_v48 = vshll.u32 %v9732_v35, 16  ;;  %v847_v52 = vrot.slane %v845_v43, 4  ;;  %v853_v53 = vrot.slane %v851_v44, 5  ;;  %v270_v37 = vld [vmem:[%s12537_s9 + $0x10c] sm:$0xf] }
  0xe6   : > { %v9778_v50 = vcombine.low %v4175_v42, %v4185_v46  ;;  %v4189_v55 = vrot.slane %v4187_v45, 4  ;;  %v839_v59 = vrot.slane %v838_v47, 4  ;;  %v4192_v61 = vrot.slane %v4190_v41, 5  ;;  %v9736_v42 = vld [vmem:[%s12537_s9 + $0x118] sm:$0xf] }
  0xe7   : > { %v4198_v62 = vrot.slane %v4196_v48, 5  ;;  %v4200_v63 = vshrl.u32 %v9732_v35, 16  ;;  %v848_v1 = vor.u32 %v847_v52, %v843_v30  ;;  %v4206_v51 = vshll.u32 %v9733_v39, 16  ;;  %v9737_v52 = vld [vmem:[%s12537_s9 + $0x11c] sm:$0xf] }
  0xe8   : > { %11106 = vmatmul.mubr.msk.bf16.gmra.mrb[44].mxu0 %vm1120_vm2, %v9778_v50  ;;  %v855_v2 = vshrl.u32 %v266_v18, 16  ;;  %v861_v3 = vshll.u32 %v267_v40, 16  ;;  %v844_v4 = vsel %vm12553_vm3, %v839_v59, %v843_v30  ;;  %v4193_v5 = vor.u32 %v4192_v61, %v4189_v55  ;;  %v9738_v61 = vld [vmem:[%s12537_s9 + $0x120] sm:$0xf] }
  0xe9   : > { %v4202_v6 = vrot.slane %v4200_v63, 4  ;;  %v865_v7 = vshrl.u32 %v267_v40, 16  ;;  %v849_v8 = vrot.slane %v848_v1, 4  ;;  %v4208_v10 = vrot.slane %v4206_v51, 5 }
  0xea   : > { %v857_v12 = vrot.slane %v855_v2, 4  ;;  %v863_v13 = vrot.slane %v861_v3, 5  ;;  %v4194_v15 = vrot.slane %v4193_v5, 4  ;;  %v871_v22 = vshll.u32 %v296_v56, 16 }
  0xeb   : > { %v4203_v16 = vor.u32 %v4202_v6, %v4198_v62  ;;  %v867_v21 = vrot.slane %v865_v7, 4  ;;  %v854_v18 = vsel %vm12553_vm3, %v849_v8, %v853_v53  ;;  %v4210_v25 = vshrl.u32 %v9733_v39, 16 }
  0xec   : > { %v858_v24 = vor.u32 %v857_v12, %v853_v53  ;;  %v4216_v26 = vshll.u32 %v9734_v0, 16  ;;  %v9341_v27 = vcombine.low %v844_v4, %v854_v18  ;;  %v4199_v20 = vsel %vm12553_vm3, %v4194_v15, %v4198_v62 }
  0xed   : > { %v4204_v29 = vrot.slane %v4203_v16, 4  ;;  %v868_v31 = vor.u32 %v867_v21, %v863_v13  ;;  %v873_v34 = vrot.slane %v871_v22, 5  ;;  %v4212_v35 = vrot.slane %v4210_v25, 4  ;;  %v297_v16 = vld [vmem:[%s12537_s9 + $0x114] sm:$0x1] }
  0xee   : > { %v859_v33 = vrot.slane %v858_v24, 4  ;;  %v4218_v36 = vrot.slane %v4216_v26, 5  ;;  %10837 = vmatprep.mubr.msk.bf16.mxu1 %vm1120_vm2, %v9341_v27  ;;  %v4220_v39 = vshrl.u32 %v9734_v0, 16  ;;  %v4226_v40 = vshll.u32 %v9735_v9, 16 }
  0xef   : > { %v4209_v38 = vsel %vm12553_vm3, %v4204_v29, %v4208_v10  ;;  %v869_v30 = vrot.slane %v868_v31, 4  ;;  %v4213_v45 = vor.u32 %v4212_v35, %v4208_v10  ;;  %v876_v46 = vshrl.u32 %v268_v23, 16  ;;  %v271_v10 = vld [vmem:[%s12537_s9 + $0x110] sm:$0xf] }
  0xf0   : > { %v9779_v43 = vcombine.low %v4199_v20, %v4209_v38  ;;  %v864_v44 = vsel %vm12553_vm3, %v859_v33, %v863_v13  ;;  %v4222_v41 = vrot.slane %v4220_v39, 4  ;;  %v4228_v48 = vrot.slane %v4226_v40, 5  ;;  %v12984_v33 = vld [vmem:[%s12537_s9 + $0x124] sm:$0xf] }
  0xf1   : > { %v874_v47 = vsel %vm12553_vm3, %v869_v30, %v873_v34  ;;  %v879_v50 = vshll.u32 %v268_v23, 16  ;;  %v4214_v55 = vrot.slane %v4213_v45, 4  ;;  %v878_v56 = vrot.slane %v876_v46, 4  ;;  %v9740_v30 = vld [vmem:[%s12537_s9 + $0x128] sm:$0x1] }
  0xf2   : > { %11109 = vmatprep.mubr.msk.bf16.mxu0 %vm1120_vm2, %v9779_v43  ;;  %v9342_v53 = vcombine.low %v864_v44, %v874_v47  ;;  %v885_v59 = vshll.u32 %v269_v32, 16  ;;  %v4223_v62 = vor.u32 %v4222_v41, %v4218_v36  ;;  %v889_v0 = vshrl.u32 %v269_v32, 16  ;;  %v272_v44 = vld [vmem:[%s12537_s9 + $0x118] sm:$0xf] }
  0xf3   : > { %v881_v63 = vrot.slane %v879_v50, 5  ;;  %v895_v1 = vshll.u32 %v270_v37, 16  ;;  %v4219_v51 = vsel %vm12553_vm3, %v4214_v55, %v4218_v36  ;;  %v4231_v3 = vshrl.u32 %v9736_v42, 16 }
  0xf4   : > { %10838 = vmatmul.mubr.msk.bf16.gmra.mrb[48].mxu1 %vm1120_vm2, %v9342_v53  ;;  %v887_v2 = vrot.slane %v885_v59, 5  ;;  %v4234_v4 = vshll.u32 %v9736_v42, 16  ;;  %v4224_v5 = vrot.slane %v4223_v62, 4  ;;  %v891_v7 = vrot.slane %v889_v0, 4  ;;  %v12994_v53 = vld [vmem:[%s12537_s9 + $0x11c] sm:$0xf] }
  0xf5   : > { %v882_v6 = vor.u32 %v881_v63, %v878_v56  ;;  %v897_v8 = vrot.slane %v895_v1, 5  ;;  %v4233_v12 = vrot.slane %v4231_v3, 4  ;;  %v4240_v9 = vshll.u32 %v9737_v52, 16  ;;  %v274_v62 = vld [vmem:[%s12537_s9 + $0x120] sm:$0xf] }
  0xf6   : > { %v4236_v13 = vrot.slane %v4234_v4, 5  ;;  %v4244_v15 = vshrl.u32 %v9737_v52, 16  ;;  %v4229_v21 = vsel %vm12553_vm3, %v4224_v5, %v4228_v48  ;;  %v892_v23 = vor.u32 %v891_v7, %v887_v2 }
  0xf7   : > { %v883_v22 = vrot.slane %v882_v6, 4  ;;  %v4250_v18 = vshll.u32 %v9738_v61, 16  ;;  %v9780_v24 = vcombine.low %v4219_v51, %v4229_v21  ;;  %v4242_v26 = vrot.slane %v4240_v9, 5  ;;  %v9741_v6 = vld [vmem:[%s12537_s9 + $0x12c] sm:$0xf] }
  0xf8   : > { %v4237_v25 = vor.u32 %v4236_v13, %v4233_v12  ;;  %v4246_v27 = vrot.slane %v4244_v15, 4  ;;  %v893_v29 = vrot.slane %v892_v23, 4  ;;  %v899_v32 = vshrl.u32 %v270_v37, 16  ;;  %v13009_v21 = vld [vmem:[%s12537_s9 + $0x130] sm:$0xf] }
  0xf9   : > { %v888_v20 = vsel %vm12553_vm3, %v883_v22, %v887_v2  ;;  %v4252_v31 = vrot.slane %v4250_v18, 5  ;;  %11110 = vmatmul.mubr.msk.bf16.gmra.mrb[48].mxu0 %vm1120_vm2, %v9780_v24  ;;  %v905_v36 = vshll.u32 %v271_v10, 16  ;;  %v909_v38 = vshrl.u32 %v271_v10, 16 }
  0xfa   : > { %v4238_v34 = vrot.slane %v4237_v25, 4  ;;  %v4247_v35 = vor.u32 %v4246_v27, %v4242_v26  ;;  %v898_v39 = vsel %vm12553_vm3, %v893_v29, %v897_v8  ;;  %v901_v40 = vrot.slane %v899_v32, 4  ;;  %v13016_v25 = vld [vmem:[%s12537_s9 + $0x134] sm:$0xf] }
  0xfb   : > { %v915_v42 = vshll.u32 %v297_v16, 16  ;;  %v4254_v43 = vshrl.u32 %v9738_v61, 16  ;;  %v9343_v45 = vcombine.low %v888_v20, %v898_v39  ;;  %v907_v47 = vrot.slane %v905_v36, 5 }
  0xfc   : > { %v4243_v37 = vsel %vm12553_vm3, %v4238_v34, %v4242_v26  ;;  %v4248_v46 = vrot.slane %v4247_v35, 4  ;;  %v902_v41 = vor.u32 %v901_v40, %v897_v8  ;;  %v911_v48 = vrot.slane %v909_v38, 4 }
  0xfd   : > { %v917_v50 = vrot.slane %v915_v42, 5  ;;  %v4256_v52 = vrot.slane %v4254_v43, 4  ;;  %10841 = vmatprep.mubr.msk.bf16.mxu1 %vm1120_vm2, %v9343_v45  ;;  %v4260_v56 = vshll.u32 %v12984_v33, 16  ;;  %v4264_v59 = vshrl.u32 %v12984_v33, 16 }
  0xfe   : > { %v4253_v55 = vsel %vm12553_vm3, %v4248_v46, %v4252_v31  ;;  %v4270_v61 = vshll.u32 %v9740_v30, 16  ;;  %v903_v0 = vrot.slane %v902_v41, 4  ;;  %v912_v1 = vor.u32 %v911_v48, %v907_v47 }
  0xff   : > { %v9781_v63 = vcombine.low %v4243_v37, %v4253_v55  ;;  %v4257_v51 = vor.u32 %v4256_v52, %v4252_v31  ;;  %v4262_v2 = vrot.slane %v4260_v56, 5  ;;  %v4266_v3 = vrot.slane %v4264_v59, 4  ;;  %v13019_v31 = vld [vmem:[%s12537_s9 + $0x124] sm:$0xf]  ;;  %v298_v37 = vld [vmem:[%s12537_s9 + $0x128] sm:$0x1] }
 0x100   : > { %v4272_v4 = vrot.slane %v4270_v61, 5  ;;  %v920_v5 = vshrl.u32 %v272_v44, 16  ;;  %v908_v7 = vsel %vm12553_vm3, %v903_v0, %v907_v47  ;;  %v913_v8 = vrot.slane %v912_v1, 4  ;;  %v13036_v1 = vld [vmem:[%s12537_s9 + $0x138] sm:$0xf] }
 0x101   : > { %11113 = vmatprep.mubr.msk.bf16.mxu0 %vm1120_vm2, %v9781_v63  ;;  %v4258_v10 = vrot.slane %v4257_v51, 4  ;;  %v923_v12 = vshll.u32 %v272_v44, 16  ;;  %v4267_v13 = vor.u32 %v4266_v3, %v4262_v2  ;;  %v929_v15 = vshll.u32 %v12994_v53, 16 }
 0x102   : > { %v922_v9 = vrot.slane %v920_v5, 4  ;;  %v933_v16 = vshrl.u32 %v12994_v53, 16  ;;  %v918_v22 = vsel %vm12553_vm3, %v913_v8, %v917_v50  ;;  %v939_v24 = vshll.u32 %v274_v62, 16  ;;  %v13039_v5 = vld [vmem:[%s12537_s9 + $0x13c] sm:$0x1] }
 0x103   : > { %v4263_v23 = vsel %vm12553_vm3, %v4258_v10, %v4262_v2  ;;  %v925_v18 = vrot.slane %v923_v12, 5  ;;  %v9344_v26 = vcombine.low %v908_v7, %v918_v22  ;;  %v4268_v27 = vrot.slane %v4267_v13, 4 }
 0x104   : > { %v931_v20 = vrot.slane %v929_v15, 5  ;;  %v935_v29 = vrot.slane %v933_v16, 4  ;;  %v941_v34 = vrot.slane %v939_v24, 5  ;;  %v4275_v35 = vshrl.u32 %v9741_v6, 16  ;;  %v13053_v24 = vld [vmem:[%s12537_s9 + $0x130] sm:$0xf] }
 0x105   : > { %v926_v32 = vor.u32 %v925_v18, %v922_v9  ;;  %v4278_v36 = vshll.u32 %v9741_v6, 16  ;;  %10842 = vmatmul.mubr.msk.bf16.gmra.mrb[52].mxu1 %vm1120_vm2, %v9344_v26  ;;  %v4273_v38 = vsel %vm12553_vm3, %v4268_v27, %v4272_v4  ;;  %v4284_v39 = vshll.u32 %v13009_v21, 16  ;;  %v13042_v6 = vld [vmem:[%s12537_s9 + $0x12c] sm:$0xf] }
 0x106   : > { %v936_v30 = vor.u32 %v935_v29, %v931_v20  ;;  %v4288_v40 = vshrl.u32 %v13009_v21, 16  ;;  %v9782_v42 = vcombine.low %v4263_v23, %v4273_v38  ;;  %v4277_v44 = vrot.slane %v4275_v35, 4 }
 0x107   : > { %v927_v43 = vrot.slane %v926_v32, 4  ;;  %v4280_v45 = vrot.slane %v4278_v36, 5  ;;  %v4286_v47 = vrot.slane %v4284_v39, 5  ;;  %v4294_v48 = vshll.u32 %v13016_v25, 16  ;;  %v13061_v39 = vld [vmem:[%s12537_s9 + $0x134] sm:$0xf] }
 0x108   : > { %v937_v46 = vrot.slane %v936_v30, 4  ;;  %v4290_v41 = vrot.slane %v4288_v40, 4  ;;  %11114 = vmatmul.mubr.msk.bf16.gmra.mrb[52].mxu0 %vm1120_vm2, %v9782_v42  ;;  %v943_v55 = vshrl.u32 %v274_v62, 16  ;;  %v949_v56 = vshll.u32 %v13019_v31, 16 }
 0x109   : > { %v932_v50 = vsel %vm12553_vm3, %v927_v43, %v931_v20  ;;  %v4281_v52 = vor.u32 %v4280_v45, %v4277_v44  ;;  %v4296_v63 = vrot.slane %v4294_v48, 5  ;;  %v953_v0 = vshrl.u32 %v13019_v31, 16  ;;  %v9746_v43 = vld [vmem:[%s12537_s9 + $0x140] sm:$0xf] }
 0x10a   : > { %v942_v59 = vsel %vm12553_vm3, %v937_v46, %v941_v34  ;;  %v4291_v61 = vor.u32 %v4290_v41, %v4286_v47  ;;  %v945_v3 = vrot.slane %v943_v55, 4  ;;  %v951_v4 = vrot.slane %v949_v56, 5  ;;  %v13074_v41 = vld [vmem:[%s15384_s1 + $0x60] sm:$0xff]  }
 0x10b   : > { %v9345_v51 = vcombine.low %v932_v50, %v942_v59  ;;  %v4282_v2 = vrot.slane %v4281_v52, 4  ;;  %v955_v7 = vrot.slane %v953_v0, 4  ;;  %v959_v8 = vshll.u32 %v298_v37, 16  ;;  %11193 = vmatprep.subr.bf16.mxu0 %v13074_v41 }
 0x10c   : > { %v4292_v62 = vrot.slane %v4291_v61, 4  ;;  %v4298_v10 = vshrl.u32 %v13016_v25, 16  ;;  %v946_v13 = vor.u32 %v945_v3, %v941_v34  ;;  %v4304_v9 = vshll.u32 %v13036_v1, 16 }
 0x10d   : > { %10845 = vmatprep.mubr.msk.bf16.mxu1 %vm1120_vm2, %v9345_v51  ;;  %v4287_v12 = vsel %vm12553_vm3, %v4282_v2, %v4286_v47  ;;  %v4308_v15 = vshrl.u32 %v13036_v1, 16  ;;  %v956_v22 = vor.u32 %v955_v7, %v951_v4  ;;  %v961_v23 = vrot.slane %v959_v8, 5  ;;  %v13069_v47 = vld [vmem:[%s12537_s9 + $0x144] sm:$0xf]  ;;  %v13085_v2 = vld [vmem:[%s12537_s9 + $0x148] sm:$0xf] }
 0x10e   : > { %v4297_v16 = vsel %vm12553_vm3, %v4292_v62, %v4296_v63  ;;  %v4300_v18 = vrot.slane %v4298_v10, 4  ;;  %v947_v27 = vrot.slane %v946_v13, 4  ;;  %v4306_v20 = vrot.slane %v4304_v9, 5  ;;  %v13089_v62 = vld [vmem:[%s12537_s9 + $0x138] sm:$0xf] }
 0x10f   : > { %v9783_v26 = vcombine.low %v4287_v12, %v4297_v16  ;;  %v4310_v29 = vrot.slane %v4308_v15, 4  ;;  %v957_v32 = vrot.slane %v956_v22, 4  ;;  %v4314_v35 = vshll.u32 %v13039_v5, 16 }
 0x110   : > { %v4301_v34 = vor.u32 %v4300_v18, %v4296_v63  ;;  %v964_v36 = vshrl.u32 %v13042_v6, 16  ;;  %v952_v38 = vsel %vm12553_vm3, %v947_v27, %v951_v4  ;;  %v967_v40 = vshll.u32 %v13042_v6, 16  ;;  %v299_v18 = vld [vmem:[%s12537_s9 + $0x13c] sm:$0x1] }
 0x111   : > { %11117 = vmatprep.mubr.msk.bf16.mxu0 %vm1120_vm2, %v9783_v26  ;;  %v4311_v30 = vor.u32 %v4310_v29, %v4306_v20  ;;  %v973_v42 = vshll.u32 %v13053_v24, 16  ;;  %v962_v44 = vsel %vm12553_vm3, %v957_v32, %v961_v23  ;;  %v4316_v37 = vrot.slane %v4314_v35, 5  ;;  %v13101_v35 = vld [vmem:[%s12537_s9 + $0x14c] sm:$0xf] }
 0x112   : > { %v4302_v45 = vrot.slane %v4301_v34, 4  ;;  %v966_v46 = vrot.slane %v964_v36, 4  ;;  %v9346_v48 = vcombine.low %v952_v38, %v962_v44  ;;  %v969_v52 = vrot.slane %v967_v40, 5 }
 0x113   : > { %v4312_v50 = vrot.slane %v4311_v30, 4  ;;  %v975_v55 = vrot.slane %v973_v42, 5  ;;  %v977_v59 = vshrl.u32 %v13053_v24, 16  ;;  %v983_v61 = vshll.u32 %v13061_v39, 16 }
 0x114   : > { %v4307_v56 = vsel %vm12553_vm3, %v4302_v45, %v4306_v20  ;;  %v4319_v63 = vshrl.u32 %v9746_v43, 16  ;;  %10846 = vmatmul.mubr.msk.bf16.gmra.mrb[56].mxu1 %vm1120_vm2, %v9346_v48  ;;  %v970_v51 = vor.u32 %v969_v52, %v966_v46  ;;  %v4322_v3 = vshll.u32 %v9746_v43, 16  ;;  %v13106_v48 = vld [vmem:[%s12537_s9 + $0x150] sm:$0x1] }
 0x115   : > { %v4317_v0 = vsel %vm12553_vm3, %v4312_v50, %v4316_v37  ;;  %v4328_v4 = vshll.u32 %v13069_v47, 16  ;;  %v979_v8 = vrot.slane %v977_v59, 4  ;;  %v985_v10 = vrot.slane %v983_v61, 5 }
 0x116   : > { %v9784_v7 = vcombine.low %v4307_v56, %v4317_v0  ;;  %v4321_v12 = vrot.slane %v4319_v63, 4  ;;  %v971_v13 = vrot.slane %v970_v51, 4  ;;  %v4324_v9 = vrot.slane %v4322_v3, 5 }
 0x117   : > { %v4330_v15 = vrot.slane %v4328_v4, 5  ;;  %v4332_v16 = vshrl.u32 %v13069_v47, 16  ;;  %v980_v22 = vor.u32 %v979_v8, %v975_v55  ;;  %v4338_v23 = vshll.u32 %v13085_v2, 16 }
 0x118   : > { %11118 = vmatmul.mubr.msk.bf16.gmra.mrb[56].mxu0 %vm1120_vm2, %v9784_v7  ;;  %v987_v26 = vshrl.u32 %v13061_v39, 16  ;;  %v993_v27 = vshll.u32 %v13089_v62, 16  ;;  %v976_v20 = vsel %vm12553_vm3, %v971_v13, %v975_v55  ;;  %v4325_v29 = vor.u32 %v4324_v9, %v4321_v12  ;;  %v9821_v12 = vld [vmem:[%s12537_s9 + $0x14] sm:$0xe] }
 0x119   : > { %v4334_v32 = vrot.slane %v4332_v16, 4  ;;  %v997_v34 = vshrl.u32 %v13089_v62, 16  ;;  %v981_v36 = vrot.slane %v980_v22, 4  ;;  %v4340_v38 = vrot.slane %v4338_v23, 5 }
 0x11a   : > { %v989_v30 = vrot.slane %v987_v26, 4  ;;  %v995_v40 = vrot.slane %v993_v27, 5  ;;  %v4326_v42 = vrot.slane %v4325_v29, 4  ;;  %v1003_v45 = vshll.u32 %v299_v18, 16  ;;  %v12161_v18 = vld [vmem:[%s12537_s9] sm:$0xf] }
 0x11b   : > { %v4335_v43 = vor.u32 %v4334_v32, %v4330_v15  ;;  %v999_v44 = vrot.slane %v997_v34, 4  ;;  %v986_v37 = vsel %vm12553_vm3, %v981_v36, %v985_v10  ;;  %v4342_v50 = vshrl.u32 %v13085_v2, 16  ;;  %v13126_v26 = vld [vmem:[%s12537_s9 + $0x4] sm:$0xf] }
 0x11c   : > { %v990_v46 = vor.u32 %v989_v30, %v985_v10  ;;  %v4348_v52 = vshll.u32 %v13101_v35, 16  ;;  %v9347_v55 = vcombine.low %v976_v20, %v986_v37  ;;  %v4331_v56 = vsel %vm12553_vm3, %v4326_v42, %v4330_v15 }
 0x11d   : > { %v4336_v59 = vrot.slane %v4335_v43, 4  ;;  %v1000_v61 = vor.u32 %v999_v44, %v995_v40  ;;  %v1005_v0 = vrot.slane %v1003_v45, 5  ;;  %v4344_v51 = vrot.slane %v4342_v50, 4  ;;  %v12088_v45 = vld [vmem:[%s15384_s1 + $0x20] sm:$0xff]  }
 0x11e   : > { %v991_v63 = vrot.slane %v990_v46, 4  ;;  %v4350_v3 = vrot.slane %v4348_v52, 5  ;;  %10849 = vmatprep.mubr.msk.bf16.mxu1 %vm1120_vm2, %v9347_v55  ;;  %v4352_v8 = vshrl.u32 %v13101_v35, 16  ;;  %v4358_v10 = vshll.u32 %v13106_v48, 16  ;;  %10921 = vmatprep.subr.bf16.mxu1 %v12088_v45  ;;  %v13166_v46 = vld [vmem:[%s12537_s9 + $0xc] sm:$0xf] }
 0x11f   : > { %v4341_v4 = vsel %vm12553_vm3, %v4336_v59, %v4340_v38  ;;  %v1001_v7 = vrot.slane %v1000_v61, 4  ;;  %v5030_v13 = vrot.slane %v5028_v11, 4  ;;  %v4345_v16 = vor.u32 %v4344_v51, %v4340_v38  ;;  %v12167_v61 = vld [vmem:[%s12537_s9 + $0x14] sm:$0xf]  ;;  %v12089_v51 = vld [vmem:[%s15384_s1 + $0x28] sm:$0xff]  }
 0x120   : > { %v9785_v9 = vcombine.low %v4331_v56, %v4341_v4  ;;  %v996_v15 = vsel %vm12553_vm3, %v991_v63, %v995_v40  ;;  %v4354_v23 = vrot.slane %v4352_v8, 4  ;;  %v9383_v27 = vcombine.low %v12161_v18, %v13126_v26  ;;  %v12166_v56 = vld [vmem:[%s12537_s9 + $0x30] sm:$0xf]  ;;  %v13175_v63 = vld [vmem:[%s12537_s9 + $0x18] sm:$0xf] }
 0x121   : > { %v1006_v22 = vsel %vm12553_vm3, %v1001_v7, %v1005_v0  ;;  %v4346_v29 = vrot.slane %v4345_v16, 4  ;;  %v9837_v32 = vrot.slane %v9821_v12, 9  ;;  %v4360_v36 = vrot.slane %v4358_v10, 5  ;;  %v12170_v10 = vld [vmem:[%s12537_s9 + $0x40] sm:$0xf] }
 0x122   : > { %11121 = vmatprep.mubr.msk.bf16.mxu0 %vm1120_vm2, %v9785_v9  ;;  %v9348_v20 = vcombine.low %v996_v15, %v1006_v22  ;;  %v4355_v34 = vor.u32 %v4354_v23, %v4350_v3  ;;  %v5024_v30 = vrot.slane %v5022_v57, 4  ;;  %v5029_v43 = vsel %vm13130_vm6, %v12580_v60, %v5028_v11  ;;  %v12171_v22 = vld [vmem:[%s12537_s9 + $0x38] sm:$0x1]  ;;  %v13194_v18 = vld [vmem:[%s12537_s9 + $0x1c] sm:$0xf] }
 0x123   : > { %v4351_v40 = vsel %vm12553_vm3, %v4346_v29, %v4350_v3  ;;  %v5023_v42 = vsel %vm13130_vm6, %v9837_v32, %v5022_v57  ;;  %v5032_v44 = vsel %vm13130_vm6, %v5030_v13, %v5031_v17  ;;  %v9822_v57 = vld [vmem:[%s12537_s9 + $0x28] sm:$0xe]  ;;  %v5035_v60 = vrot.slane %v12163_v58, 5  ;;  %v12169_v3 = vld [vmem:[%s12537_s9 + $0x34] sm:$0xf] }
 0x124   : > { %10850 = vmatmul.mubr.msk.bf16.gmra.mrb[60].mxu1 %vm1120_vm2, %v9348_v20  ;;  %v4356_v37 = vrot.slane %v4355_v34, 4  ;;  %v5026_v14 = vsel %vm13130_vm6, %v5024_v30, %v5025_v49  ;;  %v9858_v54 = vcombine.low %v5029_v43, %v5032_v44  ;;  %v13163_v17 = vld [vmem:[%s12537_s9 + $0x8] sm:$0xf]  ;;  %v9838_v52 = vrot.slane %v9822_v57, 9  ;;  %v9823_v13 = vld [vmem:[%s12537_s9 + $0x3c] sm:$0xe] }
 0x125   : > { %10857 = vmatprep.mubr.msk.bf16.mxu1 %vm1120_vm2, %v9383_v27  ;;  %v9857_v11 = vcombine.low %v5023_v42, %v5026_v14  ;;  %v9384_v50 = vcombine.low %v13163_v17, %v13166_v46  ;;  %v5037_v55 = vrot.slane %v5035_v60, 4  ;;  %v5038_v59 = vrot.slane %v12166_v56, 5  ;;  %v13197_v27 = vld [vmem:[%s12537_s9 + $0x20] sm:$0xf]  ;;  %v12174_v34 = vld [vmem:[%s12537_s9 + $0x44] sm:$0xf] }
 0x126   : > { %v4361_v19 = vsel %vm12553_vm3, %v4356_v37, %v4360_v36  ;;  %v9385_v0 = vcombine.low %v12167_v61, %v13175_v63  ;;  %v5041_v4 = vrot.slane %v12169_v3, 5  ;;  %v5036_v7 = vsel %vm13130_vm6, %v9838_v52, %v5035_v60  ;;  %v12090_v30 = vld [vmem:[%s15384_s1 + $0x68] sm:$0xff]   ;;  %v12178_v58 = vld [vmem:[%s12537_s9 + $0x54] sm:$0xf]  ;;  %v13228_v56 = vld [vmem:[%s12537_s9 + $0x30] sm:$0xf] }
 0x127   : > { %v9786_v49 = vcombine.low %v4351_v40, %v4361_v19  ;;  %v5039_v8 = vsel %vm13130_vm6, %v5037_v55, %v5038_v59  ;;  %v5048_v12 = vrot.slane %v12170_v10, 5  ;;  %v5040_v15 = vrot.slane %v5038_v59, 4  ;;  %v12175_v40 = vld [vmem:[%s12537_s9 + $0x28] sm:$0xf]  ;;  %v13207_v42 = vld [vmem:[%s12537_s9 + $0x2c] sm:$0xf] }
 0x128   : > { %v9859_v9 = vcombine.low %v5036_v7, %v5039_v8  ;;  %v5043_v16 = vrot.slane %v5041_v4, 4  ;;  %v5044_v23 = vrot.slane %v12171_v22, 5  ;;  %v9386_v20 = vcombine.low %v13194_v18, %v13197_v27  ;;  %v12177_v37 = vld [vmem:[%s12537_s9 + $0x48] sm:$0xf]  ;;  %v12179_v52 = vld [vmem:[%s12537_s9 + $0x4c] sm:$0x1] }
 0x129   : > { %11122 = vmatmul.mubr.msk.bf16.gmra.mrb[60].mxu0 %vm1120_vm2, %v9786_v49  ;;  %v9839_v29 = vrot.slane %v9823_v13, 9  ;;  %v5050_v32 = vrot.slane %v5048_v12, 4  ;;  %v5051_v36 = vrot.slane %v12174_v34, 5  ;;  %v9387_v43 = vcombine.low %v12175_v40, %v13207_v42  ;;  %v13231_v59 = vld [vmem:[%s12537_s9 + $0x34] sm:$0xf] }
 0x12a   : > { %11129 = vmatprep.mubr.msk.bf16.mxu0 %vm1120_vm2, %v9857_v11  ;;  %v5042_v44 = vsel %vm13130_vm6, %v5040_v15, %v5041_v4  ;;  %v5054_v14 = vrot.slane %v12177_v37, 5  ;;  %v5061_v60 = vrot.slane %v12178_v58, 5  ;;  %v9824_v11 = vld [vmem:[%s12537_s9 + $0x50] sm:$0xe]  ;;  %v5057_v55 = vrot.slane %v12179_v52, 5 }
 0x12b   : > { %v5052_v57 = vsel %vm13130_vm6, %v5050_v32, %v5051_v36  ;;  %v5053_v19 = vrot.slane %v5051_v36, 4  ;;  %v9388_v61 = vcombine.low %v13228_v56, %v13231_v59  ;;  %v12182_v3 = vld [vmem:[%s12537_s9 + $0x58] sm:$0xf]  ;;  %v12183_v7 = vld [vmem:[%s12537_s9 + $0x3c] sm:$0xf] }
 0x12c   : > { %10858 = vmatmul.mubr.msk.bf16.vlgmr.msra.gmra.mrb[0].mxu1 %vm1120_vm2, %v9384_v50  ;;  %v5056_v49 = vrot.slane %v5054_v14, 4  ;;  %v5064_v4 = vrot.slane %v12182_v3, 5  ;;  %v13238_v8 = vld [vmem:[%s12537_s9 + $0x40] sm:$0xf]  ;;  %v9826_v3 = vld [vmem:[%s12537_s9 + $0x78] sm:$0xe] }
 0x12d   : > { %10861 = vmatprep.mubr.msk.bf16.mxu1 %vm1120_vm2, %v9385_v0  ;;  %10922 = vmatpush3.bf16.msra.mxu1 %v12088_v45  ;;  %v5045_v45 = vsel %vm13130_vm6, %v5043_v16, %v5044_v23  ;;  %v9840_v0 = vrot.slane %v9824_v11, 9  ;;  %v9389_v10 = vcombine.low %v12183_v7, %v13238_v8  ;;  %v12186_v23 = vld [vmem:[%s12537_s9 + $0x68] sm:$0xf]  ;;  %v12187_v40 = vld [vmem:[%s12537_s9 + $0x60] sm:$0x1] }
 0x12e   : > { %10923 = vmatprep.subr.bf16.mxu1 %v12089_v51  ;;  %v5058_v13 = vsel %vm13130_vm6, %v5056_v49, %v5057_v55  ;;  %v5066_v36 = vrot.slane %v5064_v4, 4  ;;  %v13268_v11 = vld [vmem:[%s12537_s9 + $0x54] sm:$0xf]  ;;  %v12193_v49 = vld [vmem:[%s12537_s9 + $0x70] sm:$0xf] }
 0x12f   : > { %v5062_v16 = vsel %vm13130_vm6, %v9840_v0, %v5061_v60  ;;  %v5080_v52 = vrot.slane %v12193_v49, 5  ;;  %v12194_v0 = vld [vmem:[%s12537_s9 + $0x7c] sm:$0xf] }
 0x131   : > { %10924 = vmatpush3.bf16.msra.mxu1 %v12089_v51  ;;  %11130 = vmatmul.mubr.msk.bf16.vlgmr.msra.gmra.mrb[0].mxu0 %vm1120_vm2, %v9858_v54  ;;  %v5049_v54 = vsel %vm13130_vm6, %v9839_v29, %v5048_v12  ;;  %v5063_v51 = vrot.slane %v5061_v60, 4  ;;  %v5055_v12 = vsel %vm13130_vm6, %v5053_v19, %v5054_v14  ;;  %v9825_v29 = vld [vmem:[%s12537_s9 + $0x64] sm:$0xe]  ;;  %v12191_v60 = vld [vmem:[%s12537_s9 + $0x50] sm:$0xf] }
 0x132   : > { %11133 = vmatprep.mubr.msk.bf16.mxu0 %vm1120_vm2, %v9859_v9  ;;  %11194 = vmatpush3.bf16.msra.mxu0 %v13074_v41  ;;  %v9860_v41 = vcombine.low %v5042_v44, %v5045_v45  ;;  %v9861_v50 = vcombine.low %v5049_v54, %v5052_v57  ;;  %v12185_v9 = vld [vmem:[%s12537_s9 + $0x5c] sm:$0xf]  ;;  %v9862_v32 = vcombine.low %v5055_v12, %v5058_v13  ;;  %v13258_v44 = vld [vmem:[%s12537_s9 + $0x44] sm:$0xf]  ;;  %v13261_v45 = vld [vmem:[%s12537_s9 + $0x48] sm:$0xf] }
 0x133   : > { %11195 = vmatprep.subr.bf16.mxu0 %v12090_v30  ;;  %v5067_v15 = vrot.slane %v12185_v9, 5  ;;  %v5065_v22 = vsel %vm13130_vm6, %v5063_v51, %v5064_v4  ;;  %v9390_v37 = vcombine.low %v13258_v44, %v13261_v45  ;;  %v9841_v14 = vrot.slane %v9825_v29, 9  ;;  %v12190_v57 = vld [vmem:[%s12537_s9 + $0x6c] sm:$0xf]  ;;  %v12195_v13 = vld [vmem:[%s12537_s9 + $0x74] sm:$0x1] }
 0x134   : > { %10862 = vmatmul.mubr.msk.bf16.gmra.mrb[4].mxu1 %vm1120_vm2, %v9386_v20  ;;  %v5074_v20 = vrot.slane %v12186_v23, 5  ;;  %v9863_v34 = vcombine.low %v5062_v16, %v5065_v22  ;;  %v5077_v58 = vrot.slane %v12190_v57, 5  ;;  %v5087_v51 = vrot.slane %v12194_v0, 5  ;;  %v13291_v16 = vld [vmem:[%s12537_s9 + $0x5c] sm:$0xf] }
 0x135   : > { %10865 = vmatprep.mubr.msk.bf16.mxu1 %vm1120_vm2, %v9387_v43  ;;  %v5070_v43 = vrot.slane %v12187_v40, 5  ;;  %v5082_v12 = vrot.slane %v5080_v52, 4  ;;  %v5083_v9 = vrot.slane %v12195_v13, 5  ;;  %v9842_v23 = vrot.slane %v9826_v3, 9  ;;  %v12198_v29 = vld [vmem:[%s12537_s9 + $0x80] sm:$0xf] }
 0x136   : > { %11196 = vmatpush3.bf16.msra.mxu0 %v12090_v30  ;;  %v5069_v30 = vrot.slane %v5067_v15, 4  ;;  %v5076_v54 = vrot.slane %v5074_v20, 4  ;;  %v5075_v55 = vsel %vm13130_vm6, %v9841_v14, %v5074_v20  ;;  %v5089_v20 = vrot.slane %v5087_v51, 4  ;;  %v13318_v0 = vld [vmem:[%s12537_s9 + $0x6c] sm:$0xf] }
 0x137   : > { %v12207_v13 = vld [vmem:[%s12537_s9 + $0x78] sm:$0xf] }
 0x138   : > { %v5071_v19 = vsel %vm13130_vm6, %v5069_v30, %v5070_v43  ;;  %v5084_v43 = vsel %vm13130_vm6, %v5082_v12, %v5083_v9  ;;  %v13328_v9 = vld [vmem:[%s12537_s9 + $0x7c] sm:$0xf] }
 0x139   : > { %11134 = vmatmul.mubr.msk.bf16.gmra.mrb[4].mxu0 %vm1120_vm2, %v9860_v41  ;;  %v9391_v41 = vcombine.low %v12191_v60, %v13268_v11 }
 0x13a   : > { %11137 = vmatprep.mubr.msk.bf16.mxu0 %vm1120_vm2, %v9861_v50  ;;  %v5068_v50 = vsel %vm13130_vm6, %v5066_v36, %v5067_v15  ;;  %v13288_v15 = vld [vmem:[%s12537_s9 + $0x58] sm:$0xf]  ;;  %v13298_v36 = vld [vmem:[%s12537_s9 + $0x68] sm:$0xf] }
 0x13b   : > { %v9864_v4 = vcombine.low %v5068_v50, %v5071_v19  ;;  %v9392_v22 = vcombine.low %v13288_v15, %v13291_v16 }
 0x13c   : > { %10866 = vmatmul.mubr.msk.bf16.gmra.mrb[8].mxu1 %vm1120_vm2, %v9388_v61  ;;  %v5078_v61 = vsel %vm13130_vm6, %v5076_v54, %v5077_v58  ;;  %v5088_v54 = vsel %vm13130_vm6, %v9842_v23, %v5087_v51  ;;  %v13321_v51 = vld [vmem:[%s12537_s9 + $0x70] sm:$0xf] }
 0x13d   : > { %10869 = vmatprep.mubr.msk.bf16.mxu1 %vm1120_vm2, %v9389_v10  ;;  %v9865_v7 = vcombine.low %v5075_v55, %v5078_v61  ;;  %v5079_v10 = vrot.slane %v5077_v58, 4  ;;  %v12202_v58 = vld [vmem:[%s12537_s9 + $0x90] sm:$0xf]  ;;  %v12203_v55 = vld [vmem:[%s12537_s9 + $0x88] sm:$0x1]  ;;  %v9394_v3 = vcombine.low %v13318_v0, %v13321_v51 }
 0x13e   : > { %v5100_v60 = vrot.slane %v12202_v58, 5  ;;  %v5096_v61 = vrot.slane %v12203_v55, 5 }
 0x13f   : > { %v5081_v40 = vsel %vm13130_vm6, %v5079_v10, %v5080_v52  ;;  %v12206_v10 = vld [vmem:[%s12537_s9 + $0x94] sm:$0xf] }
 0x140   : > { %v9866_v50 = vcombine.low %v5081_v40, %v5084_v43  ;;  %v5103_v12 = vrot.slane %v12206_v10, 5  ;;  %v12210_v40 = vld [vmem:[%s12537_s9 + $0xa4] sm:$0xf] }
 0x141   : > { %11138 = vmatmul.mubr.msk.bf16.gmra.mrb[8].mxu0 %vm1120_vm2, %v9862_v32  ;;  %v5090_v32 = vrot.slane %v12198_v29, 5  ;;  %v12209_v29 = vld [vmem:[%s12537_s9 + $0x98] sm:$0xf]  ;;  %v5113_v43 = vrot.slane %v12210_v40, 5 }
 0x142   : > { %11141 = vmatprep.mubr.msk.bf16.mxu0 %vm1120_vm2, %v9863_v34  ;;  %v12199_v34 = vld [vmem:[%s12537_s9 + $0x64] sm:$0xf] }
 0x143   : > { %v9393_v30 = vcombine.low %v12199_v34, %v13298_v36  ;;  %v5091_v57 = vsel %vm13130_vm6, %v5089_v20, %v5090_v32  ;;  %v5092_v49 = vrot.slane %v5090_v32, 4  ;;  %v5106_v32 = vrot.slane %v12209_v29, 5 }
 0x144   : > { %10870 = vmatmul.mubr.msk.bf16.gmra.mrb[12].mxu1 %vm1120_vm2, %v9390_v37  ;;  %v12201_v37 = vld [vmem:[%s12537_s9 + $0x84] sm:$0xf]  ;;  %v9867_v19 = vcombine.low %v5088_v54, %v5091_v57  ;;  %v5105_v57 = vrot.slane %v5103_v12, 4  ;;  %v5115_v55 = vrot.slane %v5113_v43, 4 }
 0x145   : > { %10873 = vmatprep.mubr.msk.bf16.mxu1 %vm1120_vm2, %v9391_v41  ;;  %v5093_v14 = vrot.slane %v12201_v37, 5  ;;  %v9827_v41 = vld [vmem:[%s12537_s9 + $0x8c] sm:$0xe]  ;;  %v9828_v37 = vld [vmem:[%s12537_s9 + $0xa0] sm:$0xe]  ;;  %v5108_v58 = vrot.slane %v5106_v32, 4 }
 0x147   : > { %v5095_v52 = vrot.slane %v5093_v14, 4  ;;  %v5094_v23 = vsel %vm13130_vm6, %v5092_v49, %v5093_v14 }
 0x149   : > { %11142 = vmatmul.mubr.msk.bf16.gmra.mrb[12].mxu0 %vm1120_vm2, %v9864_v4  ;;  %v9843_v4 = vrot.slane %v9827_v41, 9  ;;  %v5097_v20 = vsel %vm13130_vm6, %v5095_v52, %v5096_v61  ;;  %v12211_v41 = vld [vmem:[%s12537_s9 + $0x9c] sm:$0x1]  ;;  %v9844_v52 = vrot.slane %v9828_v37, 9  ;;  %v12214_v61 = vld [vmem:[%s12537_s9 + $0xa8] sm:$0xf] }
 0x14a   : > { %11145 = vmatprep.mubr.msk.bf16.mxu0 %vm1120_vm2, %v9865_v7  ;;  %v5102_v7 = vrot.slane %v5100_v60, 4  ;;  %v9868_v14 = vcombine.low %v5094_v23, %v5097_v20 }
 0x14b   : > { %v5101_v34 = vsel %vm13130_vm6, %v9843_v4, %v5100_v60  ;;  %v13351_v60 = vld [vmem:[%s12537_s9 + $0x84] sm:$0xf]  ;;  %v12215_v4 = vld [vmem:[%s12537_s9 + $0x8c] sm:$0xf]  ;;  %v5114_v20 = vsel %vm13130_vm6, %v9844_v52, %v5113_v43  ;;  %v13381_v43 = vld [vmem:[%s12537_s9 + $0x98] sm:$0xf] }
 0x14c   : > { %10874 = vmatmul.mubr.msk.bf16.gmra.mrb[16].mxu1 %vm1120_vm2, %v9392_v22  ;;  %v9395_v22 = vcombine.low %v12207_v13, %v13328_v9 }
 0x14d   : > { %10877 = vmatprep.mubr.msk.bf16.mxu1 %vm1120_vm2, %v9393_v30  ;;  %v5104_v30 = vsel %vm13130_vm6, %v5102_v7, %v5103_v12  ;;  %v13358_v7 = vld [vmem:[%s12537_s9 + $0x90] sm:$0xf]  ;;  %v5107_v12 = vsel %vm13130_vm6, %v5105_v57, %v5106_v32  ;;  %v9829_v32 = vld [vmem:[%s12537_s9 + $0xb4] sm:$0xe] }
 0x14e   : > { %v9869_v54 = vcombine.low %v5101_v34, %v5104_v30  ;;  %v9397_v10 = vcombine.low %v12215_v4, %v13358_v7  ;;  %v12218_v34 = vld [vmem:[%s12537_s9 + $0xb8] sm:$0xf]  ;;  %v12219_v57 = vld [vmem:[%s12537_s9 + $0xb0] sm:$0x1]  ;;  %v12223_v4 = vld [vmem:[%s12537_s9 + $0xa0] sm:$0xf] }
 0x14f   : > { %v5126_v30 = vrot.slane %v12218_v34, 5 }
 0x151   : > { %11146 = vmatmul.mubr.msk.bf16.gmra.mrb[16].mxu0 %vm1120_vm2, %v9866_v50  ;;  %v5109_v50 = vrot.slane %v12211_v41, 5  ;;  %v13378_v41 = vld [vmem:[%s12537_s9 + $0x94] sm:$0xf]  ;;  %v5128_v52 = vrot.slane %v5126_v30, 4 }
 0x152   : > { %11149 = vmatprep.mubr.msk.bf16.mxu0 %vm1120_vm2, %v9867_v19  ;;  %v13348_v19 = vld [vmem:[%s12537_s9 + $0x80] sm:$0xf] }
 0x153   : > { %v9396_v49 = vcombine.low %v13348_v19, %v13351_v60  ;;  %v5110_v13 = vsel %vm13130_vm6, %v5108_v58, %v5109_v50  ;;  %v5122_v58 = vrot.slane %v12219_v57, 5  ;;  %v9398_v50 = vcombine.low %v13378_v41, %v13381_v43 }
 0x154   : > { %10878 = vmatmul.mubr.msk.bf16.gmra.mrb[20].mxu1 %vm1120_vm2, %v9394_v3  ;;  %v5116_v3 = vrot.slane %v12214_v61, 5  ;;  %v9870_v40 = vcombine.low %v5107_v12, %v5110_v13 }
 0x155   : > { %10881 = vmatprep.mubr.msk.bf16.mxu1 %vm1120_vm2, %v9395_v22  ;;  %v12217_v22 = vld [vmem:[%s12537_s9 + $0xac] sm:$0xf] }
 0x156   : > { %v5119_v23 = vrot.slane %v12217_v22, 5  ;;  %v5117_v29 = vsel %vm13130_vm6, %v5115_v55, %v5116_v3  ;;  %v12222_v55 = vld [vmem:[%s12537_s9 + $0xbc] sm:$0xf]  ;;  %v12225_v22 = vld [vmem:[%s12537_s9 + $0xc0] sm:$0xf] }
 0x157   : > { %v9871_v37 = vcombine.low %v5114_v20, %v5117_v29  ;;  %v5129_v61 = vrot.slane %v12222_v55, 5  ;;  %v5132_v20 = vrot.slane %v12225_v22, 5  ;;  %v13408_v55 = vld [vmem:[%s12537_s9 + $0xa8] sm:$0xf] }
 0x158   : > { %15409 = vst [vmem:[#allocation6_spill] sm:$0xff] %v13408_v55 }
 0x159   : > { %11150 = vmatmul.mubr.msk.bf16.gmra.mrb[20].mxu0 %vm1120_vm2, %v9868_v14  ;;  %v5118_v14 = vrot.slane %v5116_v3, 4  ;;  %v5130_v34 = vsel %vm13130_vm6, %v5128_v52, %v5129_v61  ;;  %v5134_v57 = vrot.slane %v5132_v20, 4 }
 0x15a   : > { %11153 = vmatprep.mubr.msk.bf16.mxu0 %vm1120_vm2, %v9869_v54  ;;  %v5121_v54 = vrot.slane %v5119_v23, 4 }
 0x15b   : > { %v5120_v12 = vsel %vm13130_vm6, %v5118_v14, %v5119_v23  ;;  %v9830_v23 = vld [vmem:[%s12537_s9 + $0xc8] sm:$0xe] }
 0x15c   : > { %10882 = vmatmul.mubr.msk.bf16.gmra.mrb[24].mxu1 %vm1120_vm2, %v9396_v49  ;;  %v9845_v49 = vrot.slane %v9829_v32, 9  ;;  %v5123_v13 = vsel %vm13130_vm6, %v5121_v54, %v5122_v58  ;;  %v12226_v32 = vld [vmem:[%s12537_s9 + $0xcc] sm:$0xf]  ;;  %v5131_v54 = vrot.slane %v5129_v61, 4  ;;  %v12227_v58 = vld [vmem:[%s12537_s9 + $0xc4] sm:$0x1] }
 0x15d   : > { %10885 = vmatprep.mubr.msk.bf16.mxu1 %vm1120_vm2, %v9397_v10  ;;  %v13388_v10 = vld [vmem:[%s12537_s9 + $0xa4] sm:$0xf]  ;;  %v9846_v52 = vrot.slane %v9830_v23, 9 }
 0x15e   : > { %v9399_v3 = vcombine.low %v12223_v4, %v13388_v10  ;;  %v5127_v29 = vsel %vm13130_vm6, %v9845_v49, %v5126_v30  ;;  %v13411_v30 = vld [vmem:[%s12537_s9 + $0xac] sm:$0xf] }
 0x15f   : > { %v9873_v14 = vcombine.low %v5127_v29, %v5130_v34  ;;  %15410 = vst [vmem:[#allocation7_spill] sm:$0xff] %v13411_v30  ;;  %v9400_v49 = vcombine.low %v13408_v55, %v13411_v30  ;;  %v5133_v29 = vsel %vm13130_vm6, %v5131_v54, %v5132_v20  ;;  %v9831_v20 = vld [vmem:[%s12537_s9 + $0xdc] sm:$0xe]  ;;  %v12263_v30 = vld [vmem:[%s12537_s9 + $0x104] sm:$0xf] }
 0x160   : > { %v13538_v55 = vld [vmem:[%s12537_s9 + $0x108] sm:$0xf] }
 0x161   : > { %11154 = vmatmul.mubr.msk.bf16.gmra.mrb[24].mxu0 %vm1120_vm2, %v9870_v40  ;;  %v5139_v40 = vrot.slane %v12226_v32, 5  ;;  %v12233_v32 = vld [vmem:[%s12537_s9 + $0xd4] sm:$0xf] }
 0x162   : > { %11157 = vmatprep.mubr.msk.bf16.mxu0 %vm1120_vm2, %v9871_v37  ;;  %v9872_v37 = vcombine.low %v5120_v12, %v5123_v13  ;;  %v12231_v12 = vld [vmem:[%s12537_s9 + $0xb4] sm:$0xf]  ;;  %v13418_v13 = vld [vmem:[%s12537_s9 + $0xb8] sm:$0xf]  ;;  %v5145_v23 = vrot.slane %v12233_v32, 5 }
 0x163   : > { %v5141_v4 = vrot.slane %v5139_v40, 4  ;;  %15411 = vst [vmem:[#allocation8_spill] sm:$0xff] %v13418_v13  ;;  %v9401_v61 = vcombine.low %v12231_v12, %v13418_v13  ;;  %v12235_v32 = vld [vmem:[%s12537_s9 + $0xd8] sm:$0x1] }
 0x164   : > { %10886 = vmatmul.mubr.msk.bf16.gmra.mrb[28].mxu1 %vm1120_vm2, %v9398_v50  ;;  %v5135_v50 = vrot.slane %v12227_v58, 5  ;;  %v5140_v58 = vsel %vm13130_vm6, %v9846_v52, %v5139_v40  ;;  %v5147_v12 = vrot.slane %v5145_v23, 4  ;;  %v13441_v40 = vld [vmem:[%s12537_s9 + $0xc0] sm:$0xf] }
 0x165   : > { %10889 = vmatprep.mubr.msk.bf16.mxu1 %vm1120_vm2, %v9399_v3  ;;  %v12230_v3 = vld [vmem:[%s12537_s9 + $0xd0] sm:$0xf]  ;;  %15413 = vst [vmem:[#allocation10_spill] sm:$0xff] %v13441_v40  ;;  %v9402_v52 = vcombine.low %v13438_v28, %v13441_v40 }
 0x166   : > { %v5142_v22 = vrot.slane %v12230_v3, 5  ;;  %v5136_v34 = vsel %vm13130_vm6, %v5134_v57, %v5135_v50  ;;  %v13468_v40 = vld [vmem:[%s12537_s9 + $0xd0] sm:$0xf] }
 0x167   : > { %v9874_v54 = vcombine.low %v5133_v29, %v5136_v34  ;;  %v12239_v29 = vld [vmem:[%s12537_s9 + $0xc8] sm:$0xf]  ;;  %v13448_v34 = vld [vmem:[%s12537_s9 + $0xcc] sm:$0xf]  ;;  %15415 = vst [vmem:[#allocation12_spill] sm:$0xff] %v13468_v40 }
 0x168   : > { %v5144_v50 = vrot.slane %v5142_v22, 4  ;;  %15414 = vst [vmem:[#allocation11_spill] sm:$0xff] %v13448_v34 }
 0x169   : > { %11158 = vmatmul.mubr.msk.bf16.gmra.mrb[28].mxu0 %vm1120_vm2, %v9872_v37  ;;  %v5143_v37 = vsel %vm13130_vm6, %v5141_v4, %v5142_v22  ;;  %v9847_v4 = vrot.slane %v9831_v20, 9  ;;  %v9403_v22 = vcombine.low %v12239_v29, %v13448_v34  ;;  %v12241_v20 = vld [vmem:[%s12537_s9 + $0xe8] sm:$0xf]  ;;  %v12243_v34 = vld [vmem:[%s12537_s9 + $0xec] sm:$0x1] }
 0x16a   : > { %11161 = vmatprep.mubr.msk.bf16.mxu0 %vm1120_vm2, %v9873_v14  ;;  %v12234_v14 = vld [vmem:[%s12537_s9 + $0xe0] sm:$0xf]  ;;  %v9875_v57 = vcombine.low %v5140_v58, %v5143_v37  ;;  %v5146_v58 = vsel %vm13130_vm6, %v5144_v50, %v5145_v23  ;;  %v9832_v23 = vld [vmem:[%s12537_s9 + $0xf0] sm:$0xe] }
 0x16b   : > { %v5152_v3 = vrot.slane %v12234_v14, 5 }
 0x16c   : > { %10890 = vmatmul.mubr.msk.bf16.gmra.mrb[32].mxu1 %vm1120_vm2, %v9400_v49  ;;  %v5148_v49 = vrot.slane %v12235_v32, 5  ;;  %v5158_v32 = vrot.slane %v12241_v20, 5 }
 0x16d   : > { %10893 = vmatprep.mubr.msk.bf16.mxu1 %vm1120_vm2, %v9401_v61  ;;  %v5154_v14 = vrot.slane %v5152_v3, 4  ;;  %v12238_v61 = vld [vmem:[%s12537_s9 + $0xe4] sm:$0xf] }
 0x16e   : > { %v5155_v13 = vrot.slane %v12238_v61, 5  ;;  %v5149_v37 = vsel %vm13130_vm6, %v5147_v12, %v5148_v49  ;;  %v5153_v61 = vsel %vm13130_vm6, %v9847_v4, %v5152_v3  ;;  %v5160_v20 = vrot.slane %v5158_v32, 4  ;;  %v13471_v3 = vld [vmem:[%s12537_s9 + $0xd4] sm:$0xf] }
 0x16f   : > { %v9876_v50 = vcombine.low %v5146_v58, %v5149_v37  ;;  %15416 = vst [vmem:[#allocation13_spill] sm:$0xff] %v13471_v3  ;;  %v9404_v4 = vcombine.low %v13468_v40, %v13471_v3  ;;  %v12247_v58 = vld [vmem:[%s12537_s9 + $0xdc] sm:$0xf]  ;;  %v13478_v37 = vld [vmem:[%s12537_s9 + $0xe0] sm:$0xf] }
 0x170   : > { %v5157_v49 = vrot.slane %v5155_v13, 4  ;;  %15417 = vst [vmem:[#allocation14_spill] sm:$0xff] %v13478_v37  ;;  %v13498_v3 = vld [vmem:[%s12537_s9 + $0xe4] sm:$0xf] }
 0x171   : > { %11162 = vmatmul.mubr.msk.bf16.gmra.mrb[32].mxu0 %vm1120_vm2, %v9874_v54  ;;  %v5156_v54 = vsel %vm13130_vm6, %v5154_v14, %v5155_v13  ;;  %v9848_v14 = vrot.slane %v9832_v23, 9  ;;  %v9405_v13 = vcombine.low %v12247_v58, %v13478_v37  ;;  %v12251_v37 = vld [vmem:[%s12537_s9 + $0x100] sm:$0x1]  ;;  %15418 = vst [vmem:[#allocation15_spill] sm:$0xff] %v13498_v3 }
 0x172   : > { %11165 = vmatprep.mubr.msk.bf16.mxu0 %vm1120_vm2, %v9875_v57  ;;  %v12242_v57 = vld [vmem:[%s12537_s9 + $0xf4] sm:$0xf]  ;;  %v9877_v12 = vcombine.low %v5153_v61, %v5156_v54  ;;  %v12249_v54 = vld [vmem:[%s12537_s9 + $0xfc] sm:$0xf] }
 0x173   : > { %v5165_v29 = vrot.slane %v12242_v57, 5  ;;  %v5171_v23 = vrot.slane %v12249_v54, 5 }
 0x174   : > { %10894 = vmatmul.mubr.msk.bf16.gmra.mrb[36].mxu1 %vm1120_vm2, %v9402_v52  ;;  %v5161_v52 = vrot.slane %v12243_v34, 5  ;;  %v5159_v34 = vsel %vm13130_vm6, %v5157_v49, %v5158_v32  ;;  %v9833_v32 = vld [vmem:[%s12537_s9 + $0x104] sm:$0xe] }
 0x175   : > { %10897 = vmatprep.mubr.msk.bf16.mxu1 %vm1120_vm2, %v9403_v22  ;;  %v5167_v57 = vrot.slane %v5165_v29, 4  ;;  %v12246_v22 = vld [vmem:[%s12537_s9 + $0xf8] sm:$0xf]  ;;  %v5173_v54 = vrot.slane %v5171_v23, 4 }
 0x176   : > { %v5168_v28 = vrot.slane %v12246_v22, 5  ;;  %v5162_v61 = vsel %vm13130_vm6, %v5160_v20, %v5161_v52  ;;  %v5166_v22 = vsel %vm13130_vm6, %v9848_v14, %v5165_v29  ;;  %v13501_v29 = vld [vmem:[%s12537_s9 + $0xe8] sm:$0xf] }
 0x177   : > { %v9878_v49 = vcombine.low %v5159_v34, %v5162_v61  ;;  %15419 = vst [vmem:[#allocation16_spill] sm:$0xff] %v13501_v29  ;;  %v9406_v14 = vcombine.low %v13498_v3, %v13501_v29  ;;  %v12255_v34 = vld [vmem:[%s12537_s9 + $0xf0] sm:$0xf]  ;;  %v13508_v61 = vld [vmem:[%s12537_s9 + $0xf4] sm:$0xf] }
 0x178   : > { %v5170_v52 = vrot.slane %v5168_v28, 4  ;;  %15420 = vst [vmem:[#allocation17_spill] sm:$0xff] %v13508_v61  ;;  %v13528_v29 = vld [vmem:[%s12537_s9 + $0xf8] sm:$0xf]  ;;  %v12262_v3 = vld [vmem:[%s12537_s9 + $0x120] sm:$0xf] }
 0x179   : > { %11166 = vmatmul.mubr.msk.bf16.gmra.mrb[36].mxu0 %vm1120_vm2, %v9876_v50  ;;  %v5169_v50 = vsel %vm13130_vm6, %v5167_v57, %v5168_v28  ;;  %v9849_v57 = vrot.slane %v9833_v32, 9  ;;  %v9407_v28 = vcombine.low %v12255_v34, %v13508_v61  ;;  %v12259_v61 = vld [vmem:[%s12537_s9 + $0x114] sm:$0x1] }
 0x17a   : > { %11169 = vmatprep.mubr.msk.bf16.mxu0 %vm1120_vm2, %v9877_v12  ;;  %v12250_v12 = vld [vmem:[%s12537_s9 + $0x108] sm:$0xf]  ;;  %v9879_v20 = vcombine.low %v5166_v22, %v5169_v50  ;;  %v12257_v50 = vld [vmem:[%s12537_s9 + $0x110] sm:$0xf] }
 0x17b   : > { %v5178_v58 = vrot.slane %v12250_v12, 5  ;;  %v5184_v32 = vrot.slane %v12257_v50, 5 }
 0x17c   : > { %10898 = vmatmul.mubr.msk.bf16.gmra.mrb[40].mxu1 %vm1120_vm2, %v9404_v4  ;;  %v5174_v4 = vrot.slane %v12251_v37, 5  ;;  %v5172_v37 = vsel %vm13130_vm6, %v5170_v52, %v5171_v23  ;;  %v9834_v23 = vld [vmem:[%s12537_s9 + $0x118] sm:$0xe] }
 0x17d   : > { %10901 = vmatprep.mubr.msk.bf16.mxu1 %vm1120_vm2, %v9405_v13  ;;  %v5180_v12 = vrot.slane %v5178_v58, 4  ;;  %v12254_v13 = vld [vmem:[%s12537_s9 + $0x10c] sm:$0xf]  ;;  %v5186_v50 = vrot.slane %v5184_v32, 4 }
 0x17e   : > { %v5181_v40 = vrot.slane %v12254_v13, 5  ;;  %v5175_v22 = vsel %vm13130_vm6, %v5173_v54, %v5174_v4  ;;  %v5179_v13 = vsel %vm13130_vm6, %v9849_v57, %v5178_v58  ;;  %v13531_v58 = vld [vmem:[%s12537_s9 + $0xfc] sm:$0xf] }
 0x17f   : > { %v9880_v52 = vcombine.low %v5172_v37, %v5175_v22  ;;  %v9408_v57 = vcombine.low %v13528_v29, %v13531_v58 }
 0x180   : > { %v5183_v4 = vrot.slane %v5181_v40, 4 }
 0x181   : > { %11170 = vmatmul.mubr.msk.bf16.gmra.mrb[40].mxu0 %vm1120_vm2, %v9878_v49  ;;  %v5182_v49 = vsel %vm13130_vm6, %v5180_v12, %v5181_v40  ;;  %v9850_v12 = vrot.slane %v9834_v23, 9  ;;  %v9409_v40 = vcombine.low %v12263_v30, %v13538_v55 }
 0x182   : > { %11173 = vmatprep.mubr.msk.bf16.mxu0 %vm1120_vm2, %v9879_v20  ;;  %v12258_v20 = vld [vmem:[%s12537_s9 + $0x11c] sm:$0xf]  ;;  %v9881_v54 = vcombine.low %v5179_v13, %v5182_v49  ;;  %v5204_v13 = vrot.slane %v13009_v21, 5  ;;  %v5207_v21 = vrot.slane %v13016_v25, 5  ;;  %v5210_v25 = vrot.slane %v13036_v1, 5 }
 0x183   : > { %v5191_v34 = vrot.slane %v12258_v20, 5 }
 0x184   : > { %10902 = vmatmul.mubr.msk.bf16.gmra.mrb[44].mxu1 %vm1120_vm2, %v9406_v14  ;;  %v5187_v14 = vrot.slane %v12259_v61, 5  ;;  %v5185_v61 = vsel %vm13130_vm6, %v5183_v4, %v5184_v32  ;;  %v9835_v32 = vld [vmem:[%s12537_s9 + $0x12c] sm:$0xe]  ;;  %v12265_v4 = vld [vmem:[%s12537_s9 + $0x128] sm:$0x1]  ;;  %v5209_v1 = vrot.slane %v5207_v21, 4 }
 0x185   : > { %10905 = vmatprep.mubr.msk.bf16.mxu1 %vm1120_vm2, %v9407_v28  ;;  %v5193_v20 = vrot.slane %v5191_v34, 4  ;;  %v5194_v28 = vrot.slane %v12262_v3, 5  ;;  %v5197_v3 = vrot.slane %v12984_v33, 5  ;;  %v5192_v30 = vsel %vm13130_vm6, %v9850_v12, %v5191_v34 }
 0x186   : > { %v5188_v37 = vsel %vm13130_vm6, %v5186_v50, %v5187_v14  ;;  %v5200_v33 = vrot.slane %v12265_v4, 5  ;;  %v13558_v50 = vld [vmem:[%s12537_s9 + $0x10c] sm:$0xf]  ;;  %v13561_v14 = vld [vmem:[%s12537_s9 + $0x110] sm:$0xf]  ;;  %v5206_v12 = vrot.slane %v5204_v13, 4 }
 0x187   : > { %v5195_v22 = vsel %vm13130_vm6, %v5193_v20, %v5194_v28  ;;  %v9882_v49 = vcombine.low %v5185_v61, %v5188_v37  ;;  %v9410_v34 = vcombine.low %v13558_v50, %v13561_v14  ;;  %v12268_v20 = vld [vmem:[%s12537_s9 + $0x118] sm:$0xf]  ;;  %v2063_v4 = vld [vmem:[%s12537_s9] sm:$0xe] }
 0x188   : > { %v9883_v23 = vcombine.low %v5192_v30, %v5195_v22  ;;  %v5208_v30 = vsel %vm13130_vm6, %v5206_v12, %v5207_v21  ;;  %v5217_v22 = vrot.slane %v13069_v47, 5  ;;  %v9413_v12 = vcombine.low %v13042_v6, %v13053_v24 }
 0x189   : > { %11174 = vmatmul.mubr.msk.bf16.gmra.mrb[44].mxu0 %vm1120_vm2, %v9880_v52  ;;  %v5196_v52 = vrot.slane %v5194_v28, 4  ;;  %v13572_v28 = vld [vmem:[%s15384_s1 + $0x70] sm:$0xff]  }
 0x18a   : > { %11177 = vmatprep.mubr.msk.bf16.mxu0 %vm1120_vm2, %v9881_v54  ;;  %v5199_v54 = vrot.slane %v5197_v3, 4  ;;  %11261 = vmatprep.subr.bf16.mxu0 %v13572_v28 }
 0x18b   : > { %v5198_v61 = vsel %vm13130_vm6, %v5196_v52, %v5197_v3  ;;  %v9836_v3 = vld [vmem:[%s12537_s9 + $0x140] sm:$0xe]  ;;  %v5212_v52 = vrot.slane %v5210_v25, 4 }
 0x18c   : > { %10906 = vmatmul.mubr.msk.bf16.gmra.mrb[48].mxu1 %vm1120_vm2, %v9408_v57  ;;  %v9851_v57 = vrot.slane %v9835_v32, 9  ;;  %v5201_v37 = vsel %vm13130_vm6, %v5199_v54, %v5200_v33  ;;  %v5213_v54 = vrot.slane %v13039_v5, 5  ;;  %v9852_v47 = vrot.slane %v9836_v3, 9  ;;  %v2064_v3 = vld [vmem:[%s12537_s9 + $0x14] sm:$0xe] }
 0x18d   : > { %10909 = vmatprep.mubr.msk.bf16.mxu1 %vm1120_vm2, %v9409_v40  ;;  %v9411_v40 = vcombine.low %v12268_v20, %v12994_v53  ;;  %v9884_v32 = vcombine.low %v5198_v61, %v5201_v37  ;;  %v2119_v20 = vrot.slane %v13163_v17, 5  ;;  %v5211_v5 = vsel %vm13130_vm6, %v5209_v1, %v5210_v25 }
 0x18e   : > { %v5205_v53 = vsel %vm13130_vm6, %v9851_v57, %v5204_v13  ;;  %v13593_v13 = vld [vmem:[%s12537_s9 + $0x120] sm:$0xf]  ;;  %v5220_v57 = vrot.slane %v13085_v2, 5  ;;  %v5223_v2 = vrot.slane %v13101_v35, 5  ;;  %v5218_v6 = vsel %vm13130_vm6, %v9852_v47, %v5217_v22 }
 0x18f   : > { %v9412_v33 = vcombine.low %v13593_v13, %v13019_v31  ;;  %v5214_v31 = vsel %vm13130_vm6, %v5212_v52, %v5213_v54  ;;  %v2122_v17 = vrot.slane %v13166_v46, 5  ;;  %v2129_v37 = vrot.slane %v13175_v63, 5 }
 0x190   : > { %v2121_v1 = vrot.slane %v2119_v20, 4  ;;  %v2132_v63 = vrot.slane %v13194_v18, 5  ;;  %v2135_v47 = vrot.slane %v13197_v27, 5 }
 0x191   : > { %11178 = vmatmul.mubr.msk.bf16.gmra.mrb[48].mxu0 %vm1120_vm2, %v9882_v49  ;;  %v2116_v49 = vrot.slane %v13126_v26, 5  ;;  %v9449_v26 = vrot.slane %v2063_v4, 9  ;;  %v2124_v54 = vrot.slane %v2122_v17, 4  ;;  %v2131_v4 = vrot.slane %v2129_v37, 4 }
 0x192   : > { %11181 = vmatprep.mubr.msk.bf16.mxu0 %vm1120_vm2, %v9883_v23  ;;  %v9885_v23 = vcombine.low %v5205_v53, %v5208_v30  ;;  %v5222_v53 = vrot.slane %v5220_v57, 4  ;;  %v5225_v30 = vrot.slane %v5223_v2, 4  ;;  %v2123_v18 = vsel %vm13130_vm6, %v2121_v1, %v2122_v17 }
 0x193   : > { %v2118_v21 = vrot.slane %v2116_v49, 4  ;;  %v2117_v61 = vsel %vm13130_vm6, %v9449_v26, %v2116_v49  ;;  %v9450_v49 = vrot.slane %v2064_v3, 9  ;;  %v2142_v26 = vrot.slane %v13207_v42, 5  ;;  %v12125_v42 = vld [vmem:[%s15384_s1 + $0x38] sm:$0xff]  }
 0x194   : > { %10910 = vmatmul.mubr.msk.bf16.gmra.mrb[52].mxu1 %vm1120_vm2, %v9410_v34  ;;  %v5219_v34 = vrot.slane %v5217_v22, 4  ;;  %v5226_v22 = vrot.slane %v13106_v48, 5  ;;  %v5224_v48 = vsel %vm13130_vm6, %v5222_v53, %v5223_v2  ;;  %v2134_v2 = vrot.slane %v2132_v63, 4  ;;  %v12093_v3 = vld [vmem:[%s12537_s9 + $0x3c] sm:$0xff]  }
 0x195   : > { %10913 = vmatprep.mubr.msk.bf16.mxu1 %vm1120_vm2, %v9411_v40  ;;  %v9886_v40 = vcombine.low %v5211_v5, %v5214_v31  ;;  %v2120_v35 = vsel %vm13130_vm6, %v2118_v21, %v2119_v20  ;;  %v12091_v21 = vld [vmem:[%s12537_s9 + $0x28] sm:$0xff]  }
 0x196   : > { %v5221_v24 = vsel %vm13130_vm6, %v5219_v34, %v5220_v57  ;;  %v9469_v52 = vcombine.low %v2117_v61, %v2120_v35  ;;  %v2130_v57 = vsel %vm13130_vm6, %v9450_v49, %v2129_v37  ;;  %v2065_v20 = vld [vmem:[%s12537_s9 + $0x28] sm:$0xe]  ;;  %v2145_v61 = vrot.slane %v13228_v56, 5  ;;  %v12092_v56 = vld [vmem:[%s12537_s9 + $0x30] sm:$0xff]  }
 0x197   : > { %v9887_v25 = vcombine.low %v5218_v6, %v5221_v24  ;;  %v2137_v6 = vrot.slane %v2135_v47, 4  ;;  %v12271_v24 = vld [vmem:[%s12537_s9 + $0x24] sm:$0x1]  ;;  %v9451_v27 = vrot.slane %v2065_v20, 9  ;;  %v2136_v35 = vsel %vm13130_vm6, %v2134_v2, %v2135_v47  ;;  %v12095_v47 = vld [vmem:[%s12537_s9 + $0x50] sm:$0xff]  }
 0x198   : > { %v2138_v17 = vrot.slane %v12271_v24, 5  ;;  %v12273_v20 = vld [vmem:[%s12537_s9 + $0x4c] sm:$0x1]  ;;  %v2171_v2 = vrot.slane %v13288_v15, 5  ;;  %v2174_v24 = vrot.slane %v13291_v16, 5 }
 0x199   : > { %11182 = vmatmul.mubr.msk.bf16.gmra.mrb[52].mxu0 %vm1120_vm2, %v9884_v32  ;;  %v9414_v32 = vcombine.low %v13061_v39, %v13089_v62  ;;  %v5227_v39 = vsel %vm13130_vm6, %v5225_v30, %v5226_v22  ;;  %v12123_v62 = vld [vmem:[%s15384_s1 + $0x30] sm:$0xff]   ;;  %v2143_v53 = vsel %vm13130_vm6, %v9451_v27, %v2142_v26  ;;  %v2155_v22 = vrot.slane %v13238_v8, 5 }
 0x19a   : > { %11185 = vmatprep.mubr.msk.bf16.mxu0 %vm1120_vm2, %v9885_v23  ;;  %v12270_v23 = vld [vmem:[%s12537_s9 + $0x10] sm:$0x1]  ;;  %v9888_v34 = vcombine.low %v5224_v48, %v5227_v39  ;;  %10989 = vmatprep.subr.bf16.mxu1 %v12123_v62  ;;  %v2139_v37 = vsel %vm13130_vm6, %v2137_v6, %v2138_v17  ;;  %v12096_v17 = vld [vmem:[%s12537_s9 + $0x58] sm:$0xff]  }
 0x19b   : > { %v2125_v46 = vrot.slane %v12270_v23, 5  ;;  %v9472_v23 = vcombine.low %v2136_v35, %v2139_v37  ;;  %v2157_v8 = vrot.slane %v2155_v22, 4 }
 0x19c   : > { %10914 = vmatmul.mubr.msk.bf16.gmra.mrb[56].mxu1 %vm1120_vm2, %v9412_v33 }
 0x19d   : > { %10917 = vmatprep.mubr.msk.bf16.mxu1 %vm1120_vm2, %v9413_v12  ;;  %v2126_v33 = vsel %vm13130_vm6, %v2124_v54, %v2125_v46  ;;  %v2133_v12 = vsel %vm13130_vm6, %v2131_v4, %v2132_v63  ;;  %v12126_v46 = vld [vmem:[%s15384_s1 + $0x78] sm:$0xff]   ;;  %v2158_v63 = vrot.slane %v13258_v44, 5 }
 0x19e   : > { %v9470_v5 = vcombine.low %v2123_v18, %v2126_v33  ;;  %v9471_v31 = vcombine.low %v2130_v57, %v2133_v12  ;;  %v12272_v54 = vld [vmem:[%s12537_s9 + $0x38] sm:$0x1]  ;;  %v12094_v18 = vld [vmem:[%s12537_s9 + $0x44] sm:$0xff]   ;;  %v2168_v33 = vrot.slane %v13268_v11, 5 }
 0x19f   : > { %v2151_v49 = vrot.slane %v12272_v54, 5  ;;  %v2069_v54 = vld [vmem:[%s12537_s9 + $0x78] sm:$0xe] }
 0x1a1   : > { %11186 = vmatmul.mubr.msk.bf16.gmra.mrb[56].mxu0 %vm1120_vm2, %v9886_v40  ;;  %v2144_v40 = vrot.slane %v2142_v26, 4  ;;  %v2160_v26 = vrot.slane %v2158_v63, 4 }
 0x1a2   : > { %11189 = vmatprep.mubr.msk.bf16.mxu0 %vm1120_vm2, %v9887_v25  ;;  %v2148_v25 = vrot.slane %v13231_v59, 5  ;;  %v2147_v59 = vrot.slane %v2145_v61, 4 }
 0x1a3   : > { %v2146_v30 = vsel %vm13130_vm6, %v2144_v40, %v2145_v61  ;;  %v2181_v40 = vrot.slane %v13298_v36, 5  ;;  %v12097_v61 = vld [vmem:[%s12537_s9 + $0x64] sm:$0xff]  }
 0x1a4   : > { %10918 = vmatmul.mubr.msk.bf16.gmra.mrb[60].mxu1 %vm1120_vm2, %v9414_v32  ;;  %v2066_v32 = vld [vmem:[%s12537_s9 + $0x3c] sm:$0xe]  ;;  %v9473_v1 = vcombine.low %v2143_v53, %v2146_v30  ;;  %v2149_v48 = vsel %vm13130_vm6, %v2147_v59, %v2148_v25  ;;  %v12274_v53 = vld [vmem:[%s12537_s9 + $0x60] sm:$0x1]  ;;  %v2194_v59 = vrot.slane %v13328_v9, 5 }
 0x1a5   : > { %10925 = vmatprep.mubr.msk.bf16.mxu1 %vm1120_vm2, %v9469_v52  ;;  %v2150_v52 = vrot.slane %v2148_v25, 4  ;;  %v9452_v4 = vrot.slane %v2066_v32, 9  ;;  %v2173_v25 = vrot.slane %v2171_v2, 4  ;;  %v2177_v30 = vrot.slane %v12274_v53, 5 }
 0x1a7   : > { %v2152_v39 = vsel %vm13130_vm6, %v2150_v52, %v2151_v49  ;;  %v2156_v44 = vsel %vm13130_vm6, %v9452_v4, %v2155_v22  ;;  %v2183_v22 = vrot.slane %v2181_v40, 4  ;;  %v2175_v36 = vsel %vm13130_vm6, %v2173_v25, %v2174_v24  ;;  %v12099_v52 = vld [vmem:[%s12537_s9 + $0x78] sm:$0xff]  }
 0x1a8   : > { %v9474_v57 = vcombine.low %v2149_v48, %v2152_v39  ;;  %v12275_v48 = vld [vmem:[%s12537_s9 + $0x74] sm:$0x1] }
 0x1a9   : > { %11190 = vmatmul.mubr.msk.bf16.gmra.mrb[60].mxu0 %vm1120_vm2, %v9888_v34  ;;  %v2067_v34 = vld [vmem:[%s12537_s9 + $0x50] sm:$0xe]  ;;  %v2190_v39 = vrot.slane %v12275_v48, 5  ;;  %v12278_v48 = vld [vmem:[%s12537_s9 + $0xb0] sm:$0x1] }
 0x1aa   : > { %11197 = vmatprep.mubr.msk.bf16.mxu0 %vm1120_vm2, %v12091_v21 }
 0x1ac   : > { %10926 = vmatmul.mubr.msk.bf16.vlgmr.msra.gmra.mrb[0].mxu1 %vm1120_vm2, %v9470_v5  ;;  %v9453_v5 = vrot.slane %v2067_v34, 9  ;;  %v2207_v34 = vrot.slane %v13358_v7, 5 }
 0x1ad   : > { %10929 = vmatprep.mubr.msk.bf16.mxu1 %vm1120_vm2, %v9471_v31  ;;  %10990 = vmatpush3.bf16.msra.mxu1 %v12123_v62  ;;  %v2161_v62 = vrot.slane %v13261_v45, 5  ;;  %v2164_v45 = vrot.slane %v12273_v20, 5  ;;  %v2170_v31 = vrot.slane %v2168_v33, 4 }
 0x1ae   : > { %10991 = vmatprep.subr.bf16.mxu1 %v12125_v42  ;;  %v2169_v27 = vsel %vm13130_vm6, %v9453_v5, %v2168_v33  ;;  %v12100_v33 = vld [vmem:[%s12537_s9 + $0x80] sm:$0xff]   ;;  %v12276_v5 = vld [vmem:[%s12537_s9 + $0x88] sm:$0x1] }
 0x1af   : > { %v2163_v21 = vrot.slane %v2161_v62, 4  ;;  %v2162_v11 = vsel %vm13130_vm6, %v2160_v26, %v2161_v62  ;;  %v2172_v15 = vsel %vm13130_vm6, %v2170_v31, %v2171_v2  ;;  %v2196_v62 = vrot.slane %v2194_v59, 4 }
 0x1b0   : > { %v9477_v37 = vcombine.low %v2169_v27, %v2172_v15  ;;  %v2203_v31 = vrot.slane %v12276_v5, 5  ;;  %v2209_v2 = vrot.slane %v2207_v34, 4  ;;  %v2220_v15 = vrot.slane %v13388_v10, 5 }
 0x1b1   : > { %10992 = vmatpush3.bf16.msra.mxu1 %v12125_v42  ;;  %11198 = vmatmul.mubr.msk.bf16.vlgmr.msra.gmra.mrb[0].mxu0 %vm1120_vm2, %v12092_v56  ;;  %v2165_v6 = vsel %vm13130_vm6, %v2163_v21, %v2164_v45  ;;  %v2068_v42 = vld [vmem:[%s12537_s9 + $0x64] sm:$0xe]  ;;  %v2176_v56 = vrot.slane %v2174_v24, 4  ;;  %v2213_v24 = vrot.slane %v13381_v43, 5 }
 0x1b2   : > { %11201 = vmatprep.mubr.msk.bf16.mxu0 %vm1120_vm2, %v12093_v3  ;;  %11262 = vmatpush3.bf16.msra.mxu0 %v13572_v28  ;;  %v2159_v28 = vsel %vm13130_vm6, %v2157_v8, %v2158_v63  ;;  %v9476_v35 = vcombine.low %v2162_v11, %v2165_v6  ;;  %v9454_v16 = vrot.slane %v2068_v42, 9  ;;  %v2184_v3 = vrot.slane %v13318_v0, 5 }
 0x1b3   : > { %11263 = vmatprep.subr.bf16.mxu0 %v12126_v46  ;;  %v9475_v12 = vcombine.low %v2156_v44, %v2159_v28  ;;  %v2178_v32 = vsel %vm13130_vm6, %v2176_v56, %v2177_v30  ;;  %v2200_v28 = vrot.slane %v13351_v60, 5  ;;  %v2210_v11 = vrot.slane %v13378_v41, 5  ;;  %v12277_v56 = vld [vmem:[%s12537_s9 + $0x9c] sm:$0x1] }
 0x1b4   : > { %10930 = vmatmul.mubr.msk.bf16.gmra.mrb[4].mxu1 %vm1120_vm2, %v9472_v23  ;;  %v2187_v23 = vrot.slane %v13321_v51, 5  ;;  %v2185_v0 = vsel %vm13130_vm6, %v2183_v22, %v2184_v3  ;;  %v9478_v49 = vcombine.low %v2175_v36, %v2178_v32  ;;  %v2186_v8 = vrot.slane %v2184_v3, 4  ;;  %v15422_v36 = vld [vmem:[#allocation7_spill] sm:$0xff] }
 0x1b5   : > { %10933 = vmatprep.mubr.msk.bf16.mxu1 %vm1120_vm2, %v9473_v1  ;;  %v2182_v1 = vsel %vm13130_vm6, %v9454_v16, %v2181_v40  ;;  %v9455_v51 = vrot.slane %v2069_v54, 9  ;;  %v2202_v45 = vrot.slane %v2200_v28, 4  ;;  %v2211_v41 = vsel %vm13130_vm6, %v2209_v2, %v2210_v11  ;;  %v12103_v40 = vld [vmem:[%s12537_s9 + $0xa0] sm:$0xff]   ;;  %v15421_v16 = vld [vmem:[#allocation6_spill] sm:$0xff]  ;;  %v2072_v54 = vld [vmem:[%s12537_s9 + $0xb4] sm:$0xe] }
 0x1b6   : > { %11264 = vmatpush3.bf16.msra.mxu0 %v12126_v46  ;;  %v12098_v46 = vld [vmem:[%s12537_s9 + $0x6c] sm:$0xff]   ;;  %v9479_v4 = vcombine.low %v2182_v1, %v2185_v0  ;;  %v2189_v63 = vrot.slane %v2187_v23, 4  ;;  %v2188_v9 = vsel %vm13130_vm6, %v2186_v8, %v2187_v23  ;;  %v2215_v25 = vrot.slane %v2213_v24, 4  ;;  %v15423_v0 = vld [vmem:[#allocation8_spill] sm:$0xff]  ;;  %v12279_v2 = vld [vmem:[%s12537_s9 + $0xc4] sm:$0x1] }
 0x1b7   : > { %v2204_v6 = vsel %vm13130_vm6, %v2202_v45, %v2203_v31  ;;  %v2216_v53 = vrot.slane %v12277_v56, 5  ;;  %v2222_v30 = vrot.slane %v2220_v15, 4  ;;  %v2223_v22 = vrot.slane %v15421_v16, 5  ;;  %v12104_v23 = vld [vmem:[%s12537_s9 + $0xa8] sm:$0xff]   ;;  %v12109_v56 = vld [vmem:[%s12537_s9 + $0xdc] sm:$0xff]  }
 0x1b8   : > { %v2191_v44 = vsel %vm13130_vm6, %v2189_v63, %v2190_v39  ;;  %v2226_v32 = vrot.slane %v15422_v36, 5  ;;  %v2229_v39 = vrot.slane %v12278_v48, 5  ;;  %v12111_v48 = vld [vmem:[%s12537_s9 + $0xf0] sm:$0xff]  }
 0x1b9   : > { %11202 = vmatmul.mubr.msk.bf16.gmra.mrb[4].mxu0 %vm1120_vm2, %v12094_v18  ;;  %v2197_v18 = vrot.slane %v13348_v19, 5  ;;  %v9480_v26 = vcombine.low %v2188_v9, %v2191_v44  ;;  %v2217_v3 = vsel %vm13130_vm6, %v2215_v25, %v2216_v53  ;;  %v2224_v1 = vsel %vm13130_vm6, %v2222_v30, %v2223_v22  ;;  %v2074_v53 = vld [vmem:[%s12537_s9 + $0xdc] sm:$0xe] }
 0x1ba   : > { %11205 = vmatprep.mubr.msk.bf16.mxu0 %vm1120_vm2, %v12095_v47  ;;  %v2195_v47 = vsel %vm13130_vm6, %v9455_v51, %v2194_v59  ;;  %v2233_v59 = vrot.slane %v15423_v0, 5  ;;  %v2225_v8 = vrot.slane %v2223_v22, 4  ;;  %v2228_v63 = vrot.slane %v2226_v32, 4 }
 0x1bb   : > { %v2198_v19 = vsel %vm13130_vm6, %v2196_v62, %v2197_v18  ;;  %v2199_v20 = vrot.slane %v2197_v18, 4  ;;  %v9458_v51 = vrot.slane %v2072_v54, 9  ;;  %v15424_v18 = vld [vmem:[#allocation9_spill] sm:$0xff]  ;;  %v9460_v36 = vrot.slane %v2074_v53, 9 }
 0x1bc   : > { %10934 = vmatmul.mubr.msk.bf16.gmra.mrb[8].mxu1 %vm1120_vm2, %v9474_v57  ;;  %v12101_v57 = vld [vmem:[%s12537_s9 + $0x8c] sm:$0xff]   ;;  %v9481_v21 = vcombine.low %v2195_v47, %v2198_v19  ;;  %v2235_v62 = vrot.slane %v2233_v59, 4  ;;  %v2236_v9 = vrot.slane %v15424_v18, 5  ;;  %v2227_v44 = vsel %vm13130_vm6, %v2225_v8, %v2226_v32  ;;  %v12106_v19 = vld [vmem:[%s12537_s9 + $0xbc] sm:$0xff]   ;;  %v12110_v54 = vld [vmem:[%s12537_s9 + $0xe4] sm:$0xff]  }
 0x1bd   : > { %10937 = vmatprep.mubr.msk.bf16.mxu1 %vm1120_vm2, %v9475_v12  ;;  %v2070_v12 = vld [vmem:[%s12537_s9 + $0x8c] sm:$0xe]  ;;  %v2201_v7 = vsel %vm13130_vm6, %v2199_v20, %v2200_v28  ;;  %v2230_v28 = vsel %vm13130_vm6, %v2228_v63, %v2229_v39  ;;  %v2073_v20 = vld [vmem:[%s12537_s9 + $0xc8] sm:$0xe]  ;;  %v15432_v8 = vld [vmem:[#allocation17_spill] sm:$0xff] }
 0x1be   : > { %v9456_v60 = vrot.slane %v2070_v12, 9  ;;  %v9482_v42 = vcombine.low %v2201_v7, %v2204_v6  ;;  %v15426_v12 = vld [vmem:[#allocation11_spill] sm:$0xff]  ;;  %v9486_v45 = vcombine.low %v2227_v44, %v2230_v28  ;;  %v2238_v31 = vrot.slane %v2236_v9, 4  ;;  %v12281_v44 = vld [vmem:[%s12537_s9 + $0xec] sm:$0x1] }
 0x1bf   : > { %v9459_v7 = vrot.slane %v2073_v20, 9  ;;  %v2272_v63 = vrot.slane %v15432_v8, 5  ;;  %v2075_v39 = vld [vmem:[%s12537_s9 + $0xf0] sm:$0xe]  ;;  %v2268_v28 = vrot.slane %v12281_v44, 5  ;;  %v2285_v20 = vrot.slane %v13538_v55, 5 }
 0x1c0   : > { %v2208_v27 = vsel %vm13130_vm6, %v9456_v60, %v2207_v34  ;;  %v2234_v34 = vsel %vm13130_vm6, %v9458_v51, %v2233_v59  ;;  %v15431_v59 = vld [vmem:[#allocation16_spill] sm:$0xff]  ;;  %v12116_v8 = vld [vmem:[%s12537_s9 + $0x120] sm:$0xff]  }
 0x1c1   : > { %11206 = vmatmul.mubr.msk.bf16.gmra.mrb[8].mxu0 %vm1120_vm2, %v12096_v17  ;;  %v12102_v17 = vld [vmem:[%s12537_s9 + $0x94] sm:$0xff]  }
 0x1c2   : > { %11209 = vmatprep.mubr.msk.bf16.mxu0 %vm1120_vm2, %v12097_v61  ;;  %v2071_v61 = vld [vmem:[%s12537_s9 + $0xa0] sm:$0xe] }
 0x1c3   : > { %v9457_v43 = vrot.slane %v2071_v61, 9  ;;  %v12108_v61 = vld [vmem:[%s12537_s9 + $0xd0] sm:$0xff]  }
 0x1c4   : > { %10938 = vmatmul.mubr.msk.bf16.gmra.mrb[12].mxu1 %vm1120_vm2, %v9476_v35  ;;  %v9483_v35 = vcombine.low %v2208_v27, %v2211_v41 }
 0x1c5   : > { %10941 = vmatprep.mubr.msk.bf16.mxu1 %vm1120_vm2, %v9477_v37  ;;  %v2212_v37 = vrot.slane %v2210_v11, 4  ;;  %v2242_v11 = vrot.slane %v12279_v2, 5  ;;  %v12282_v2 = vld [vmem:[%s12537_s9 + $0x100] sm:$0x1] }
 0x1c7   : > { %v2214_v10 = vsel %vm13130_vm6, %v2212_v37, %v2213_v24  ;;  %v15427_v24 = vld [vmem:[#allocation12_spill] sm:$0xff]  ;;  %v15429_v37 = vld [vmem:[#allocation14_spill] sm:$0xff] }
 0x1c8   : > { %v2259_v25 = vrot.slane %v15429_v37, 5  ;;  %v12115_v37 = vld [vmem:[%s12537_s9 + $0x118] sm:$0xff]  }
 0x1c9   : > { %11210 = vmatmul.mubr.msk.bf16.gmra.mrb[12].mxu0 %vm1120_vm2, %v12098_v46  ;;  %v2221_v46 = vsel %vm13130_vm6, %v9457_v43, %v2220_v15  ;;  %v15428_v15 = vld [vmem:[#allocation13_spill] sm:$0xff] }
 0x1ca   : > { %11213 = vmatprep.mubr.msk.bf16.mxu0 %vm1120_vm2, %v12099_v52  ;;  %v12105_v52 = vld [vmem:[%s12537_s9 + $0xb4] sm:$0xff]   ;;  %v2261_v32 = vrot.slane %v2259_v25, 4 }
 0x1cc   : > { %10942 = vmatmul.mubr.msk.bf16.gmra.mrb[16].mxu1 %vm1120_vm2, %v9478_v49  ;;  %v9484_v49 = vcombine.low %v2214_v10, %v2217_v3  ;;  %v12280_v10 = vld [vmem:[%s12537_s9 + $0xd8] sm:$0x1] }
 0x1cd   : > { %10945 = vmatprep.mubr.msk.bf16.mxu1 %vm1120_vm2, %v9479_v4  ;;  %v9485_v4 = vcombine.low %v2221_v46, %v2224_v1  ;;  %v2255_v3 = vrot.slane %v12280_v10, 5  ;;  %v2301_v10 = vrot.slane %v13593_v13, 5 }
 0x1d1   : > { %11214 = vmatmul.mubr.msk.bf16.gmra.mrb[16].mxu0 %vm1120_vm2, %v12100_v33  ;;  %v15425_v33 = vld [vmem:[#allocation10_spill] sm:$0xff] }
 0x1d2   : > { %11217 = vmatprep.mubr.msk.bf16.mxu0 %vm1120_vm2, %v12101_v57  ;;  %v2239_v47 = vrot.slane %v15425_v33, 5  ;;  %v2237_v57 = vsel %vm13130_vm6, %v2235_v62, %v2236_v9  ;;  %v9461_v33 = vrot.slane %v2075_v39, 9  ;;  %v12118_v39 = vld [vmem:[%s12537_s9 + $0x12c] sm:$0xff]  }
 0x1d3   : > { %v9487_v5 = vcombine.low %v2234_v34, %v2237_v57  ;;  %v2278_v34 = vrot.slane %v13531_v58, 5 }
 0x1d4   : > { %10946 = vmatmul.mubr.msk.bf16.gmra.mrb[20].mxu1 %vm1120_vm2, %v9480_v26  ;;  %v2246_v26 = vrot.slane %v15426_v12, 5  ;;  %v2241_v60 = vrot.slane %v2239_v47, 4  ;;  %v2240_v27 = vsel %vm13130_vm6, %v2238_v31, %v2239_v47  ;;  %v2274_v47 = vrot.slane %v2272_v63, 4 }
 0x1d5   : > { %10949 = vmatprep.mubr.msk.bf16.mxu1 %vm1120_vm2, %v9481_v21  ;;  %v12107_v21 = vld [vmem:[%s12537_s9 + $0xc8] sm:$0xff]  }
 0x1d6   : > { %v2248_v6 = vrot.slane %v2246_v26, 4  ;;  %v2243_v41 = vsel %vm13130_vm6, %v2241_v60, %v2242_v11  ;;  %v2280_v60 = vrot.slane %v2278_v34, 4  ;;  %v2281_v11 = vrot.slane %v12282_v2, 5  ;;  %v12290_v2 = vld [vmem:[%s12537_s9 + $0x13c] sm:$0x1] }
 0x1d7   : > { %v9488_v43 = vcombine.low %v2240_v27, %v2243_v41  ;;  %v2291_v41 = vrot.slane %v13561_v14, 5  ;;  %v12284_v14 = vld [vmem:[%s12537_s9 + $0x114] sm:$0x1] }
 0x1d8   : > { %v2282_v27 = vsel %vm13130_vm6, %v2280_v60, %v2281_v11  ;;  %v2320_v11 = vrot.slane %v12290_v2, 5  ;;  %v10072_v2 = vld [vmem:[%s12537_s9 + $0x5c] sm:$0xf] }
 0x1d9   : > { %11218 = vmatmul.mubr.msk.bf16.gmra.mrb[20].mxu0 %vm1120_vm2, %v12102_v17  ;;  %v2249_v17 = vrot.slane %v15427_v24, 5  ;;  %v2287_v24 = vrot.slane %v2285_v20, 4  ;;  %v2293_v53 = vrot.slane %v2291_v41, 4 }
 0x1da   : > { %11221 = vmatprep.mubr.msk.bf16.mxu0 %vm1120_vm2, %v12103_v40  ;;  %v2252_v40 = vrot.slane %v15428_v15, 5  ;;  %v2077_v15 = vld [vmem:[%s12537_s9 + $0x118] sm:$0xe] }
 0x1db   : > { %v2251_v16 = vrot.slane %v2249_v17, 4 }
 0x1dc   : > { %10950 = vmatmul.mubr.msk.bf16.gmra.mrb[24].mxu1 %vm1120_vm2, %v9482_v42  ;;  %v2247_v42 = vsel %vm13130_vm6, %v9459_v7, %v2246_v26  ;;  %v2254_v22 = vrot.slane %v2252_v40, 4  ;;  %v12112_v26 = vld [vmem:[%s12537_s9 + $0xf8] sm:$0xff]  }
 0x1dd   : > { %10953 = vmatprep.mubr.msk.bf16.mxu1 %vm1120_vm2, %v9483_v35  ;;  %v2250_v35 = vsel %vm13130_vm6, %v2248_v6, %v2249_v17  ;;  %v2253_v1 = vsel %vm13130_vm6, %v2251_v16, %v2252_v40  ;;  %v2288_v17 = vrot.slane %v13558_v50, 5  ;;  %v12283_v40 = vld [vmem:[%s12537_s9 + $0x11c] sm:$0xf]  ;;  %v12114_v50 = vld [vmem:[%s12537_s9 + $0x10c] sm:$0xff]  }
 0x1de   : > { %v9489_v30 = vcombine.low %v2247_v42, %v2250_v35  ;;  %v2256_v0 = vsel %vm13130_vm6, %v2254_v22, %v2255_v3  ;;  %v10059_v3 = vld [vmem:[%s12537_s9 + $0x28] sm:$0xf] }
 0x1df   : > { %v9490_v51 = vcombine.low %v2253_v1, %v2256_v0  ;;  %v2289_v35 = vsel %vm13130_vm6, %v2287_v24, %v2288_v17 }
 0x1e1   : > { %11222 = vmatmul.mubr.msk.bf16.gmra.mrb[24].mxu0 %vm1120_vm2, %v12104_v23  ;;  %v15430_v23 = vld [vmem:[#allocation15_spill] sm:$0xff] }
 0x1e2   : > { %11225 = vmatprep.mubr.msk.bf16.mxu0 %vm1120_vm2, %v12105_v52  ;;  %v2262_v46 = vrot.slane %v15430_v23, 5  ;;  %v2265_v52 = vrot.slane %v15431_v59, 5  ;;  %v10060_v23 = vld [vmem:[%s12537_s9 + $0x2c] sm:$0xf] }
 0x1e3   : > { %v2078_v59 = vld [vmem:[%s12537_s9 + $0x12c] sm:$0xe] }
 0x1e4   : > { %10954 = vmatmul.mubr.msk.bf16.gmra.mrb[28].mxu1 %vm1120_vm2, %v9484_v49  ;;  %v2260_v49 = vsel %vm13130_vm6, %v9460_v36, %v2259_v25  ;;  %v2264_v18 = vrot.slane %v2262_v46, 4  ;;  %v2267_v9 = vrot.slane %v2265_v52, 4  ;;  %v12285_v36 = vld [vmem:[%s12537_s9 + $0x124] sm:$0xf] }
 0x1e5   : > { %10957 = vmatprep.mubr.msk.bf16.mxu1 %vm1120_vm2, %v9485_v4  ;;  %v2263_v4 = vsel %vm13130_vm6, %v2261_v32, %v2262_v46  ;;  %v2304_v32 = vrot.slane %v12285_v36, 5 }
 0x1e6   : > { %v9491_v62 = vcombine.low %v2260_v49, %v2263_v4  ;;  %v2266_v57 = vsel %vm13130_vm6, %v2264_v18, %v2265_v52  ;;  %v2269_v12 = vsel %vm13130_vm6, %v2267_v9, %v2268_v28  ;;  %v12286_v52 = vld [vmem:[%s12537_s9 + $0x130] sm:$0xf]  ;;  %v6565_v49 = vshrl.u32 %v10059_v3, 16  ;;  %v12287_v18 = vld [vmem:[%s12537_s9 + $0x128] sm:$0x1] }
 0x1e7   : > { %v9492_v58 = vcombine.low %v2266_v57, %v2269_v12  ;;  %v6568_v4 = vshll.u32 %v10059_v3, 16  ;;  %v2307_v9 = vrot.slane %v12287_v18, 5  ;;  %v12289_v57 = vld [vmem:[%s12537_s9 + $0x138] sm:$0xf]  ;;  %v10066_v3 = vld [vmem:[%s12537_s9 + $0x44] sm:$0xf] }
 0x1e8   : > { %v2317_v12 = vrot.slane %v12289_v57, 5 }
 0x1e9   : > { %11226 = vmatmul.mubr.msk.bf16.gmra.mrb[28].mxu0 %vm1120_vm2, %v12106_v19  ;;  %v2275_v19 = vrot.slane %v13528_v29, 5 }
 0x1ea   : > { %11229 = vmatprep.mubr.msk.bf16.mxu0 %vm1120_vm2, %v12107_v21  ;;  %v2273_v21 = vsel %vm13130_vm6, %v9461_v33, %v2272_v63  ;;  %v6574_v63 = vshll.u32 %v10060_v23, 16  ;;  %v9464_v33 = vrot.slane %v2078_v59, 9 }
 0x1eb   : > { %v2276_v29 = vsel %vm13130_vm6, %v2274_v47, %v2275_v19  ;;  %v2277_v31 = vrot.slane %v2275_v19, 4  ;;  %v12288_v47 = vld [vmem:[%s12537_s9 + $0x134] sm:$0xf] }
 0x1ec   : > { %10958 = vmatmul.mubr.msk.bf16.gmra.mrb[32].mxu1 %vm1120_vm2, %v9486_v45  ;;  %v12113_v45 = vld [vmem:[%s12537_s9 + $0x104] sm:$0xff]   ;;  %v9493_v7 = vcombine.low %v2273_v21, %v2276_v29  ;;  %v2314_v19 = vrot.slane %v12288_v47, 5  ;;  %v6567_v21 = vrot.slane %v6565_v49, 4  ;;  %v6570_v29 = vrot.slane %v6568_v4, 5  ;;  %v10070_v49 = vld [vmem:[%s12537_s9 + $0x54] sm:$0xf] }
 0x1ed   : > { %10961 = vmatprep.mubr.msk.bf16.mxu1 %vm1120_vm2, %v9487_v5  ;;  %v2076_v5 = vld [vmem:[%s12537_s9 + $0x104] sm:$0xe]  ;;  %v2279_v55 = vsel %vm13130_vm6, %v2277_v31, %v2278_v34  ;;  %v12121_v47 = vld [vmem:[%s12537_s9 + $0x148] sm:$0xff]  }
 0x1ee   : > { %v9462_v6 = vrot.slane %v2076_v5, 9  ;;  %v9494_v25 = vcombine.low %v2279_v55, %v2282_v27  ;;  %v10062_v5 = vld [vmem:[%s12537_s9 + $0x34] sm:$0xf]  ;;  %v2316_v24 = vrot.slane %v2314_v19, 4  ;;  %v10065_v27 = vld [vmem:[%s12537_s9 + $0x40] sm:$0xf] }
 0x1f0   : > { %v2286_v42 = vsel %vm13130_vm6, %v9462_v6, %v2285_v20  ;;  %v13910_v20 = vrot.slane %v6574_v63, 5  ;;  %v6628_v63 = vshll.u32 %v10066_v3, 16 }
 0x1f1   : > { %11230 = vmatmul.mubr.msk.bf16.gmra.mrb[32].mxu0 %vm1120_vm2, %v12108_v61  ;;  %v2298_v61 = vrot.slane %v12283_v40, 5  ;;  %v9495_v16 = vcombine.low %v2286_v42, %v2289_v35  ;;  %v6571_v40 = vor.u32 %v6570_v29, %v6567_v21  ;;  %v6598_v35 = vshrl.u32 %v10062_v5, 16  ;;  %v10071_v21 = vld [vmem:[%s12537_s9 + $0x58] sm:$0xf] }
 0x1f2   : > { %11233 = vmatprep.mubr.msk.bf16.mxu0 %vm1120_vm2, %v12109_v56  ;;  %v2290_v56 = vrot.slane %v2288_v17, 4  ;;  %v12122_v29 = vld [vmem:[%s12537_s9 + $0x154] sm:$0xff]  }
 0x1f3   : > { %v2300_v22 = vrot.slane %v2298_v61, 4  ;;  %v6600_v59 = vrot.slane %v6598_v35, 4 }
 0x1f4   : > { %10962 = vmatmul.mubr.msk.bf16.gmra.mrb[36].mxu1 %vm1120_vm2, %v9488_v43  ;;  %v2294_v43 = vrot.slane %v12284_v14, 5  ;;  %v2292_v46 = vsel %vm13130_vm6, %v2290_v56, %v2291_v41  ;;  %v12120_v56 = vld [vmem:[%s12537_s9 + $0x140] sm:$0xff]   ;;  %v6622_v14 = vshrl.u32 %v10065_v27, 16 }
 0x1f5   : > { %10965 = vmatprep.mubr.msk.bf16.mxu1 %vm1120_vm2, %v9489_v30  ;;  %v9463_v30 = vrot.slane %v2077_v15, 9  ;;  %v2302_v0 = vsel %vm13130_vm6, %v2300_v22, %v2301_v10  ;;  %v2319_v15 = vrot.slane %v2317_v12, 4 }
 0x1f6   : > { %v2295_v1 = vsel %vm13130_vm6, %v2293_v53, %v2294_v43  ;;  %v6618_v53 = vshll.u32 %v10065_v27, 16 }
 0x1f7   : > { %v2299_v13 = vsel %vm13130_vm6, %v9463_v30, %v2298_v61  ;;  %v9496_v44 = vcombine.low %v2292_v46, %v2295_v1  ;;  %v6594_v61 = vshll.u32 %v10062_v5, 16  ;;  %v13938_v30 = vsel %vm13130_vm6, %v2316_v24, %v2317_v12  ;;  %v10067_v1 = vld [vmem:[%s12537_s9 + $0x48] sm:$0xf] }
 0x1f8   : > { %v9497_v28 = vcombine.low %v2299_v13, %v2302_v0  ;;  %v10069_v13 = vld [vmem:[%s12537_s9 + $0x50] sm:$0xf]  ;;  %v13951_v4 = vrot.slane %v6618_v53, 5 }
 0x1f9   : > { %11234 = vmatmul.mubr.msk.bf16.gmra.mrb[36].mxu0 %vm1120_vm2, %v12110_v54  ;;  %v2311_v54 = vrot.slane %v12286_v52, 5  ;;  %v13944_v46 = vrot.slane %v6594_v61, 5  ;;  %v6656_v18 = vshll.u32 %v10069_v13, 16  ;;  %v6682_v61 = vshll.u32 %v10072_v2, 16 }
 0x1fa   : > { %11237 = vmatprep.mubr.msk.bf16.mxu0 %vm1120_vm2, %v12111_v48  ;;  %v6578_v48 = vshrl.u32 %v10060_v23, 16  ;;  %v6572_v23 = vrot.slane %v6571_v40, 4 }
 0x1fb   : > { %v2313_v34 = vrot.slane %v2311_v54, 4  ;;  %v2312_v6 = vsel %vm13130_vm6, %v9464_v33, %v2311_v54  ;;  %v6666_v33 = vshrl.u32 %v10070_v49, 16  ;;  %v6658_v24 = vrot.slane %v6656_v18, 5 }
 0x1fc   : > { %10966 = vmatmul.mubr.msk.bf16.gmra.mrb[40].mxu1 %vm1120_vm2, %v9490_v51  ;;  %v2303_v51 = vrot.slane %v2301_v10, 4  ;;  %v10063_v10 = vld [vmem:[%s12537_s9 + $0x38] sm:$0x1] }
 0x1fd   : > { %10969 = vmatprep.mubr.msk.bf16.mxu1 %vm1120_vm2, %v9491_v62  ;;  %v2306_v62 = vrot.slane %v2304_v32, 4  ;;  %v2315_v41 = vsel %vm13130_vm6, %v2313_v34, %v2314_v19  ;;  %v6577_v34 = vsel %vm12553_vm3, %v6572_v23, %v13910_v20  ;;  %v6668_v27 = vrot.slane %v6666_v33, 4  ;;  %v10073_v23 = vld [vmem:[%s12537_s9 + $0x60] sm:$0x1] }
 0x1fe   : > { %v2305_v31 = vsel %vm13130_vm6, %v2303_v51, %v2304_v32  ;;  %v9499_v36 = vcombine.low %v2312_v6, %v2315_v41  ;;  %v2321_v32 = vsel %vm13130_vm6, %v2319_v15, %v2320_v11  ;;  %v6642_v51 = vshrl.u32 %v10067_v1, 16  ;;  %v10068_v11 = vld [vmem:[%s12537_s9 + $0x4c] sm:$0x1] }
 0x1ff   : > { %v2308_v60 = vsel %vm13130_vm6, %v2306_v62, %v2307_v9  ;;  %v6653_v62 = vshrl.u32 %v10069_v13, 16  ;;  %v9500_v9 = vcombine.low %v13938_v30, %v2321_v32  ;;  %v6672_v41 = vshll.u32 %v10071_v21, 16 }
 0x200   : > { %v9498_v43 = vcombine.low %v2305_v31, %v2308_v60  ;;  %v13966_v31 = vrot.slane %v6628_v63, 5  ;;  %v6676_v15 = vshrl.u32 %v10071_v21, 16  ;;  %v12128_v63 = vld [vmem:[%s12537_s9 + $0x1c] sm:$0xff]   ;;  %v6692_v33 = vshll.u32 %v10073_v23, 16 }
 0x201   : > { %11238 = vmatmul.mubr.msk.bf16.gmra.mrb[40].mxu0 %vm1120_vm2, %v12112_v26  ;;  %v10061_v26 = vld [vmem:[%s12537_s9 + $0x30] sm:$0xf]  ;;  %v6655_v6 = vrot.slane %v6653_v62, 4 }
 0x202   : > { %11241 = vmatprep.mubr.msk.bf16.mxu0 %vm1120_vm2, %v12113_v45  ;;  %v6580_v45 = vrot.slane %v6578_v48, 4  ;;  %v6584_v17 = vshll.u32 %v10061_v26, 16  ;;  %v6588_v55 = vshrl.u32 %v10061_v26, 16  ;;  %v6632_v48 = vshrl.u32 %v10066_v3, 16 }
 0x203   : > { %v6601_v26 = vor.u32 %v6600_v59, %v13944_v46  ;;  %v6678_v32 = vrot.slane %v6676_v15, 4  ;;  %v6694_v15 = vrot.slane %v6692_v33, 5 }
 0x204   : > { %10970 = vmatmul.mubr.msk.bf16.gmra.mrb[44].mxu1 %vm1120_vm2, %v9492_v58  ;;  %v13916_v58 = vld [vmem:[%s15384_s1 + $0x80] sm:$0xff]   ;;  %v6581_v42 = vor.u32 %v6580_v45, %v13910_v20  ;;  %v6590_v22 = vrot.slane %v6588_v55, 4  ;;  %v6634_v60 = vrot.slane %v6632_v48, 4  ;;  %v6644_v20 = vrot.slane %v6642_v51, 4  ;;  %v12129_v48 = vld [vmem:[%s12537_s9 + $0x28] sm:$0xff]  }
 0x205   : > { %10973 = vmatprep.mubr.msk.bf16.mxu1 %vm1120_vm2, %v9493_v7  ;;  %v10064_v7 = vld [vmem:[%s12537_s9 + $0x3c] sm:$0xf]  ;;  %11329 = vmatprep.subr.bf16.mxu0 %v13916_v58 }
 0x206   : > { %v6582_v0 = vrot.slane %v6581_v42, 4 }
 0x209   : > { %11242 = vmatmul.mubr.msk.bf16.gmra.mrb[44].mxu0 %vm1120_vm2, %v12114_v50  ;;  %v12119_v50 = vld [vmem:[%s12537_s9 + $0x134] sm:$0xff]  }
 0x20a   : > { %11245 = vmatprep.mubr.msk.bf16.mxu0 %vm1120_vm2, %v12115_v37  ;;  %v6609_v37 = vshrl.u32 %v10064_v7, 16 }
 0x20c   : > { %10974 = vmatmul.mubr.msk.bf16.gmra.mrb[48].mxu1 %vm1120_vm2, %v9494_v25  ;;  %v6612_v25 = vshll.u32 %v10064_v7, 16  ;;  %v6611_v52 = vrot.slane %v6609_v37, 4  ;;  %v6602_v37 = vrot.slane %v6601_v26, 4 }
 0x20d   : > { %10977 = vmatprep.mubr.msk.bf16.mxu1 %vm1120_vm2, %v9495_v16  ;;  %v6586_v16 = vrot.slane %v6584_v17, 5  ;;  %v12127_v17 = vld [vmem:[%s12537_s9 + $0x14] sm:$0xff]  }
 0x20e   : > { %v6614_v54 = vrot.slane %v6612_v25, 5  ;;  %v6648_v25 = vshll.u32 %v10068_v11, 16 }
 0x20f   : > { %v6587_v57 = vsel %vm12553_vm3, %v6582_v0, %v6586_v16  ;;  %v6591_v12 = vor.u32 %v6590_v22, %v6586_v16  ;;  %v10075_v16 = vld [vmem:[%s12537_s9 + $0x68] sm:$0xf]  ;;  %v12124_v22 = vld [vmem:[%s12537_s9 + $0x15c] sm:$0xff]  }
 0x210   : > { %v6615_v45 = vor.u32 %v6614_v54, %v6611_v52  ;;  %v10143_v35 = vcombine.low %v6577_v34, %v6587_v57  ;;  %v6650_v18 = vrot.slane %v6648_v25, 5 }
 0x211   : > { %11246 = vmatmul.mubr.msk.bf16.gmra.mrb[48].mxu0 %vm1120_vm2, %v12116_v8  ;;  %v6624_v8 = vrot.slane %v6622_v14, 4  ;;  %v6592_v42 = vrot.slane %v6591_v12, 4 }
 0x212   : > { %11249 = vmatprep.mubr.msk.bf16.mxu0 %vm1120_vm2, %v12118_v39  ;;  %v6638_v39 = vshll.u32 %v10067_v1, 16  ;;  %v6616_v53 = vrot.slane %v6615_v45, 4  ;;  %v13988_v1 = vrot.slane %v6682_v61, 5 }
 0x213   : > { %v6625_v5 = vor.u32 %v6624_v8, %v13951_v4  ;;  %v6597_v52 = vsel %vm12553_vm3, %v6592_v42, %v13944_v46  ;;  %v6710_v8 = vshrl.u32 %v10075_v16, 16  ;;  %v10078_v42 = vld [vmem:[%s12537_s9 + $0x74] sm:$0x1] }
 0x214   : > { %10978 = vmatmul.mubr.msk.bf16.gmra.mrb[52].mxu1 %vm1120_vm2, %v9496_v44  ;;  %v6604_v44 = vshll.u32 %v10063_v10, 16  ;;  %v13970_v7 = vrot.slane %v6638_v39, 5  ;;  %v6659_v10 = vor.u32 %v6658_v24, %v6655_v6  ;;  %v6621_v39 = vsel %vm12553_vm3, %v6616_v53, %v13951_v4  ;;  %v10079_v24 = vld [vmem:[%s12537_s9 + $0x78] sm:$0xf] }
 0x215   : > { %10981 = vmatprep.mubr.msk.bf16.mxu1 %vm1120_vm2, %v9497_v28  ;;  %v6662_v28 = vshll.u32 %v10070_v49, 16  ;;  %v6626_v14 = vrot.slane %v6625_v5, 4  ;;  %v6706_v49 = vshll.u32 %v10075_v16, 16  ;;  %v6712_v21 = vrot.slane %v6710_v8, 4 }
 0x216   : > { %v6606_v40 = vrot.slane %v6604_v44, 5  ;;  %v6645_v30 = vor.u32 %v6644_v20, %v13970_v7  ;;  %v6660_v46 = vrot.slane %v6659_v10, 4  ;;  %v6744_v53 = vshll.u32 %v10079_v24, 16 }
 0x217   : > { %v13973_v55 = vrot.slane %v6662_v28, 5  ;;  %v6631_v51 = vsel %vm12553_vm3, %v6626_v14, %v13966_v31  ;;  %v14009_v26 = vrot.slane %v6706_v49, 5  ;;  %v12160_v14 = vld [vmem:[%s15384_s1 + $0x88] sm:$0xff]  }
 0x218   : > { %v6607_v54 = vsel %vm12553_vm3, %v6602_v37, %v6606_v40  ;;  %v6646_v44 = vrot.slane %v6645_v30, 4  ;;  %v10080_v40 = vld [vmem:[%s12537_s9 + $0x7c] sm:$0xf]  ;;  %v12130_v37 = vld [vmem:[%s12537_s9 + $0x30] sm:$0xff]   ;;  %v6746_v8 = vrot.slane %v6744_v53, 5 }
 0x219   : > { %11250 = vmatmul.mubr.msk.bf16.gmra.mrb[52].mxu0 %vm1120_vm2, %v12119_v50  ;;  %v6686_v50 = vshrl.u32 %v10072_v2, 16  ;;  %v6669_v3 = vor.u32 %v6668_v27, %v13973_v55  ;;  %v10144_v5 = vcombine.low %v6597_v52, %v6607_v54  ;;  %v10145_v2 = vcombine.low %v6621_v39, %v6631_v51  ;;  %v10084_v52 = vld [vmem:[%s12537_s9 + $0x8c] sm:$0xf] }
 0x21a   : > { %11253 = vmatprep.mubr.msk.bf16.mxu0 %vm1120_vm2, %v12120_v56  ;;  %v10074_v56 = vld [vmem:[%s12537_s9 + $0x64] sm:$0xf]  ;;  %v6651_v20 = vsel %vm12553_vm3, %v6646_v44, %v6650_v18  ;;  %v6665_v6 = vsel %vm12553_vm3, %v6660_v46, %v13973_v55  ;;  %v6750_v30 = vshll.u32 %v10080_v40, 16  ;;  %v6754_v16 = vshrl.u32 %v10080_v40, 16 }
 0x21b   : > { %v6688_v13 = vrot.slane %v6686_v50, 4  ;;  %v6697_v0 = vshrl.u32 %v10074_v56, 16  ;;  %v6700_v59 = vshll.u32 %v10074_v56, 16  ;;  %v6670_v28 = vrot.slane %v6669_v3, 4 }
 0x21c   : > { %10982 = vmatmul.mubr.msk.bf16.gmra.mrb[56].mxu1 %vm1120_vm2, %v9498_v43  ;;  %v6635_v43 = vor.u32 %v6634_v60, %v13966_v31  ;;  %v6741_v56 = vshrl.u32 %v10079_v24, 16  ;;  %v6756_v39 = vrot.slane %v6754_v16, 4  ;;  %v6788_v44 = vshll.u32 %v10084_v52, 16 }
 0x21d   : > { %10985 = vmatprep.mubr.msk.bf16.mxu1 %vm1120_vm2, %v9499_v36  ;;  %v13985_v36 = vrot.slane %v6672_v41, 5  ;;  %v6689_v57 = vor.u32 %v6688_v13, %v13988_v1  ;;  %v6699_v12 = vrot.slane %v6697_v0, 4  ;;  %v6702_v4 = vrot.slane %v6700_v59, 5  ;;  %v10082_v59 = vld [vmem:[%s12537_s9 + $0x84] sm:$0xf] }
 0x21e   : > { %v6636_v62 = vrot.slane %v6635_v43, 4  ;;  %v12131_v43 = vld [vmem:[%s12537_s9 + $0x3c] sm:$0xff]   ;;  %v6736_v0 = vshll.u32 %v10078_v42, 16  ;;  %v6774_v18 = vshrl.u32 %v10082_v59, 16  ;;  %v6790_v24 = vrot.slane %v6788_v44, 5 }
 0x21f   : > { %v6679_v34 = vor.u32 %v6678_v32, %v13985_v36  ;;  %v6690_v41 = vrot.slane %v6689_v57, 4  ;;  %v6703_v61 = vor.u32 %v6702_v4, %v6699_v12 }
 0x220   : > { %v6641_v11 = vsel %vm12553_vm3, %v6636_v62, %v13970_v7  ;;  %v6713_v7 = vor.u32 %v6712_v21, %v14009_v26  ;;  %v6738_v4 = vrot.slane %v6736_v0, 5 }
 0x221   : > { %11254 = vmatmul.mubr.msk.bf16.gmra.mrb[56].mxu0 %vm1120_vm2, %v12121_v47  ;;  %v10077_v47 = vld [vmem:[%s12537_s9 + $0x70] sm:$0xf]  ;;  %v6680_v27 = vrot.slane %v6679_v34, 4  ;;  %v6695_v32 = vsel %vm12553_vm3, %v6690_v41, %v6694_v15  ;;  %v6704_v23 = vrot.slane %v6703_v61, 4  ;;  %v12132_v34 = vld [vmem:[%s12537_s9 + $0x44] sm:$0xff]  }
 0x222   : > { %11257 = vmatprep.mubr.msk.bf16.mxu0 %vm1120_vm2, %v12122_v29  ;;  %v6726_v31 = vshll.u32 %v10077_v47, 16  ;;  %v6730_v60 = vshrl.u32 %v10077_v47, 16  ;;  %v6714_v54 = vrot.slane %v6713_v7, 4  ;;  %v10089_v61 = vld [vmem:[%s12537_s9 + $0xa0] sm:$0xf] }
 0x223   : > { %v6685_v3 = vsel %vm12553_vm3, %v6680_v27, %v13988_v1  ;;  %v6743_v1 = vrot.slane %v6741_v56, 4  ;;  %v6829_v16 = vshrl.u32 %v10089_v61, 16 }
 0x224   : > { %10986 = vmatmul.mubr.msk.bf16.gmra.mrb[60].mxu1 %vm1120_vm2, %v9500_v9  ;;  %v10076_v9 = vld [vmem:[%s12537_s9 + $0x6c] sm:$0xf]  ;;  %v14031_v55 = vrot.slane %v6726_v31, 5  ;;  %v6732_v25 = vrot.slane %v6730_v60, 4  ;;  %v10148_v46 = vcombine.low %v6685_v3, %v6695_v32  ;;  %v10083_v60 = vld [vmem:[%s12537_s9 + $0x88] sm:$0x1] }
 0x225   : > { %10993 = vmatprep.mubr.msk.bf16.mxu1 %vm1120_vm2, %v12127_v17  ;;  %v6716_v29 = vshll.u32 %v10076_v9, 16  ;;  %v6720_v45 = vshrl.u32 %v10076_v9, 16  ;;  %v6675_v17 = vsel %vm12553_vm3, %v6670_v28, %v13985_v36  ;;  %v10081_v36 = vld [vmem:[%s12537_s9 + $0x80] sm:$0xf]  ;;  %v6785_v9 = vshrl.u32 %v10084_v52, 16  ;;  %v12134_v32 = vld [vmem:[%s12537_s9 + $0x58] sm:$0xff]  }
 0x226   : > { %v10147_v10 = vcombine.low %v6665_v6, %v6675_v17  ;;  %v6733_v49 = vor.u32 %v6732_v25, %v14031_v55  ;;  %v6760_v51 = vshll.u32 %v10081_v36, 16  ;;  %v6764_v62 = vshrl.u32 %v10081_v36, 16  ;;  %v10087_v17 = vld [vmem:[%s12537_s9 + $0x98] sm:$0xf]  ;;  %v12135_v52 = vld [vmem:[%s12537_s9 + $0x64] sm:$0xff]  }
 0x227   : > { %v14027_v50 = vrot.slane %v6716_v29, 5  ;;  %v6709_v28 = vsel %vm12553_vm3, %v6704_v23, %v14009_v26  ;;  %v6747_v21 = vor.u32 %v6746_v8, %v6743_v1  ;;  %v10086_v29 = vld [vmem:[%s12537_s9 + $0x94] sm:$0xf]  ;;  %v6787_v6 = vrot.slane %v6785_v9, 4  ;;  %v10091_v9 = vld [vmem:[%s12537_s9 + $0xa8] sm:$0xf] }
 0x228   : > { %v6762_v26 = vrot.slane %v6760_v51, 5  ;;  %v6804_v15 = vshll.u32 %v10086_v29, 16  ;;  %v6808_v40 = vshrl.u32 %v10086_v29, 16  ;;  %v6814_v56 = vshll.u32 %v10087_v17, 16  ;;  %v10088_v51 = vld [vmem:[%s12537_s9 + $0x9c] sm:$0x1] }
 0x229   : > { %11258 = vmatmul.mubr.msk.bf16.gmra.mrb[60].mxu0 %vm1120_vm2, %v12124_v22  ;;  %v10146_v22 = vcombine.low %v6641_v11, %v6651_v20  ;;  %v6719_v57 = vsel %vm12553_vm3, %v6714_v54, %v14027_v50  ;;  %v6776_v20 = vrot.slane %v6774_v18, 4  ;;  %v6748_v42 = vrot.slane %v6747_v21, 4 }
 0x22a   : > { %11265 = vmatprep.mubr.msk.bf16.mxu0 %vm1120_vm2, %v10143_v35  ;;  %v6722_v35 = vrot.slane %v6720_v45, 4  ;;  %v12133_v45 = vld [vmem:[%s12537_s9 + $0x50] sm:$0xff]   ;;  %v10149_v7 = vcombine.low %v6709_v28, %v6719_v57  ;;  %v6818_v53 = vshrl.u32 %v10087_v17, 16  ;;  %v6806_v3 = vrot.slane %v6804_v15, 5  ;;  %v12137_v15 = vld [vmem:[%s12537_s9 + $0x78] sm:$0xff]  }
 0x22b   : > { %v6810_v36 = vrot.slane %v6808_v40, 4  ;;  %v14094_v1 = vrot.slane %v6814_v56, 5 }
 0x22c   : > { %10994 = vmatmul.mubr.msk.bf16.vlgmr.msra.gmra.mrb[0].mxu1 %vm1120_vm2, %v12128_v63  ;;  %v6723_v13 = vor.u32 %v6722_v35, %v14027_v50  ;;  %v10085_v63 = vld [vmem:[%s12537_s9 + $0x90] sm:$0xf]  ;;  %v6780_v35 = vshll.u32 %v10083_v60, 16  ;;  %v6820_v8 = vrot.slane %v6818_v53, 4 }
 0x22d   : > { %10997 = vmatprep.mubr.msk.bf16.mxu1 %vm1120_vm2, %v12129_v48  ;;  %v14053_v48 = vrot.slane %v6750_v30, 5  ;;  %v6794_v33 = vshll.u32 %v10085_v63, 16  ;;  %v6798_v47 = vshrl.u32 %v10085_v63, 16  ;;  %v6791_v30 = vor.u32 %v6790_v24, %v6787_v6 }
 0x22e   : > { %v14062_v12 = vrot.slane %v6723_v13, 4  ;;  %v6782_v13 = vrot.slane %v6780_v35, 5  ;;  %v6811_v18 = vor.u32 %v6810_v36, %v6806_v3  ;;  %v6821_v57 = vor.u32 %v6820_v8, %v14094_v1  ;;  %v10100_v36 = vld [vmem:[%s12537_s9 + $0xcc] sm:$0xf] }
 0x22f   : > { %v6757_v31 = vor.u32 %v6756_v39, %v14053_v48  ;;  %v14073_v27 = vrot.slane %v6794_v33, 5  ;;  %v6800_v41 = vrot.slane %v6798_v47, 4  ;;  %v6753_v23 = vsel %vm12553_vm3, %v6748_v42, %v14053_v48  ;;  %v10092_v47 = vld [vmem:[%s12537_s9 + $0xac] sm:$0xf] }
 0x230   : > { %v6729_v50 = vsel %vm12553_vm3, %v14062_v12, %v14031_v55  ;;  %v6792_v39 = vrot.slane %v6791_v30, 4  ;;  %v6824_v12 = vshll.u32 %v10088_v51, 16  ;;  %v14118_v60 = vrot.slane %v6811_v18, 4  ;;  %v10097_v30 = vld [vmem:[%s12537_s9 + $0xc0] sm:$0xf] }
 0x231   : > { %11266 = vmatmul.mubr.msk.bf16.vlgmr.msra.gmra.mrb[0].mxu0 %vm1120_vm2, %v10144_v5  ;;  %v6734_v5 = vrot.slane %v6733_v49, 4  ;;  %v6801_v55 = vor.u32 %v6800_v41, %v14073_v27  ;;  %v6862_v24 = vshrl.u32 %v10092_v47, 16  ;;  %v12138_v51 = vld [vmem:[%s12537_s9 + $0x80] sm:$0xff]  }
 0x232   : > { %11269 = vmatprep.mubr.msk.bf16.mxu0 %vm1120_vm2, %v10145_v2  ;;  %11330 = vmatpush3.bf16.msra.mxu0 %v13916_v58  ;;  %v6770_v58 = vshll.u32 %v10082_v59, 16  ;;  %v6766_v2 = vrot.slane %v6764_v62, 4  ;;  %v6831_v62 = vrot.slane %v6829_v16, 4  ;;  %v6797_v29 = vsel %vm12553_vm3, %v6792_v39, %v14073_v27  ;;  %v10099_v16 = vld [vmem:[%s12537_s9 + $0xc8] sm:$0xf] }
 0x233   : > { %11331 = vmatprep.subr.bf16.mxu0 %v12160_v14  ;;  %v14123_v27 = vrot.slane %v6821_v57, 4  ;;  %v14125_v40 = vrot.slane %v6824_v12, 5  ;;  %v6817_v53 = vsel %vm12553_vm3, %v14118_v60, %v14094_v1  ;;  %v6930_v39 = vshrl.u32 %v10100_v36, 16  ;;  %v14162_v57 = vld [vmem:[%s12537_s9 + $0xc4] sm:$0x1] }
 0x234   : > { %10998 = vmatmul.mubr.msk.bf16.gmra.mrb[4].mxu1 %vm1120_vm2, %v12130_v37  ;;  %v14069_v11 = vrot.slane %v6770_v58, 5  ;;  %v6758_v37 = vrot.slane %v6757_v31, 4  ;;  %v6767_v25 = vor.u32 %v6766_v2, %v6762_v26  ;;  %v6802_v58 = vrot.slane %v6801_v55, 4  ;;  %v10095_v31 = vld [vmem:[%s12537_s9 + $0xb8] sm:$0xf] }
 0x235   : > { %11001 = vmatprep.mubr.msk.bf16.mxu1 %vm1120_vm2, %v12131_v43  ;;  %v6852_v2 = vshrl.u32 %v10091_v9, 16  ;;  %v6827_v1 = vsel %vm12553_vm3, %v14123_v27, %v14125_v40 }
 0x236   : > { %11332 = vmatpush3.bf16.msra.mxu0 %v12160_v14  ;;  %v10090_v14 = vld [vmem:[%s12537_s9 + $0xa4] sm:$0xf]  ;;  %v6777_v43 = vor.u32 %v6776_v20, %v14069_v11  ;;  %v6763_v54 = vsel %vm12553_vm3, %v6758_v37, %v6762_v26  ;;  %v6768_v49 = vrot.slane %v6767_v25, 4  ;;  %v6807_v26 = vsel %vm12553_vm3, %v6802_v58, %v6806_v3  ;;  %v12136_v20 = vld [vmem:[%s12537_s9 + $0x6c] sm:$0xff]   ;;  %v10096_v25 = vld [vmem:[%s12537_s9 + $0xbc] sm:$0xf] }
 0x237   : > { %v6838_v0 = vshll.u32 %v10090_v14, 16  ;;  %v6842_v59 = vshrl.u32 %v10090_v14, 16  ;;  %v10093_v37 = vld [vmem:[%s12537_s9 + $0xb0] sm:$0x1]  ;;  %v10153_v56 = vcombine.low %v6797_v29, %v6807_v26  ;;  %v6854_v14 = vrot.slane %v6852_v2, 4 }
 0x238   : > { %v6778_v63 = vrot.slane %v6777_v43, 4  ;;  %v6868_v8 = vshll.u32 %v10093_v37, 16  ;;  %v14171_v2 = vld [vmem:[%s12537_s9 + $0xd4] sm:$0xf] }
 0x239   : > { %11270 = vmatmul.mubr.msk.bf16.gmra.mrb[4].mxu0 %vm1120_vm2, %v10146_v22  ;;  %v6832_v22 = vshll.u32 %v10089_v61, 16  ;;  %v14101_v28 = vrot.slane %v6838_v0, 5  ;;  %v6844_v33 = vrot.slane %v6842_v59, 4  ;;  %v6882_v61 = vshll.u32 %v10095_v31, 16 }
 0x23a   : > { %11273 = vmatprep.mubr.msk.bf16.mxu0 %vm1120_vm2, %v10147_v10  ;;  %v6739_v10 = vsel %vm12553_vm3, %v6734_v5, %v6738_v4  ;;  %v10094_v4 = vld [vmem:[%s12537_s9 + $0xb4] sm:$0xf]  ;;  %v6783_v21 = vsel %vm12553_vm3, %v6778_v63, %v6782_v13  ;;  %v6848_v5 = vshll.u32 %v10091_v9, 16  ;;  %v6892_v13 = vshll.u32 %v10096_v25, 16  ;;  %v10101_v9 = vld [vmem:[%s12537_s9 + $0xd0] sm:$0xf] }
 0x23b   : > { %v6834_v48 = vrot.slane %v6832_v22, 5  ;;  %v10150_v44 = vcombine.low %v6729_v50, %v6739_v10  ;;  %v6845_v6 = vor.u32 %v6844_v33, %v14101_v28  ;;  %v6873_v17 = vshrl.u32 %v10094_v4, 16 }
 0x23c   : > { %11002 = vmatmul.mubr.msk.bf16.gmra.mrb[8].mxu1 %vm1120_vm2, %v12132_v34  ;;  %v6773_v34 = vsel %vm12553_vm3, %v6768_v49, %v14069_v11  ;;  %v6858_v11 = vshll.u32 %v10092_v47, 16  ;;  %v6876_v41 = vshll.u32 %v10094_v4, 16  ;;  %v6850_v35 = vrot.slane %v6848_v5, 5 }
 0x23d   : > { %11005 = vmatprep.mubr.msk.bf16.mxu1 %vm1120_vm2, %v12133_v45  ;;  %v6835_v45 = vor.u32 %v6834_v48, %v6831_v62  ;;  %v10152_v50 = vcombine.low %v6773_v34, %v6783_v21  ;;  %v6846_v22 = vrot.slane %v6845_v6, 4  ;;  %v6864_v10 = vrot.slane %v6862_v24, 4 }
 0x23e   : > { %v14135_v43 = vrot.slane %v6858_v11, 5  ;;  %v6875_v55 = vrot.slane %v6873_v17, 4  ;;  %v6878_v3 = vrot.slane %v6876_v41, 5  ;;  %v6896_v0 = vshrl.u32 %v10096_v25, 16  ;;  %v10104_v41 = vld [vmem:[%s12537_s9 + $0xdc] sm:$0xf] }
 0x23f   : > { %v6836_v42 = vrot.slane %v6835_v45, 4  ;;  %v6902_v59 = vshll.u32 %v10097_v30, 16  ;;  %v6920_v49 = vshll.u32 %v10099_v16, 16  ;;  %v6926_v63 = vshll.u32 %v10100_v36, 16  ;;  %v12140_v25 = vld [vmem:[%s12537_s9 + $0x94] sm:$0xff]  }
 0x240   : > { %v6851_v48 = vsel %vm12553_vm3, %v6846_v22, %v6850_v35  ;;  %v6855_v58 = vor.u32 %v6854_v14, %v6850_v35  ;;  %v6865_v18 = vor.u32 %v6864_v10, %v14135_v43  ;;  %v6879_v33 = vor.u32 %v6878_v3, %v6875_v55  ;;  %v12141_v10 = vld [vmem:[%s12537_s9 + $0xa0] sm:$0xff]  }
 0x241   : > { %11274 = vmatmul.mubr.msk.bf16.gmra.mrb[8].mxu0 %vm1120_vm2, %v10148_v46  ;;  %v10151_v46 = vcombine.low %v6753_v23, %v6763_v54  ;;  %v6917_v54 = vshrl.u32 %v10099_v16, 16  ;;  %v6841_v62 = vsel %vm12553_vm3, %v6836_v42, %v14101_v28  ;;  %v6898_v34 = vrot.slane %v6896_v0, 4  ;;  %v14203_v0 = vld [vmem:[%s12537_s9 + $0xe4] sm:$0xf] }
 0x242   : > { %11277 = vmatprep.mubr.msk.bf16.mxu0 %vm1120_vm2, %v10149_v7  ;;  %v6886_v7 = vshrl.u32 %v10095_v31, 16  ;;  %v14164_v28 = vrot.slane %v6902_v59, 5  ;;  %v6922_v21 = vrot.slane %v6920_v49, 5  ;;  %v14167_v29 = vrot.slane %v6926_v63, 5  ;;  %v14206_v59 = vld [vmem:[%s12537_s9 + $0xe8] sm:$0xf] }
 0x243   : > { %v6919_v4 = vrot.slane %v6917_v54, 4  ;;  %v6932_v45 = vrot.slane %v6930_v39, 4  ;;  %v6936_v5 = vshll.u32 %v10101_v9, 16  ;;  %v6856_v31 = vrot.slane %v6855_v58, 4 }
 0x244   : > { %11006 = vmatmul.mubr.msk.bf16.gmra.mrb[12].mxu1 %vm1120_vm2, %v12134_v32  ;;  %v14142_v32 = vrot.slane %v6882_v61, 5  ;;  %v6888_v23 = vrot.slane %v6886_v7, 4  ;;  %v6866_v26 = vrot.slane %v6865_v18, 4  ;;  %v6870_v60 = vrot.slane %v6868_v8, 5 }
 0x245   : > { %11009 = vmatprep.mubr.msk.bf16.mxu1 %vm1120_vm2, %v12135_v52  ;;  %v6906_v52 = vshrl.u32 %v10097_v30, 16  ;;  %v6940_v11 = vshrl.u32 %v10101_v9, 16  ;;  %v10155_v6 = vcombine.low %v6841_v62, %v6851_v48  ;;  %v6880_v24 = vrot.slane %v6879_v33, 4 }
 0x246   : > { %v6889_v47 = vor.u32 %v6888_v23, %v14142_v32  ;;  %v6912_v17 = vshll.u32 %v14162_v57, 16  ;;  %v6923_v7 = vor.u32 %v6922_v21, %v6919_v4  ;;  %v14182_v42 = vrot.slane %v6936_v5, 5  ;;  %v10109_v4 = vld [vmem:[%s12537_s9 + $0xf0] sm:$0xf]  ;;  %v14234_v21 = vld [vmem:[%s12537_s9 + $0xf4] sm:$0xf] }
 0x247   : > { %v6908_v12 = vrot.slane %v6906_v52, 4  ;;  %v6946_v35 = vshll.u32 %v14171_v2, 16  ;;  %v6950_v37 = vshrl.u32 %v14171_v2, 16  ;;  %v6964_v14 = vshll.u32 %v10104_v41, 16 }
 0x248   : > { %v6890_v27 = vrot.slane %v6889_v47, 4  ;;  %v6861_v16 = vsel %vm12553_vm3, %v6856_v31, %v14135_v43  ;;  %v6871_v22 = vsel %vm12553_vm3, %v6866_v26, %v6870_v60  ;;  %v6914_v55 = vrot.slane %v6912_v17, 5  ;;  %v12143_v60 = vld [vmem:[%s12537_s9 + $0xb4] sm:$0xff]  }
 0x249   : > { %11278 = vmatmul.mubr.msk.bf16.gmra.mrb[12].mxu0 %vm1120_vm2, %v10150_v44  ;;  %v12139_v44 = vld [vmem:[%s12537_s9 + $0x8c] sm:$0xff]   ;;  %v6909_v61 = vor.u32 %v6908_v12, %v14164_v28  ;;  %v6885_v36 = vsel %vm12553_vm3, %v6880_v24, %v14142_v32  ;;  %v6924_v52 = vrot.slane %v6923_v7, 4  ;;  %v14209_v49 = vrot.slane %v6946_v35, 5  ;;  %v14213_v32 = vld [vmem:[%s12537_s9 + $0xd8] sm:$0x1] }
 0x24a   : > { %11281 = vmatprep.mubr.msk.bf16.mxu0 %vm1120_vm2, %v10151_v46  ;;  %v14158_v46 = vrot.slane %v6892_v13, 5  ;;  %v6966_v39 = vrot.slane %v6964_v14, 5  ;;  %v6980_v48 = vshll.u32 %v14203_v0, 16  ;;  %v6984_v58 = vshrl.u32 %v14203_v0, 16  ;;  %v14251_v24 = vld [vmem:[%s12537_s9 + $0xec] sm:$0x1] }
 0x24b   : > { %v6910_v43 = vrot.slane %v6909_v61, 4  ;;  %v6990_v18 = vshll.u32 %v14206_v59, 16  ;;  %v10156_v9 = vcombine.low %v6861_v16, %v6871_v22  ;;  %v6994_v33 = vshrl.u32 %v14206_v59, 16  ;;  %v10114_v22 = vld [vmem:[%s12537_s9 + $0x104] sm:$0xf] }
 0x24c   : > { %11010 = vmatmul.mubr.msk.bf16.gmra.mrb[16].mxu1 %vm1120_vm2, %v12136_v20  ;;  %v10154_v20 = vcombine.low %v6817_v53, %v6827_v1  ;;  %v6899_v40 = vor.u32 %v6898_v34, %v14158_v46  ;;  %v6961_v53 = vshrl.u32 %v10104_v41, 16  ;;  %v6895_v23 = vsel %vm12553_vm3, %v6890_v27, %v14158_v46 }
 0x24d   : > { %11013 = vmatprep.mubr.msk.bf16.mxu1 %vm1120_vm2, %v12137_v15  ;;  %v14177_v15 = vld [vmem:[%s12537_s9 + $0xe0] sm:$0xf]  ;;  %v6952_v1 = vrot.slane %v6950_v37, 4  ;;  %v6915_v46 = vsel %vm12553_vm3, %v6910_v43, %v6914_v55  ;;  %v6929_v34 = vsel %vm12553_vm3, %v6924_v52, %v14167_v29  ;;  %v6956_v12 = vshll.u32 %v14213_v32, 16 }
 0x24e   : > { %v6970_v30 = vshll.u32 %v14177_v15, 16  ;;  %v6974_v3 = vshrl.u32 %v14177_v15, 16  ;;  %v6900_v13 = vrot.slane %v6899_v40, 4  ;;  %v6963_v63 = vrot.slane %v6961_v53, 4 }
 0x24f   : > { %v6996_v17 = vrot.slane %v6994_v33, 4  ;;  %v7005_v41 = vshrl.u32 %v10109_v4, 16  ;;  %v7008_v27 = vshll.u32 %v10109_v4, 16  ;;  %v7014_v40 = vshll.u32 %v14234_v21, 16 }
 0x250   : > { %v6976_v62 = vrot.slane %v6974_v3, 4  ;;  %v6905_v47 = vsel %vm12553_vm3, %v6900_v13, %v14164_v28  ;;  %v6953_v28 = vor.u32 %v6952_v1, %v14209_v49  ;;  %v6967_v26 = vor.u32 %v6966_v39, %v6963_v63 }
 0x251   : > { %11282 = vmatmul.mubr.msk.bf16.gmra.mrb[16].mxu0 %vm1120_vm2, %v10152_v50  ;;  %v6933_v50 = vor.u32 %v6932_v45, %v14167_v29  ;;  %v12142_v45 = vld [vmem:[%s12537_s9 + $0xa8] sm:$0xff]   ;;  %v6986_v29 = vrot.slane %v6984_v58, 4  ;;  %v10158_v61 = vcombine.low %v6905_v47, %v6915_v46  ;;  %v7018_v7 = vshrl.u32 %v14234_v21, 16 }
 0x252   : > { %11285 = vmatprep.mubr.msk.bf16.mxu0 %vm1120_vm2, %v10153_v56  ;;  %v6942_v56 = vrot.slane %v6940_v11, 4  ;;  %v6954_v35 = vrot.slane %v6953_v28, 4  ;;  %v6958_v37 = vrot.slane %v6956_v12, 5  ;;  %v6968_v53 = vrot.slane %v6967_v26, 4 }
 0x253   : > { %v6934_v54 = vrot.slane %v6933_v50, 4  ;;  %v7000_v16 = vshll.u32 %v14251_v24, 16  ;;  %v7007_v55 = vrot.slane %v7005_v41, 4  ;;  %v7010_v3 = vrot.slane %v7008_v27, 5 }
 0x254   : > { %11014 = vmatmul.mubr.msk.bf16.gmra.mrb[20].mxu1 %vm1120_vm2, %v12138_v51  ;;  %v6943_v8 = vor.u32 %v6942_v56, %v14182_v42  ;;  %v14216_v51 = vrot.slane %v6970_v30, 5  ;;  %v14265_v56 = vld [vmem:[%s12537_s9 + $0xfc] sm:$0xf]  ;;  %v6959_v1 = vsel %vm12553_vm3, %v6954_v35, %v6958_v37  ;;  %v7049_v63 = vshrl.u32 %v10114_v22, 16 }
 0x255   : > { %11017 = vmatprep.mubr.msk.bf16.mxu1 %vm1120_vm2, %v12139_v44  ;;  %v10157_v44 = vcombine.low %v6885_v36, %v6895_v23  ;;  %v6939_v5 = vsel %vm12553_vm3, %v6934_v54, %v14182_v42  ;;  %v14272_v36 = vrot.slane %v7014_v40, 5  ;;  %v7020_v23 = vrot.slane %v7018_v7, 4  ;;  %v14278_v54 = vld [vmem:[%s12537_s9 + $0x108] sm:$0xf]  ;;  %v14321_v37 = vld [vmem:[%s12537_s9 + $0x11c] sm:$0xf] }
 0x256   : > { %v14240_v31 = vrot.slane %v6943_v8, 4  ;;  %v6977_v11 = vor.u32 %v6976_v62, %v14216_v51  ;;  %v10159_v50 = vcombine.low %v6929_v34, %v6939_v5  ;;  %v7034_v52 = vshll.u32 %v14265_v56, 16  ;;  %v12145_v62 = vld [vmem:[%s12537_s9 + $0xc8] sm:$0xff]   ;;  %v14303_v5 = vld [vmem:[%s12537_s9 + $0x100] sm:$0x1] }
 0x257   : > { %v7038_v8 = vshrl.u32 %v14265_v56, 16  ;;  %v7052_v39 = vshll.u32 %v10114_v22, 16  ;;  %v7011_v47 = vor.u32 %v7010_v3, %v7007_v55  ;;  %v7058_v46 = vshll.u32 %v14278_v54, 16  ;;  %v12147_v22 = vld [vmem:[%s12537_s9 + $0xdc] sm:$0xff]  }
 0x258   : > { %v6949_v42 = vsel %vm12553_vm3, %v14240_v31, %v14209_v49  ;;  %v6978_v14 = vrot.slane %v6977_v11, 4  ;;  %v12144_v49 = vld [vmem:[%s12537_s9 + $0xbc] sm:$0xff]   ;;  %v7062_v34 = vshrl.u32 %v14278_v54, 16  ;;  %v7051_v28 = vrot.slane %v7049_v63, 4 }
 0x259   : > { %11286 = vmatmul.mubr.msk.bf16.gmra.mrb[20].mxu0 %vm1120_vm2, %v10154_v20  ;;  %v14245_v20 = vrot.slane %v6980_v48, 5  ;;  %v6973_v48 = vsel %vm12553_vm3, %v6968_v53, %v14216_v51  ;;  %v7021_v51 = vor.u32 %v7020_v23, %v14272_v36  ;;  %v7040_v31 = vrot.slane %v7038_v8, 4  ;;  %v12146_v53 = vld [vmem:[%s12537_s9 + $0xd0] sm:$0xff]  }
 0x25a   : > { %11289 = vmatprep.mubr.msk.bf16.mxu0 %vm1120_vm2, %v10155_v6  ;;  %v14247_v6 = vrot.slane %v6990_v18, 5  ;;  %v7054_v26 = vrot.slane %v7052_v39, 5  ;;  %v10160_v11 = vcombine.low %v6949_v42, %v6959_v1  ;;  %v14313_v41 = vrot.slane %v7058_v46, 5  ;;  %v14348_v46 = vld [vmem:[%s12537_s9 + $0x124] sm:$0xf] }
 0x25b   : > { %v6987_v30 = vor.u32 %v6986_v29, %v14245_v20  ;;  %v6983_v58 = vsel %vm12553_vm3, %v6978_v14, %v14245_v20  ;;  %v14308_v29 = vld [vmem:[%s12537_s9 + $0x110] sm:$0xf]  ;;  %v7064_v27 = vrot.slane %v7062_v34, 4  ;;  %v7022_v42 = vrot.slane %v7021_v51, 4  ;;  %v14351_v51 = vld [vmem:[%s12537_s9 + $0x114] sm:$0x1] }
 0x25c   : > { %11018 = vmatmul.mubr.msk.bf16.gmra.mrb[24].mxu1 %vm1120_vm2, %v12140_v25  ;;  %v14262_v25 = vld [vmem:[%s12537_s9 + $0xf8] sm:$0xf]  ;;  %v10161_v20 = vcombine.low %v6973_v48, %v6983_v58  ;;  %v7044_v35 = vshll.u32 %v14303_v5, 16  ;;  %v7082_v55 = vshrl.u32 %v14308_v29, 16 }
 0x25d   : > { %11021 = vmatprep.mubr.msk.bf16.mxu1 %vm1120_vm2, %v12141_v10  ;;  %v6997_v10 = vor.u32 %v6996_v17, %v14247_v6  ;;  %v7024_v13 = vshll.u32 %v14262_v25, 16  ;;  %v7028_v43 = vshrl.u32 %v14262_v25, 16  ;;  %v6988_v18 = vrot.slane %v6987_v30, 4 }
 0x25e   : > { %v7046_v63 = vrot.slane %v7044_v35, 5  ;;  %v7088_v35 = vshll.u32 %v14351_v51, 16 }
 0x25f   : > { %v6998_v33 = vrot.slane %v6997_v10, 4  ;;  %v7026_v12 = vrot.slane %v7024_v13, 5  ;;  %v7030_v4 = vrot.slane %v7028_v43, 4  ;;  %v6993_v17 = vsel %vm12553_vm3, %v6988_v18, %v14247_v6  ;;  %v14342_v18 = vld [vmem:[%s12537_s9 + $0x120] sm:$0xf] }
 0x260   : > { %v7055_v6 = vor.u32 %v7054_v26, %v7051_v28  ;;  %v7078_v10 = vshll.u32 %v14308_v29, 16  ;;  %v7065_v13 = vor.u32 %v7064_v27, %v14313_v41  ;;  %v12148_v26 = vld [vmem:[%s12537_s9 + $0xe4] sm:$0xff]   ;;  %v7126_v27 = vshrl.u32 %v14348_v46, 16 }
 0x261   : > { %11290 = vmatmul.mubr.msk.bf16.gmra.mrb[24].mxu0 %vm1120_vm2, %v10156_v9  ;;  %v7002_v9 = vrot.slane %v7000_v16, 5  ;;  %v7031_v14 = vor.u32 %v7030_v4, %v7026_v12  ;;  %v7027_v39 = vsel %vm12553_vm3, %v7022_v42, %v7026_v12 }
 0x262   : > { %11293 = vmatprep.mubr.msk.bf16.mxu0 %vm1120_vm2, %v10157_v44  ;;  %v14292_v44 = vld [vmem:[%s12537_s9 + $0x10c] sm:$0xf]  ;;  %v7056_v58 = vrot.slane %v7055_v6, 4  ;;  %v7066_v34 = vrot.slane %v7065_v13, 4 }
 0x263   : > { %v7072_v40 = vshrl.u32 %v14292_v44, 16  ;;  %v7003_v7 = vsel %vm12553_vm3, %v6998_v33, %v7002_v9  ;;  %v14345_v9 = vrot.slane %v7078_v10, 5  ;;  %v7084_v33 = vrot.slane %v7082_v55, 4 }
 0x264   : > { %11022 = vmatmul.mubr.msk.bf16.gmra.mrb[28].mxu1 %vm1120_vm2, %v12142_v45  ;;  %v14299_v45 = vrot.slane %v7034_v52, 5  ;;  %v7102_v52 = vshll.u32 %v14321_v37, 16  ;;  %v10162_v1 = vcombine.low %v6993_v17, %v7003_v7  ;;  %v7122_v17 = vshll.u32 %v14348_v46, 16 }
 0x265   : > { %11025 = vmatprep.mubr.msk.bf16.mxu1 %vm1120_vm2, %v12143_v60  ;;  %v7068_v60 = vshll.u32 %v14292_v44, 16  ;;  %v7074_v43 = vrot.slane %v7072_v40, 4  ;;  %v10124_v40 = vld [vmem:[%s12537_s9 + $0x12c] sm:$0xf]  ;;  %v7085_v42 = vor.u32 %v7084_v33, %v14345_v9  ;;  %v14399_v33 = vld [vmem:[%s12537_s9 + $0x138] sm:$0xf] }
 0x266   : > { %v7041_v30 = vor.u32 %v7040_v31, %v14299_v45  ;;  %v14354_v4 = vrot.slane %v7102_v52, 5  ;;  %v7137_v10 = vshrl.u32 %v10124_v40, 16  ;;  %v7140_v55 = vshll.u32 %v10124_v40, 16 }
 0x267   : > { %v14325_v16 = vrot.slane %v7068_v60, 5  ;;  %v7112_v60 = vshll.u32 %v14342_v18, 16  ;;  %v14388_v13 = vrot.slane %v7122_v17, 5  ;;  %v12151_v17 = vld [vmem:[%s12537_s9 + $0x104] sm:$0xff]   ;;  %v7170_v40 = vshrl.u32 %v14399_v33, 16 }
 0x268   : > { %v7042_v48 = vrot.slane %v7041_v30, 4 }
 0x269   : > { %11294 = vmatmul.mubr.msk.bf16.gmra.mrb[28].mxu0 %vm1120_vm2, %v10158_v61  ;;  %v10119_v61 = vld [vmem:[%s12537_s9 + $0x118] sm:$0xf]  ;;  %v7075_v12 = vor.u32 %v7074_v43, %v14325_v16  ;;  %v7128_v43 = vrot.slane %v7126_v27, 4  ;;  %v7166_v27 = vshll.u32 %v14399_v33, 16 }
 0x26a   : > { %11297 = vmatprep.mubr.msk.bf16.mxu0 %vm1120_vm2, %v10159_v50  ;;  %v7012_v50 = vrot.slane %v7011_v47, 4  ;;  %v7093_v3 = vshrl.u32 %v10119_v61, 16  ;;  %v7096_v23 = vshll.u32 %v10119_v61, 16  ;;  %v14366_v61 = vld [vmem:[%s12537_s9 + $0x130] sm:$0xf]  ;;  %v7047_v7 = vsel %vm12553_vm3, %v7042_v48, %v7046_v63 }
 0x26b   : > { %v7076_v30 = vrot.slane %v7075_v12, 4  ;;  %v14392_v63 = vld [vmem:[%s12537_s9 + $0x134] sm:$0xf] }
 0x26c   : > { %11026 = vmatmul.mubr.msk.bf16.gmra.mrb[32].mxu1 %vm1120_vm2, %v12144_v49  ;;  %v7106_v49 = vshrl.u32 %v14321_v37, 16  ;;  %v7017_v8 = vsel %vm12553_vm3, %v7012_v50, %v14272_v36  ;;  %v7095_v47 = vrot.slane %v7093_v3, 4  ;;  %v7098_v36 = vrot.slane %v7096_v23, 5  ;;  %v12149_v50 = vld [vmem:[%s12537_s9 + $0xf0] sm:$0xff]  }
 0x26d   : > { %11029 = vmatprep.mubr.msk.bf16.mxu1 %vm1120_vm2, %v12145_v62  ;;  %v7032_v62 = vrot.slane %v7031_v14, 4  ;;  %v10163_v28 = vcombine.low %v7017_v8, %v7027_v39  ;;  %v7071_v14 = vsel %vm12553_vm3, %v7066_v34, %v14325_v16  ;;  %v7146_v3 = vshll.u32 %v14366_v61, 16 }
 0x26e   : > { %v7108_v31 = vrot.slane %v7106_v49, 4  ;;  %v7150_v23 = vshrl.u32 %v14366_v61, 16  ;;  %v7086_v49 = vrot.slane %v7085_v42, 4  ;;  %v7142_v34 = vrot.slane %v7140_v55, 5 }
 0x26f   : > { %v14402_v12 = vrot.slane %v7146_v3, 5 }
 0x270   : > { %v7109_v6 = vor.u32 %v7108_v31, %v14354_v4  ;;  %v7152_v31 = vrot.slane %v7150_v23, 4 }
 0x271   : > { %11298 = vmatmul.mubr.msk.bf16.gmra.mrb[32].mxu0 %vm1120_vm2, %v10160_v11  ;;  %v7116_v11 = vshrl.u32 %v14342_v18, 16 }
 0x272   : > { %11301 = vmatprep.mubr.msk.bf16.mxu0 %vm1120_vm2, %v10161_v20  ;;  %v7037_v20 = vsel %vm12553_vm3, %v7032_v62, %v14299_v45  ;;  %v7061_v45 = vsel %vm12553_vm3, %v7056_v58, %v14313_v41  ;;  %v7114_v41 = vrot.slane %v7112_v60, 5  ;;  %v7081_v62 = vsel %vm12553_vm3, %v7076_v30, %v14345_v9 }
 0x273   : > { %v7118_v16 = vrot.slane %v7116_v11, 4  ;;  %v10164_v52 = vcombine.low %v7037_v20, %v7047_v7  ;;  %v10165_v39 = vcombine.low %v7061_v45, %v7071_v14  ;;  %v7110_v48 = vrot.slane %v7109_v6, 4 }
 0x274   : > { %11030 = vmatmul.mubr.msk.bf16.gmra.mrb[36].mxu1 %vm1120_vm2, %v12146_v53  ;;  %v7099_v53 = vor.u32 %v7098_v36, %v7095_v47  ;;  %v10129_v47 = vld [vmem:[%s12537_s9 + $0x140] sm:$0xf]  ;;  %v7139_v36 = vrot.slane %v7137_v10, 4  ;;  %v7129_v11 = vor.u32 %v7128_v43, %v14388_v13  ;;  %v7156_v20 = vshll.u32 %v14392_v63, 16 }
 0x275   : > { %11033 = vmatprep.mubr.msk.bf16.mxu1 %vm1120_vm2, %v12147_v22  ;;  %v14383_v22 = vld [vmem:[%s12537_s9 + $0x128] sm:$0x1]  ;;  %v7119_v60 = vor.u32 %v7118_v16, %v7114_v41  ;;  %v7160_v9 = vshrl.u32 %v14392_v63, 16  ;;  %v7181_v7 = vshrl.u32 %v10129_v47, 16  ;;  %v7115_v14 = vsel %vm12553_vm3, %v7110_v48, %v7114_v41 }
 0x276   : > { %v7100_v8 = vrot.slane %v7099_v53, 4  ;;  %v7132_v58 = vshll.u32 %v14383_v22, 16  ;;  %v7143_v6 = vor.u32 %v7142_v34, %v7139_v36  ;;  %v7153_v10 = vor.u32 %v7152_v31, %v14402_v12  ;;  %v14440_v31 = vld [vmem:[%s12537_s9 + $0x14c] sm:$0xf] }
 0x277   : > { %v7120_v55 = vrot.slane %v7119_v60, 4  ;;  %v7130_v3 = vrot.slane %v7129_v11, 4  ;;  %v7158_v23 = vrot.slane %v7156_v20, 5  ;;  %v7162_v16 = vrot.slane %v7160_v9, 4  ;;  %v12154_v11 = vld [vmem:[%s12537_s9 + $0x118] sm:$0xff]  }
 0x278   : > { %v7134_v30 = vrot.slane %v7132_v58, 5  ;;  %v14431_v43 = vrot.slane %v7166_v27, 5  ;;  %v7172_v41 = vrot.slane %v7170_v40, 4  ;;  %v7154_v36 = vrot.slane %v7153_v10, 4  ;;  %v10134_v40 = vld [vmem:[%s12537_s9 + $0x154] sm:$0xf] }
 0x279   : > { %11302 = vmatmul.mubr.msk.bf16.gmra.mrb[36].mxu0 %vm1120_vm2, %v10162_v1  ;;  %v7090_v1 = vrot.slane %v7088_v35, 5  ;;  %v7105_v35 = vsel %vm12553_vm3, %v7100_v8, %v14354_v4  ;;  %v14428_v4 = vld [vmem:[%s12537_s9 + $0x13c] sm:$0x1]  ;;  %v14434_v8 = vld [vmem:[%s12537_s9 + $0x148] sm:$0xf]  ;;  %v7125_v60 = vsel %vm12553_vm3, %v7120_v55, %v14388_v13  ;;  %v7163_v20 = vor.u32 %v7162_v16, %v7158_v23 }
 0x27a   : > { %11305 = vmatprep.mubr.msk.bf16.mxu0 %vm1120_vm2, %v10163_v28  ;;  %v14405_v28 = vld [vmem:[%s12537_s9 + $0x144] sm:$0xf]  ;;  %v10167_v58 = vcombine.low %v7105_v35, %v7115_v14  ;;  %v7176_v34 = vshll.u32 %v14428_v4, 16  ;;  %v7173_v9 = vor.u32 %v7172_v41, %v14431_v43  ;;  %v7200_v27 = vshll.u32 %v14434_v8, 16 }
 0x27b   : > { %v7091_v42 = vsel %vm12553_vm3, %v7086_v49, %v7090_v1  ;;  %v7190_v53 = vshll.u32 %v14405_v28, 16  ;;  %v7194_v45 = vshrl.u32 %v14405_v28, 16  ;;  %v7210_v13 = vshll.u32 %v14440_v31, 16 }
 0x27c   : > { %11034 = vmatmul.mubr.msk.bf16.gmra.mrb[40].mxu1 %vm1120_vm2, %v12148_v26  ;;  %v12150_v26 = vld [vmem:[%s12537_s9 + $0xf8] sm:$0xff]   ;;  %v10166_v1 = vcombine.low %v7081_v62, %v7091_v42  ;;  %v7135_v62 = vsel %vm12553_vm3, %v7130_v3, %v7134_v30  ;;  %v7204_v42 = vshrl.u32 %v14434_v8, 16  ;;  %v7214_v35 = vshrl.u32 %v14440_v31, 16 }
 0x27d   : > { %11037 = vmatprep.mubr.msk.bf16.mxu1 %vm1120_vm2, %v12149_v50  ;;  %v7184_v50 = vshll.u32 %v10129_v47, 16  ;;  %v7196_v48 = vrot.slane %v7194_v45, 4  ;;  %v7144_v47 = vrot.slane %v7143_v6, 4  ;;  %v7159_v14 = vsel %vm12553_vm3, %v7154_v36, %v7158_v23  ;;  %v12155_v36 = vld [vmem:[%s12537_s9 + $0x120] sm:$0xff]  }
 0x27e   : > { %v7178_v30 = vrot.slane %v7176_v34, 5  ;;  %v7225_v6 = vshrl.u32 %v10134_v40, 16  ;;  %v7228_v10 = vshll.u32 %v10134_v40, 16  ;;  %v7164_v16 = vrot.slane %v7163_v20, 4  ;;  %v14475_v34 = vld [vmem:[%s12537_s9 + $0x15c] sm:$0xf] }
 0x27f   : > { %v7186_v49 = vrot.slane %v7184_v50, 5  ;;  %v7149_v45 = vsel %vm12553_vm3, %v7144_v47, %v14402_v12  ;;  %v7174_v41 = vrot.slane %v7173_v9, 4  ;;  %v14478_v20 = vld [vmem:[%s12537_s9 + $0x160] sm:$0xf] }
 0x280   : > { %v10169_v47 = vcombine.low %v7149_v45, %v7159_v14  ;;  %v7169_v9 = vsel %vm12553_vm3, %v7164_v16, %v14431_v43  ;;  %v7244_v43 = vshll.u32 %v14475_v34, 16  ;;  %v7248_v45 = vshrl.u32 %v14475_v34, 16 }
 0x281   : > { %11306 = vmatmul.mubr.msk.bf16.gmra.mrb[40].mxu0 %vm1120_vm2, %v10164_v52  ;;  %v7183_v52 = vrot.slane %v7181_v7, 4  ;;  %v14453_v7 = vld [vmem:[%s12537_s9 + $0x158] sm:$0xf]  ;;  %v7254_v14 = vshll.u32 %v14478_v20, 16 }
 0x282   : > { %11309 = vmatprep.mubr.msk.bf16.mxu0 %vm1120_vm2, %v10165_v39  ;;  %v14436_v39 = vrot.slane %v7190_v53, 5  ;;  %v10168_v53 = vcombine.low %v7125_v60, %v7135_v62  ;;  %v7234_v55 = vshll.u32 %v14453_v7, 16  ;;  %v7238_v3 = vshrl.u32 %v14453_v7, 16 }
 0x283   : > { %v7230_v60 = vrot.slane %v7228_v10, 5 }
 0x284   : > { %11038 = vmatmul.mubr.msk.bf16.gmra.mrb[44].mxu1 %vm1120_vm2, %v12150_v26  ;;  %v12152_v26 = vld [vmem:[%s12537_s9 + $0x10c] sm:$0xff]   ;;  %v7197_v50 = vor.u32 %v7196_v48, %v14436_v39  ;;  %v7212_v48 = vrot.slane %v7210_v13, 5  ;;  %v7236_v62 = vrot.slane %v7234_v55, 5 }
 0x285   : > { %11041 = vmatprep.mubr.msk.bf16.mxu1 %vm1120_vm2, %v12151_v17  ;;  %v7187_v17 = vor.u32 %v7186_v49, %v7183_v52  ;;  %v7202_v52 = vrot.slane %v7200_v27, 5  ;;  %v14471_v49 = vld [vmem:[%s12537_s9 + $0x150] sm:$0x1] }
 0x286   : > { %v7198_v23 = vrot.slane %v7197_v50, 4  ;;  %v12156_v27 = vld [vmem:[%s12537_s9 + $0x12c] sm:$0xff]   ;;  %v7220_v40 = vshll.u32 %v14471_v49, 16 }
 0x287   : > { %v7188_v12 = vrot.slane %v7187_v17, 4  ;;  %v7179_v17 = vsel %vm12553_vm3, %v7174_v41, %v7178_v30  ;;  %v7246_v41 = vrot.slane %v7244_v43, 5 }
 0x288   : > { %v7222_v16 = vrot.slane %v7220_v40, 5 }
 0x289   : > { %11310 = vmatmul.mubr.msk.bf16.gmra.mrb[44].mxu0 %vm1120_vm2, %v10166_v1  ;;  %v7206_v1 = vrot.slane %v7204_v42, 4  ;;  %v7193_v50 = vsel %vm12553_vm3, %v7188_v12, %v14436_v39  ;;  %v7203_v42 = vsel %vm12553_vm3, %v7198_v23, %v7202_v52  ;;  %v7250_v12 = vrot.slane %v7248_v45, 4 }
 0x28a   : > { %11313 = vmatprep.mubr.msk.bf16.mxu0 %vm1120_vm2, %v10167_v58  ;;  %v7216_v58 = vrot.slane %v7214_v35, 4  ;;  %v10171_v10 = vcombine.low %v7193_v50, %v7203_v42 }
 0x28b   : > { %v7207_v13 = vor.u32 %v7206_v1, %v7202_v52  ;;  %v7256_v52 = vrot.slane %v7254_v14, 5  ;;  %v12157_v1 = vld [vmem:[%s12537_s9 + $0x134] sm:$0xff]  }
 0x28c   : > { %11042 = vmatmul.mubr.msk.bf16.gmra.mrb[48].mxu1 %vm1120_vm2, %v12152_v26  ;;  %v7227_v26 = vrot.slane %v7225_v6, 4  ;;  %v7217_v35 = vor.u32 %v7216_v58, %v7212_v48  ;;  %v10170_v6 = vcombine.low %v7169_v9, %v7179_v17  ;;  %v7251_v9 = vor.u32 %v7250_v12, %v7246_v41 }
 0x28d   : > { %11045 = vmatprep.mubr.msk.bf16.mxu1 %vm1120_vm2, %v12154_v11  ;;  %v7240_v11 = vrot.slane %v7238_v3, 4  ;;  %v7208_v55 = vrot.slane %v7207_v13, 4  ;;  %v10209_v13 = vld [vmem:[%s12537_s9 + $0x28] sm:$0xe] }
 0x28e   : > { %v7231_v39 = vor.u32 %v7230_v60, %v7227_v26  ;;  %v7218_v3 = vrot.slane %v7217_v35, 4  ;;  %v12158_v26 = vld [vmem:[%s12537_s9 + $0x140] sm:$0xff]   ;;  %v7252_v45 = vrot.slane %v7251_v9, 4 }
 0x28f   : > { %v7241_v30 = vor.u32 %v7240_v11, %v7236_v62  ;;  %v7213_v60 = vsel %vm12553_vm3, %v7208_v55, %v7212_v48  ;;  %v12291_v48 = vld [vmem:[%s12537_s9 + $0x2c] sm:$0xf] }
 0x290   : > { %v7232_v58 = vrot.slane %v7231_v39, 4  ;;  %v7223_v11 = vsel %vm12553_vm3, %v7218_v3, %v7222_v16  ;;  %v7928_v42 = vrot.slane %v12291_v48, 5  ;;  %v12159_v39 = vld [vmem:[%s12537_s9 + $0x148] sm:$0xff]   ;;  %v7257_v55 = vsel %vm12553_vm3, %v7252_v45, %v7256_v52  ;;  %v12293_v16 = vld [vmem:[%s12537_s9 + $0x34] sm:$0xf] }
 0x291   : > { %11314 = vmatmul.mubr.msk.bf16.gmra.mrb[48].mxu0 %vm1120_vm2, %v10168_v53  ;;  %v7258_v53 = vshrl.u32 %v14478_v20, 16  ;;  %v10172_v35 = vcombine.low %v7213_v60, %v7223_v11  ;;  %v12295_v11 = vld [vmem:[%s12537_s9 + $0x38] sm:$0x1] }
 0x292   : > { %11317 = vmatprep.mubr.msk.bf16.mxu0 %vm1120_vm2, %v10169_v47  ;;  %v7242_v47 = vrot.slane %v7241_v30, 4  ;;  %v7237_v40 = vsel %vm12553_vm3, %v7232_v58, %v7236_v62  ;;  %v10225_v30 = vrot.slane %v10209_v13, 9  ;;  %v12292_v62 = vld [vmem:[%s12537_s9 + $0x30] sm:$0xf]  ;;  %v7937_v9 = vrot.slane %v12295_v11, 5 }
 0x293   : > { %v7260_v23 = vrot.slane %v7258_v53, 4  ;;  %v12297_v13 = vld [vmem:[%s12537_s9 + $0x48] sm:$0xf] }
 0x294   : > { %11046 = vmatmul.mubr.msk.bf16.gmra.mrb[52].mxu1 %vm1120_vm2, %v12155_v36  ;;  %v14502_v36 = vld [vmem:[%s12537_s9 + $0x164] sm:$0x1]  ;;  %v7247_v50 = vsel %vm12553_vm3, %v7242_v47, %v7246_v41  ;;  %v7934_v41 = vrot.slane %v12293_v16, 5  ;;  %v7929_v12 = vsel %vm13130_vm6, %v10225_v30, %v7928_v42  ;;  %v10210_v47 = vld [vmem:[%s12537_s9 + $0x3c] sm:$0xe] }
 0x295   : > { %11049 = vmatprep.mubr.msk.bf16.mxu1 %vm1120_vm2, %v12156_v27  ;;  %v7261_v17 = vor.u32 %v7260_v23, %v7256_v52  ;;  %v7264_v27 = vshll.u32 %v14502_v36, 16  ;;  %v10173_v43 = vcombine.low %v7237_v40, %v7247_v50  ;;  %v12296_v40 = vld [vmem:[%s12537_s9 + $0x44] sm:$0xf] }
 0x296   : > { %v7936_v19 = vrot.slane %v7934_v41, 4  ;;  %v7944_v50 = vrot.slane %v12296_v40, 5 }
 0x297   : > { %v7262_v14 = vrot.slane %v7261_v17, 4  ;;  %v7266_v53 = vrot.slane %v7264_v27, 5  ;;  %v10226_v17 = vrot.slane %v10210_v47, 9  ;;  %v12301_v47 = vld [vmem:[%s12537_s9 + $0x5c] sm:$0xf] }
 0x299   : > { %11318 = vmatmul.mubr.msk.bf16.gmra.mrb[52].mxu0 %vm1120_vm2, %v10170_v6  ;;  %v7930_v6 = vrot.slane %v7928_v42, 4  ;;  %v7267_v3 = vsel %vm12553_vm3, %v7262_v14, %v7266_v53  ;;  %v7938_v42 = vsel %vm13130_vm6, %v7936_v19, %v7937_v9  ;;  %v12298_v14 = vld [vmem:[%s12537_s9 + $0x54] sm:$0xf]  ;;  %v12302_v19 = vld [vmem:[%s12537_s9 + $0x68] sm:$0xf] }
 0x29a   : > { %11321 = vmatprep.mubr.msk.bf16.mxu0 %vm1120_vm2, %v10171_v10  ;;  %v7931_v10 = vrot.slane %v12292_v62, 5  ;;  %v7954_v53 = vrot.slane %v12298_v14, 5  ;;  %v7946_v62 = vrot.slane %v7944_v50, 4  ;;  %v7967_v11 = vrot.slane %v12302_v19, 5  ;;  %v10212_v9 = vld [vmem:[%s12537_s9 + $0x64] sm:$0xe] }
 0x29c   : > { %11050 = vmatmul.mubr.msk.bf16.gmra.mrb[56].mxu1 %vm1120_vm2, %v12157_v1  ;;  %v7932_v23 = vsel %vm13130_vm6, %v7930_v6, %v7931_v10  ;;  %v12294_v1 = vld [vmem:[%s12537_s9 + $0x40] sm:$0xf]  ;;  %v7933_v52 = vrot.slane %v7931_v10, 4 }
 0x29d   : > { %11053 = vmatprep.mubr.msk.bf16.mxu1 %vm1120_vm2, %v12158_v26  ;;  %v7941_v58 = vrot.slane %v12294_v1, 5  ;;  %v10174_v26 = vcombine.low %v7257_v55, %v7267_v3  ;;  %v10245_v60 = vcombine.low %v7929_v12, %v7932_v23  ;;  %v12299_v55 = vld [vmem:[%s12537_s9 + $0x4c] sm:$0x1]  ;;  %v12300_v12 = vld [vmem:[%s12537_s9 + $0x58] sm:$0xf] }
 0x29e   : > { %v7935_v48 = vsel %vm13130_vm6, %v7933_v52, %v7934_v41  ;;  %v7950_v3 = vrot.slane %v12299_v55, 5  ;;  %v7956_v41 = vrot.slane %v7954_v53, 4  ;;  %v7957_v23 = vrot.slane %v12300_v12, 5 }
 0x29f   : > { %v7943_v27 = vrot.slane %v7941_v58, 4  ;;  %v10246_v30 = vcombine.low %v7935_v48, %v7938_v42  ;;  %v12303_v48 = vld [vmem:[%s12537_s9 + $0x60] sm:$0x1] }
 0x2a0   : > { %v7959_v40 = vrot.slane %v7957_v23, 4  ;;  %v7963_v42 = vrot.slane %v12303_v48, 5 }
 0x2a1   : > { %11322 = vmatmul.mubr.msk.bf16.gmra.mrb[56].mxu0 %vm1120_vm2, %v10172_v35  ;;  %v7947_v35 = vrot.slane %v12297_v13, 5  ;;  %v7945_v45 = vsel %vm13130_vm6, %v7943_v27, %v7944_v50  ;;  %v10228_v13 = vrot.slane %v10212_v9, 9  ;;  %v12309_v9 = vld [vmem:[%s12537_s9 + $0x84] sm:$0xf] }
 0x2a2   : > { %11325 = vmatprep.mubr.msk.bf16.mxu0 %vm1120_vm2, %v10173_v43  ;;  %v7942_v43 = vsel %vm13130_vm6, %v10226_v17, %v7941_v58 }
 0x2a3   : > { %v10247_v6 = vcombine.low %v7942_v43, %v7945_v45  ;;  %v7949_v10 = vrot.slane %v7947_v35, 4  ;;  %v7948_v1 = vsel %vm13130_vm6, %v7946_v62, %v7947_v35  ;;  %v7969_v35 = vrot.slane %v7967_v11, 4  ;;  %v12304_v43 = vld [vmem:[%s12537_s9 + $0x6c] sm:$0xf] }
 0x2a4   : > { %11054 = vmatmul.mubr.msk.bf16.gmra.mrb[60].mxu1 %vm1120_vm2, %v12159_v39  ;;  %v10211_v39 = vld [vmem:[%s12537_s9 + $0x50] sm:$0xe]  ;;  %v7970_v45 = vrot.slane %v12304_v43, 5 }
 0x2a5   : > { %v10227_v16 = vrot.slane %v10211_v39, 9  ;;  %v7951_v58 = vsel %vm13130_vm6, %v7949_v10, %v7950_v3  ;;  %v12305_v39 = vld [vmem:[%s12537_s9 + $0x70] sm:$0xf]  ;;  %v12306_v10 = vld [vmem:[%s12537_s9 + $0x7c] sm:$0xf] }
 0x2a6   : > { %v10248_v17 = vcombine.low %v7948_v1, %v7951_v58  ;;  %v7971_v62 = vsel %vm13130_vm6, %v7969_v35, %v7970_v45  ;;  %v7980_v55 = vrot.slane %v12306_v10, 5  ;;  %v10213_v3 = vld [vmem:[%s12537_s9 + $0x78] sm:$0xe]  ;;  %v7972_v12 = vrot.slane %v7970_v45, 4  ;;  %v12307_v1 = vld [vmem:[%s12537_s9 + $0x74] sm:$0x1] }
 0x2a7   : > { %v7955_v52 = vsel %vm13130_vm6, %v10227_v16, %v7954_v53  ;;  %v7976_v58 = vrot.slane %v12307_v1, 5 }
 0x2a9   : > { %11326 = vmatmul.mubr.msk.bf16.gmra.mrb[60].mxu0 %vm1120_vm2, %v10174_v26  ;;  %v7960_v26 = vrot.slane %v12301_v47, 5  ;;  %v10229_v47 = vrot.slane %v10213_v3, 9  ;;  %v12313_v3 = vld [vmem:[%s12537_s9 + $0x98] sm:$0xf] }
 0x2aa   : > { %11333 = vmatprep.mubr.msk.bf16.mxu0 %vm1120_vm2, %v10245_v60  ;;  %v7958_v60 = vsel %vm13130_vm6, %v7956_v41, %v7957_v23 }
 0x2ab   : > { %v10249_v27 = vcombine.low %v7955_v52, %v7958_v60  ;;  %v7962_v50 = vrot.slane %v7960_v26, 4  ;;  %v7961_v14 = vsel %vm13130_vm6, %v7959_v40, %v7960_v26  ;;  %v7982_v26 = vrot.slane %v7980_v55, 4  ;;  %v12308_v52 = vld [vmem:[%s12537_s9 + $0x80] sm:$0xf] }
 0x2ac   : > { %v7983_v60 = vrot.slane %v12308_v52, 5 }
 0x2ad   : > { %v7964_v53 = vsel %vm13130_vm6, %v7962_v50, %v7963_v42  ;;  %v12310_v50 = vld [vmem:[%s12537_s9 + $0x90] sm:$0xf]  ;;  %v10214_v42 = vld [vmem:[%s12537_s9 + $0x8c] sm:$0xe] }
 0x2ae   : > { %v10250_v16 = vcombine.low %v7961_v14, %v7964_v53  ;;  %v7984_v40 = vsel %vm13130_vm6, %v7982_v26, %v7983_v60  ;;  %v7993_v48 = vrot.slane %v12310_v50, 5  ;;  %v7985_v43 = vrot.slane %v7983_v60, 4  ;;  %v12311_v14 = vld [vmem:[%s12537_s9 + $0x88] sm:$0x1] }
 0x2af   : > { %v7989_v53 = vrot.slane %v12311_v14, 5 }
 0x2b1   : > { %11334 = vmatmul.mubr.msk.bf16.vlgmr.msra.gmra.mrb[0].mxu0 %vm1120_vm2, %v10246_v30  ;;  %v7973_v30 = vrot.slane %v12305_v39, 5  ;;  %v10230_v39 = vrot.slane %v10214_v42, 9  ;;  %v12317_v42 = vld [vmem:[%s12537_s9 + $0xac] sm:$0xf] }
 0x2b2   : > { %11337 = vmatprep.mubr.msk.bf16.mxu0 %vm1120_vm2, %v10247_v6  ;;  %v7968_v6 = vsel %vm13130_vm6, %v10228_v13, %v7967_v11 }
 0x2b3   : > { %v10251_v41 = vcombine.low %v7968_v6, %v7971_v62  ;;  %v7975_v23 = vrot.slane %v7973_v30, 4  ;;  %v7974_v19 = vsel %vm13130_vm6, %v7972_v12, %v7973_v30  ;;  %v7995_v30 = vrot.slane %v7993_v48, 4  ;;  %v12312_v6 = vld [vmem:[%s12537_s9 + $0x94] sm:$0xf] }
 0x2b4   : > { %v7996_v62 = vrot.slane %v12312_v6, 5 }
 0x2b5   : > { %v7977_v11 = vsel %vm13130_vm6, %v7975_v23, %v7976_v58  ;;  %v12314_v23 = vld [vmem:[%s12537_s9 + $0xa4] sm:$0xf]  ;;  %v10215_v58 = vld [vmem:[%s12537_s9 + $0xa0] sm:$0xe] }
 0x2b6   : > { %v10252_v13 = vcombine.low %v7974_v19, %v7977_v11  ;;  %v7997_v12 = vsel %vm13130_vm6, %v7995_v30, %v7996_v62  ;;  %v8006_v1 = vrot.slane %v12314_v23, 5  ;;  %v7998_v52 = vrot.slane %v7996_v62, 4  ;;  %v12315_v19 = vld [vmem:[%s12537_s9 + $0x9c] sm:$0x1] }
 0x2b7   : > { %v8002_v11 = vrot.slane %v12315_v19, 5 }
 0x2b9   : > { %11338 = vmatmul.mubr.msk.bf16.gmra.mrb[4].mxu0 %vm1120_vm2, %v10248_v17  ;;  %v7986_v17 = vrot.slane %v12309_v9, 5  ;;  %v10231_v9 = vrot.slane %v10215_v58, 9  ;;  %v12321_v58 = vld [vmem:[%s12537_s9 + $0xc0] sm:$0xf] }
 0x2ba   : > { %11341 = vmatprep.mubr.msk.bf16.mxu0 %vm1120_vm2, %v10249_v27  ;;  %v7981_v27 = vsel %vm13130_vm6, %v10229_v47, %v7980_v55 }
 0x2bb   : > { %v10253_v35 = vcombine.low %v7981_v27, %v7984_v40  ;;  %v7988_v45 = vrot.slane %v7986_v17, 4  ;;  %v7987_v10 = vsel %vm13130_vm6, %v7985_v43, %v7986_v17  ;;  %v8008_v17 = vrot.slane %v8006_v1, 4  ;;  %v12316_v27 = vld [vmem:[%s12537_s9 + $0xa8] sm:$0xf] }
 0x2bc   : > { %v8009_v40 = vrot.slane %v12316_v27, 5 }
 0x2bd   : > { %v7990_v55 = vsel %vm13130_vm6, %v7988_v45, %v7989_v53  ;;  %v12318_v45 = vld [vmem:[%s12537_s9 + $0xb8] sm:$0xf]  ;;  %v10216_v53 = vld [vmem:[%s12537_s9 + $0xb4] sm:$0xe] }
 0x2be   : > { %v10254_v47 = vcombine.low %v7987_v10, %v7990_v55  ;;  %v8010_v43 = vsel %vm13130_vm6, %v8008_v17, %v8009_v40  ;;  %v8019_v14 = vrot.slane %v12318_v45, 5  ;;  %v8011_v6 = vrot.slane %v8009_v40, 4  ;;  %v12319_v10 = vld [vmem:[%s12537_s9 + $0xb0] sm:$0x1] }
 0x2bf   : > { %v8015_v55 = vrot.slane %v12319_v10, 5 }
 0x2c1   : > { %11342 = vmatmul.mubr.msk.bf16.gmra.mrb[8].mxu0 %vm1120_vm2, %v10250_v16  ;;  %v7999_v16 = vrot.slane %v12313_v3, 5  ;;  %v10232_v3 = vrot.slane %v10216_v53, 9 }
 0x2c2   : > { %11345 = vmatprep.mubr.msk.bf16.mxu0 %vm1120_vm2, %v10251_v41  ;;  %v7994_v41 = vsel %vm13130_vm6, %v10230_v39, %v7993_v48 }
 0x2c3   : > { %v10255_v26 = vcombine.low %v7994_v41, %v7997_v12  ;;  %v8001_v60 = vrot.slane %v7999_v16, 4  ;;  %v8000_v50 = vsel %vm13130_vm6, %v7998_v52, %v7999_v16  ;;  %v8021_v16 = vrot.slane %v8019_v14, 4  ;;  %v12320_v41 = vld [vmem:[%s12537_s9 + $0xbc] sm:$0xf] }
 0x2c4   : > { %v8022_v12 = vrot.slane %v12320_v41, 5 }
 0x2c5   : > { %v8003_v48 = vsel %vm13130_vm6, %v8001_v60, %v8002_v11  ;;  %v12322_v60 = vld [vmem:[%s12537_s9 + $0xcc] sm:$0xf]  ;;  %v10217_v11 = vld [vmem:[%s12537_s9 + $0xc8] sm:$0xe] }
 0x2c6   : > { %v10256_v39 = vcombine.low %v8000_v50, %v8003_v48  ;;  %v8023_v52 = vsel %vm13130_vm6, %v8021_v16, %v8022_v12  ;;  %v8032_v19 = vrot.slane %v12322_v60, 5  ;;  %v8024_v27 = vrot.slane %v8022_v12, 4 }
 0x2c7   : > { %v8028_v50 = vrot.slane %v14162_v57, 5  ;;  %v10233_v48 = vrot.slane %v10217_v11, 9 }
 0x2c9   : > { %11346 = vmatmul.mubr.msk.bf16.gmra.mrb[12].mxu0 %vm1120_vm2, %v10252_v13  ;;  %v8012_v13 = vrot.slane %v12317_v42, 5  ;;  %v8034_v42 = vrot.slane %v8032_v19, 4  ;;  %v8033_v53 = vsel %vm13130_vm6, %v10233_v48, %v8032_v19  ;;  %v8054_v19 = vrot.slane %v14251_v24, 5 }
 0x2ca   : > { %11349 = vmatprep.mubr.msk.bf16.mxu0 %vm1120_vm2, %v10253_v35  ;;  %v8007_v35 = vsel %vm13130_vm6, %v10231_v9, %v8006_v1 }
 0x2cb   : > { %v10257_v30 = vcombine.low %v8007_v35, %v8010_v43  ;;  %v8014_v62 = vrot.slane %v8012_v13, 4  ;;  %v8013_v23 = vsel %vm13130_vm6, %v8011_v6, %v8012_v13  ;;  %v12323_v13 = vld [vmem:[%s12537_s9 + $0xd0] sm:$0xf] }
 0x2cc   : > { %v8035_v35 = vrot.slane %v12323_v13, 5 }
 0x2cd   : > { %v8016_v1 = vsel %vm13130_vm6, %v8014_v62, %v8015_v55 }
 0x2ce   : > { %v10258_v9 = vcombine.low %v8013_v23, %v8016_v1  ;;  %v8036_v57 = vsel %vm13130_vm6, %v8034_v42, %v8035_v35  ;;  %v8037_v10 = vrot.slane %v8035_v35, 4  ;;  %v8051_v23 = vrot.slane %v14206_v59, 5 }
 0x2cf   : > { %v10261_v62 = vcombine.low %v8033_v53, %v8036_v57  ;;  %v8061_v59 = vrot.slane %v14262_v25, 5  ;;  %v8071_v25 = vrot.slane %v14278_v54, 5  ;;  %v8077_v57 = vrot.slane %v14308_v29, 5 }
 0x2d0   : > { %v8053_v60 = vrot.slane %v8051_v23, 4 }
 0x2d1   : > { %11350 = vmatmul.mubr.msk.bf16.gmra.mrb[16].mxu0 %vm1120_vm2, %v10254_v47  ;;  %v8025_v47 = vrot.slane %v12321_v58, 5  ;;  %v10219_v58 = vld [vmem:[%s12537_s9 + $0xf0] sm:$0xe]  ;;  %v8063_v13 = vrot.slane %v8061_v59, 4 }
 0x2d2   : > { %11353 = vmatprep.mubr.msk.bf16.mxu0 %vm1120_vm2, %v10255_v26  ;;  %v8020_v26 = vsel %vm13130_vm6, %v10232_v3, %v8019_v14  ;;  %v8038_v14 = vrot.slane %v14171_v2, 5  ;;  %v8041_v3 = vrot.slane %v14213_v32, 5  ;;  %v8048_v2 = vrot.slane %v14203_v0, 5 }
 0x2d3   : > { %v10259_v17 = vcombine.low %v8020_v26, %v8023_v52  ;;  %v8027_v40 = vrot.slane %v8025_v47, 4  ;;  %v8026_v43 = vsel %vm13130_vm6, %v8024_v27, %v8025_v47  ;;  %v8058_v0 = vrot.slane %v14234_v21, 5 }
 0x2d4   : > { %v8040_v55 = vrot.slane %v8038_v14, 4  ;;  %v8039_v12 = vsel %vm13130_vm6, %v8037_v10, %v8038_v14  ;;  %v8050_v52 = vrot.slane %v8048_v2, 4  ;;  %v10235_v11 = vrot.slane %v10219_v58, 9  ;;  %v10222_v58 = vld [vmem:[%s12537_s9 + $0x12c] sm:$0xe] }
 0x2d5   : > { %v8029_v45 = vsel %vm13130_vm6, %v8027_v40, %v8028_v50  ;;  %v8055_v21 = vsel %vm13130_vm6, %v8053_v60, %v8054_v19  ;;  %v8064_v27 = vrot.slane %v14265_v56, 5  ;;  %v10220_v50 = vld [vmem:[%s12537_s9 + $0x104] sm:$0xe]  ;;  %v8073_v14 = vrot.slane %v8071_v25, 4 }
 0x2d6   : > { %v10260_v6 = vcombine.low %v8026_v43, %v8029_v45  ;;  %v8059_v40 = vsel %vm13130_vm6, %v10235_v11, %v8058_v0  ;;  %v8067_v43 = vrot.slane %v14303_v5, 5  ;;  %v10236_v45 = vrot.slane %v10220_v50, 9  ;;  %v10223_v50 = vld [vmem:[%s12537_s9 + $0x140] sm:$0xe] }
 0x2d7   : > { %v8066_v35 = vrot.slane %v8064_v27, 4  ;;  %v8074_v56 = vrot.slane %v14292_v44, 5  ;;  %v8065_v53 = vsel %vm13130_vm6, %v8063_v13, %v8064_v27  ;;  %v8084_v44 = vrot.slane %v14321_v37, 5 }
 0x2d8   : > { %v8093_v11 = vrot.slane %v14383_v22, 5 }
 0x2d9   : > { %11354 = vmatmul.mubr.msk.bf16.gmra.mrb[20].mxu0 %vm1120_vm2, %v10256_v39  ;;  %v8045_v39 = vrot.slane %v14177_v15, 5  ;;  %v8042_v15 = vsel %vm13130_vm6, %v8040_v55, %v8041_v3  ;;  %v8068_v54 = vsel %vm13130_vm6, %v8066_v35, %v8067_v43  ;;  %v8075_v5 = vsel %vm13130_vm6, %v8073_v14, %v8074_v56 }
 0x2da   : > { %11357 = vmatprep.mubr.msk.bf16.mxu0 %vm1120_vm2, %v10257_v30  ;;  %v10218_v30 = vld [vmem:[%s12537_s9 + $0xdc] sm:$0xe]  ;;  %v10262_v47 = vcombine.low %v8039_v12, %v8042_v15  ;;  %v8076_v55 = vrot.slane %v8074_v56, 4  ;;  %v8079_v3 = vrot.slane %v8077_v57, 4  ;;  %v8087_v12 = vrot.slane %v14342_v18, 5 }
 0x2db   : > { %v10234_v16 = vrot.slane %v10218_v30, 9  ;;  %v8047_v41 = vrot.slane %v8045_v39, 4  ;;  %v10221_v30 = vld [vmem:[%s12537_s9 + $0x118] sm:$0xe] }
 0x2dc   : > { %v10237_v29 = vrot.slane %v10221_v30, 9  ;;  %v8089_v60 = vrot.slane %v8087_v12, 4  ;;  %v10224_v30 = vld [vmem:[%s12537_s9 + $0x154] sm:$0xe]  ;;  %s202_s9 = sand.u32 1, %s12394_s16  }
 0x2dd   : > { %v8046_v1 = vsel %vm13130_vm6, %v10234_v16, %v8045_v39  ;;  %v8049_v32 = vsel %vm13130_vm6, %v8047_v41, %v8048_v2  ;;  %v8072_v39 = vsel %vm13130_vm6, %v10236_v45, %v8071_v25  ;;  %v8080_v16 = vrot.slane %v14351_v51, 5  ;;  %s9308_s14 = sshll.u32 %s202_s9, 7  ;;  %s15331_s10 = scalar_lea.sflag [#allocation3], %s202_s9 }
 0x2de   : > { %v10263_v26 = vcombine.low %v8046_v1, %v8049_v32  ;;  %v10267_v10 = vcombine.low %v8072_v39, %v8075_v5  ;;  %v8086_v2 = vrot.slane %v8084_v44, 4  ;;  %v8090_v1 = vrot.slane %v14348_v46, 5  ;;  %s15291_s23 = scalar_lea.vmem [#allocation2], %s9308_s14  ;;  %s12330_s14 = scalar_lea.vmem %s12329_s13, 4096 }
 0x2df   : > { %v8081_v51 = vsel %vm13130_vm6, %v8079_v3, %v8080_v16  ;;  %v8085_v32 = vsel %vm13130_vm6, %v10237_v29, %v8084_v44  ;;  %v10238_v46 = vrot.slane %v10222_v58, 9  ;;  %v8110_v25 = vrot.slane %v14405_v28, 5  ;;  %s9217_s6 = sshll.u32 %s15291_s23, 4  ;;  %s15325_s6 = int_to_ptr.vmem [resolvable:$true] %s9217_s6 }
 0x2e0   : > { %v8088_v18 = vsel %vm13130_vm6, %v8086_v2, %v8087_v12  ;;  %v8092_v19 = vrot.slane %v8090_v1, 4  ;;  %v8091_v27 = vsel %vm13130_vm6, %v8089_v60, %v8090_v1  ;;  %v8106_v45 = vrot.slane %v14428_v4, 5  ;;  %s12324_s11 = scalar_lea.vmem %s15325_s6, 2048  ;;  %p12331_p2 = scmp.lt.s32.totalorder %s15325_s6, %s12329_s13 }
 0x2e1   : > { %11358 = vmatmul.mubr.msk.bf16.gmra.mrb[24].mxu0 %vm1120_vm2, %v10258_v9  ;;  %v8060_v9 = vrot.slane %v8058_v0, 4  ;;  %v8097_v0 = vrot.slane %v14366_v61, 5  ;;  %v8112_v56 = vrot.slane %v8110_v25, 4  ;;  %v8116_v39 = vrot.slane %v14440_v31, 5  ;;  %p12325_p13 = scmp.ne.s32.totalorder %s15325_s6, %s12324_s11  ;;  %p12332_p4 = scmp.lt.s32.totalorder %s12330_s14, %s12324_s11 }
 0x2e2   : > { %11361 = vmatprep.mubr.msk.bf16.mxu0 %vm1120_vm2, %v10259_v17  ;;  %v8052_v17 = vsel %vm13130_vm6, %v8050_v52, %v8051_v23  ;;  %v8078_v23 = vsel %vm13130_vm6, %v8076_v55, %v8077_v57  ;;  %v10269_v52 = vcombine.low %v8085_v32, %v8088_v18  ;;  %v8094_v22 = vsel %vm13130_vm6, %v8092_v19, %v8093_v11 }
 0x2e3   : > { %v8062_v24 = vsel %vm13130_vm6, %v8060_v9, %v8061_v59  ;;  %v10264_v48 = vcombine.low %v8052_v17, %v8055_v21  ;;  %v8099_v59 = vrot.slane %v8097_v0, 4  ;;  %v8100_v17 = vrot.slane %v14392_v63, 5  ;;  %p12326_p0 = pnand %p12325_p13, %p12499_p3  ;;  %p12333_p5 = por %p12332_p4, %p12331_p2 }
 0x2e4   : > { %v10265_v42 = vcombine.low %v8059_v40, %v8062_v24  ;;  %v8103_v40 = vrot.slane %v14399_v33, 5  ;;  %v8098_v24 = vsel %vm13130_vm6, %v10238_v46, %v8097_v0  ;;  %v10239_v33 = vrot.slane %v10223_v50, 9 }
 0x2e5   : > { %v8101_v63 = vsel %vm13130_vm6, %v8099_v59, %v8100_v17  ;;  %v8102_v35 = vrot.slane %v8100_v17, 4  ;;  %v8123_v44 = vrot.slane %v14453_v7, 5  ;;  %v8118_v16 = vrot.slane %v8116_v39, 4  ;;  %p12327_p1 = pneg %p12326_p0 }
 0x2e6   : > { %v10271_v13 = vcombine.low %v8098_v24, %v8101_v63  ;;  %v8105_v43 = vrot.slane %v8103_v40, 4  ;;  %v8111_v5 = vsel %vm13130_vm6, %v10239_v33, %v8110_v25  ;;  %v8119_v29 = vrot.slane %v14471_v49, 5 }
 0x2e7   : > { %v8104_v57 = vsel %vm13130_vm6, %v8102_v35, %v8103_v40  ;;  %v10240_v31 = vrot.slane %v10224_v30, 9  ;;  %v8125_v12 = vrot.slane %v8123_v44, 4  ;;  %v8129_v32 = vrot.slane %v14478_v20, 5  ;;  %p12334_p6 = pnand %p12333_p5, %p12327_p1 }
 0x2e8   : > { %v8107_v4 = vsel %vm13130_vm6, %v8105_v43, %v8106_v45  ;;  %v8120_v49 = vsel %vm13130_vm6, %v8118_v16, %v8119_v29  ;;  %v8132_v19 = vrot.slane %v14502_v36, 5 }
 0x2e9   : > { %11362 = vmatmul.mubr.msk.bf16.gmra.mrb[28].mxu0 %vm1120_vm2, %v10260_v6  ;;  %v10266_v6 = vcombine.low %v8065_v53, %v8068_v54  ;;  %v8113_v53 = vrot.slane %v14434_v8, 5  ;;  %v8124_v18 = vsel %vm13130_vm6, %v10240_v31, %v8123_v44  ;;  %v8131_v60 = vrot.slane %v8129_v32, 4  ;;  %v8832_v44 = vld [vmem:[%s15386_s3 + $0x8] sm:$0xff] }
 0x2ea   : > { %11365 = vmatprep.mubr.msk.bf16.mxu0 %vm1120_vm2, %v10261_v62  ;;  %8959 = vmatprep.mubr.f32.mxu1 %v8832_v44 }
 0x2eb   : > { %v8114_v8 = vsel %vm13130_vm6, %v8112_v56, %v8113_v53  ;;  %v8115_v3 = vrot.slane %v8113_v53, 4  ;;  %v8133_v17 = vsel %vm13130_vm6, %v8131_v60, %v8132_v19 }
 0x2ec   : > { %v10273_v55 = vcombine.low %v8111_v5, %v8114_v8 }
 0x2ed   : > { %v8117_v1 = vsel %vm13130_vm6, %v8115_v3, %v8116_v39 }
 0x2ee   : > { %v10274_v0 = vcombine.low %v8117_v1, %v8120_v49 }
 0x2f1   : > { %11366 = vmatmul.mubr.msk.bf16.gmra.mrb[32].mxu0 %vm1120_vm2, %v10262_v47  ;;  %v10268_v47 = vcombine.low %v8078_v23, %v8081_v51  ;;  %v8126_v23 = vrot.slane %v14475_v34, 5 }
 0x2f2   : > { %11369 = vmatprep.mubr.msk.bf16.mxu0 %vm1120_vm2, %v10263_v26 }
 0x2f3   : > { %v8127_v34 = vsel %vm13130_vm6, %v8125_v12, %v8126_v23 }
 0x2f9   : > { %11370 = vmatmul.mubr.msk.bf16.gmra.mrb[36].mxu0 %vm1120_vm2, %v10264_v48  ;;  %v10270_v48 = vcombine.low %v8091_v27, %v8094_v22 }
 0x2fa   : > { %11373 = vmatprep.mubr.msk.bf16.mxu0 %vm1120_vm2, %v10265_v42 }
 0x2ff   : > { %v14701_v62 = vpop.f32.mrb[0].mxu1 }
 0x300   : > { %v14704_v41 = vpop.f32.mrb[1].mxu1 }
 0x301   : > { %v14707_v15 = vpop.f32.mrb[2].mxu1  ;;  %11374 = vmatmul.mubr.msk.bf16.gmra.mrb[40].mxu0 %vm1120_vm2, %v10266_v6  ;;  %v10272_v6 = vcombine.low %v8104_v57, %v8107_v4 }
 0x302   : > { %v14710_v37 = vpop.f32.mrb[3].mxu1  ;;  %11377 = vmatprep.mubr.msk.bf16.mxu0 %vm1120_vm2, %v10267_v10 }
 0x307   : > { %v14724_v26 = vpop.f32.mrb[4].mxu1 }
 0x308   : > { %v14727_v9 = vpop.f32.mrb[5].mxu1 }
 0x309   : > { %v14730_v21 = vpop.f32.mrb[6].mxu1  ;;  %11378 = vmatmul.mubr.msk.bf16.gmra.mrb[44].mxu0 %vm1120_vm2, %v10268_v47  ;;  %v10275_v47 = vcombine.low %v8124_v18, %v8127_v34 }
 0x30a   : > { %v14733_v61 = vpop.f32.mrb[7].mxu1  ;;  %11381 = vmatprep.mubr.msk.bf16.mxu0 %vm1120_vm2, %v10269_v52  ;;  %v8128_v52 = vrot.slane %v8126_v23, 4 }
 0x30c   : > { %v8130_v59 = vsel %vm13130_vm6, %v8128_v52, %v8129_v32 }
 0x30d   : > { %v10276_v27 = vcombine.low %v8130_v59, %v8133_v17 }
 0x30f   : > { %v14747_v42 = vpop.f32.mrb[8].mxu1 }
 0x310   : > { %v14750_v14 = vpop.f32.mrb[9].mxu1 }
 0x311   : > { %v14753_v54 = vpop.f32.mrb[10].mxu1  ;;  %11382 = vmatmul.mubr.msk.bf16.gmra.mrb[48].mxu0 %vm1120_vm2, %v10270_v48 }
 0x312   : > { %v14756_v28 = vpop.f32.mrb[11].mxu1  ;;  %11385 = vmatprep.mubr.msk.bf16.mxu0 %vm1120_vm2, %v10271_v13 }
 0x317   : > { %v14770_v10 = vpop.f32.mrb[12].mxu1 }
 0x318   : > { %v14773_v2 = vpop.f32.mrb[13].mxu1 }
 0x319   : > { %v14776_v51 = vpop.f32.mrb[14].mxu1  ;;  %11386 = vmatmul.mubr.msk.bf16.gmra.mrb[52].mxu0 %vm1120_vm2, %v10272_v6 }
 0x31a   : > { %v14779_v7 = vpop.f32.mrb[15].mxu1  ;;  %11389 = vmatprep.mubr.msk.bf16.mxu0 %vm1120_vm2, %v10273_v55 }
 0x31f   : > { %v14791_v58 = vpop.f32.mrb[16].mxu1 }
 0x320   : > { %v14794_v11 = vpop.f32.mrb[17].mxu1 }
 0x321   : > { %v14796_v46 = vpop.f32.mrb[18].mxu1  ;;  %11390 = vmatmul.mubr.msk.bf16.gmra.mrb[56].mxu0 %vm1120_vm2, %v10274_v0 }
 0x322   : > { %v14799_v20 = vpop.f32.mrb[19].mxu1  ;;  %11393 = vmatprep.mubr.msk.bf16.mxu0 %vm1120_vm2, %v10275_v47 }
 0x327   : > { %v14806_v22 = vpop.f32.mrb[20].mxu1 }
 0x328   : > { %v14808_v36 = vpop.f32.mrb[21].mxu1 }
 0x329   : > { %v14810_v40 = vpop.f32.mrb[22].mxu1  ;;  %11394 = vmatmul.mubr.msk.bf16.gmra.mrb[60].mxu0 %vm1120_vm2, %v10276_v27 }
 0x32a   : > { %v14813_v24 = vpop.f32.mrb[23].mxu1 }
 0x32f   : > { %v14815_v63 = vpop.f32.mrb[24].mxu1 }
 0x330   : > { %v14817_v25 = vpop.f32.mrb[25].mxu1 }
 0x331   : > { %v14819_v50 = vpop.f32.mrb[26].mxu1 }
 0x332   : > { %v14821_v48 = vpop.f32.mrb[27].mxu1 }
 0x337   : > { %v14823_v38 = vpop.f32.mrb[28].mxu1 }
 0x338   : > { %v14825_v13 = vpop.f32.mrb[29].mxu1 }
 0x339   : > { %v14827_v35 = vpop.f32.mrb[30].mxu1 }
 0x33a   : > { %v14829_v43 = vpop.f32.mrb[31].mxu1 }
 0x33f   : > { %v14831_v45 = vpop.f32.mrb[32].mxu1 }
 0x340   : > { %v14833_v33 = vpop.f32.mrb[33].mxu1 }
 0x341   : > { %v14835_v56 = vpop.f32.mrb[34].mxu1 }
 0x342   : > { %v14837_v53 = vpop.f32.mrb[35].mxu1 }
 0x347   : > { %v14839_v57 = vpop.f32.mrb[36].mxu1 }
 0x348   : > { %v14841_v4 = vpop.f32.mrb[37].mxu1 }
 0x349   : > { %v14843_v39 = vpop.f32.mrb[38].mxu1 }
 0x34a   : > { %v14845_v5 = vpop.f32.mrb[39].mxu1 }
 0x34f   : > { %v14847_v8 = vpop.f32.mrb[40].mxu1 }
 0x350   : > { %v14852_v30 = vpop.f32.mrb[41].mxu1 }
 0x351   : > { %v14854_v6 = vpop.f32.mrb[42].mxu1 }
 0x352   : > { %v14856_v55 = vpop.f32.mrb[43].mxu1 }
 0x357   : > { %v14858_v3 = vpop.f32.mrb[44].mxu1 }
 0x358   : > { %v14860_v16 = vpop.f32.mrb[45].mxu1 }
 0x359   : > { %v14862_v29 = vpop.f32.mrb[46].mxu1 }
 0x35a   : > { %v14864_v31 = vpop.f32.mrb[47].mxu1 }
 0x35f   : > { %v14866_v12 = vpop.f32.mrb[48].mxu1 }
 0x360   : > { %15434 = vst [vmem:[#allocation6_spill] sm:$0xff] %v14866_v12  ;;  %v14868_v23 = vpop.f32.mrb[49].mxu1 }
 0x361   : > { %15435 = vst [vmem:[#allocation7_spill] sm:$0xff] %v14868_v23  ;;  %v14870_v1 = vpop.f32.mrb[50].mxu1 }
 0x362   : > { %15436 = vst [vmem:[#allocation8_spill] sm:$0xff] %v14870_v1  ;;  %v14872_v49 = vpop.f32.mrb[51].mxu1 }
 0x363   : > { %15437 = vst [vmem:[#allocation9_spill] sm:$0xff] %v14872_v49 }
 0x367   : > { %v14874_v32 = vpop.f32.mrb[52].mxu1 }
 0x368   : > { %15438 = vst [vmem:[#allocation10_spill] sm:$0xff] %v14874_v32  ;;  %v14876_v18 = vpop.f32.mrb[53].mxu1 }
 0x369   : > { %15439 = vst [vmem:[#allocation11_spill] sm:$0xff] %v14876_v18  ;;  %v14878_v34 = vpop.f32.mrb[54].mxu1 }
 0x36a   : > { %15440 = vst [vmem:[#allocation12_spill] sm:$0xff] %v14878_v34  ;;  %v14880_v0 = vpop.f32.mrb[55].mxu1 }
 0x36b   : > { %15441 = vst [vmem:[#allocation13_spill] sm:$0xff] %v14880_v0  ;;  %v14901_v0 = vld [vmem:[%s15385_s2] ss:$0 sm:$0xff] }
 0x36f   : > { %v14882_v47 = vpop.f32.mrb[56].mxu1 }
 0x370   : > { %15442 = vst [vmem:[#allocation14_spill] sm:$0xff] %v14882_v47  ;;  %v14884_v52 = vpop.f32.mrb[57].mxu1 }
 0x371   : > { %15443 = vst [vmem:[#allocation15_spill] sm:$0xff] %v14884_v52  ;;  %v14886_v60 = vpop.f32.mrb[58].mxu1 }
 0x372   : > { %15444 = vst [vmem:[#allocation16_spill] sm:$0xff] %v14886_v60  ;;  %v14888_v19 = vpop.f32.mrb[59].mxu1 }
 0x373   : > { %15445 = vst [vmem:[#allocation17_spill] sm:$0xff] %v14888_v19 }
 0x377   : > { %v14890_v59 = vpop.f32.mrb[60].mxu1 }
 0x378   : > { %15446 = vst [vmem:[#allocation5_spill] sm:$0xff] %v14890_v59  ;;  %v14892_v17 = vpop.f32.mrb[61].mxu1 }
 0x379   : > { %15447 = vst [vmem:[#allocation18_spill] sm:$0xff] %v14892_v17  ;;  %v14894_v27 = vpop.f32.mrb[62].mxu1 }
 0x37a   : > { %15448 = vst [vmem:[#allocation19_spill] sm:$0xff] %v14894_v27  ;;  %v14896_v44 = vpop.f32.mrb[63].mxu1 }
 0x37b   : > { %15449 = vst [vmem:[#allocation20_spill] sm:$0xff] %v14896_v44 }
 0x384   : > { %v11335_v18 = vpop.f32.mrb[0].mxu0 }
 0x385   : > { %v11461_v52 = vadd.f32 %v11335_v18, %v14701_v62  ;;  %v8377_v47 = vpop.f32.mrb[1].mxu0 }
 0x386   : > { %v11462_v60 = vadd.f32 %v8377_v47, %v14704_v41  ;;  %v11336_v19 = vpop.f32.mrb[2].mxu0 }
 0x387   : > { %v8705_v59 = vadd.f32 %v11461_v52, %v14901_v0  ;;  %v11463_v17 = vadd.f32 %v11336_v19, %v14707_v15  ;;  %v8380_v34 = vpop.f32.mrb[3].mxu0 }
 0x388   : > { %v8703_v27 = vadd.f32 %v11462_v60, %v14901_v0  ;;  %v11464_v44 = vadd.f32 %v8380_v34, %v14710_v37 }
 0x389   : > { %v8706_v32 = vadd.f32 %v11463_v17, %v14901_v0  ;;  %v8769_v1 = vmax.f32 %v8705_v59, 0.0 }
 0x38a   : > { %v8704_v49 = vadd.f32 %v11464_v44, %v14901_v0  ;;  %v8767_v62 = vmax.f32 %v8703_v27, 0.0 }
 0x38b   : > { %v8770_v23 = vmax.f32 %v8706_v32, 0.0 }
 0x38c   : > { %v8768_v18 = vmax.f32 %v8704_v49, 0.0  ;;  %v11339_v12 = vpop.f32.mrb[4].mxu0 }
 0x38d   : > { %v14911_v41 = vpack.c.bf16 %v8770_v23, %v8769_v1  ;;  %v11465_v47 = vadd.f32 %v11339_v12, %v14724_v26  ;;  %v8393_v52 = vpop.f32.mrb[5].mxu0 }
 0x38e   : > { %v14914_v15 = vpack.c.bf16 %v8768_v18, %v8767_v62  ;;  %v11466_v60 = vadd.f32 %v8393_v52, %v14727_v9  ;;  %v11340_v19 = vpop.f32.mrb[6].mxu0 }
 0x38f   : > { %v8709_v37 = vadd.f32 %v11465_v47, %v14901_v0  ;;  %v11467_v34 = vadd.f32 %v11340_v19, %v14730_v21  ;;  %v8396_v17 = vpop.f32.mrb[7].mxu0 }
 0x390   : > { %v8707_v32 = vadd.f32 %v11466_v60, %v14901_v0  ;;  %v11468_v49 = vadd.f32 %v8396_v17, %v14733_v61 }
 0x391   : > { %v8710_v23 = vadd.f32 %v11467_v34, %v14901_v0  ;;  %v8773_v26 = vmax.f32 %v8709_v37, 0.0 }
 0x392   : > { %v8708_v1 = vadd.f32 %v11468_v49, %v14901_v0  ;;  %v8771_v59 = vmax.f32 %v8707_v32, 0.0 }
 0x393   : > { %v8774_v12 = vmax.f32 %v8710_v23, 0.0 }
 0x394   : > { %v8772_v27 = vmax.f32 %v8708_v1, 0.0  ;;  %v11343_v44 = vpop.f32.mrb[8].mxu0 }
 0x395   : > { %v14923_v9 = vpack.c.bf16 %v8774_v12, %v8773_v26  ;;  %v11469_v62 = vadd.f32 %v11343_v44, %v14747_v42  ;;  %v8409_v18 = vpop.f32.mrb[9].mxu0 }
 0x396   : > { %v14926_v21 = vpack.c.bf16 %v8772_v27, %v8771_v59  ;;  %v11470_v47 = vadd.f32 %v8409_v18, %v14750_v14  ;;  %v11344_v52 = vpop.f32.mrb[10].mxu0 }
 0x397   : > { %v8713_v61 = vadd.f32 %v11469_v62, %v14901_v0  ;;  %v11471_v60 = vadd.f32 %v11344_v52, %v14753_v54  ;;  %v8412_v19 = vpop.f32.mrb[11].mxu0 }
 0x398   : > { %v8711_v37 = vadd.f32 %v11470_v47, %v14901_v0  ;;  %v11472_v34 = vadd.f32 %v8412_v19, %v14756_v28 }
 0x399   : > { %v8714_v17 = vadd.f32 %v11471_v60, %v14901_v0  ;;  %v8777_v42 = vmax.f32 %v8713_v61, 0.0 }
 0x39a   : > { %v8712_v32 = vadd.f32 %v11472_v34, %v14901_v0  ;;  %v8775_v23 = vmax.f32 %v8711_v37, 0.0 }
 0x39b   : > { %v8778_v49 = vmax.f32 %v8714_v17, 0.0 }
 0x39c   : > { %v8776_v1 = vmax.f32 %v8712_v32, 0.0  ;;  %v11347_v26 = vpop.f32.mrb[12].mxu0 }
 0x39d   : > { %v14935_v14 = vpack.c.bf16 %v8778_v49, %v8777_v42  ;;  %v11473_v12 = vadd.f32 %v11347_v26, %v14770_v10  ;;  %v8425_v59 = vpop.f32.mrb[13].mxu0 }
 0x39e   : > { %v14938_v54 = vpack.c.bf16 %v8776_v1, %v8775_v23  ;;  %v11474_v27 = vadd.f32 %v8425_v59, %v14773_v2  ;;  %v11348_v44 = vpop.f32.mrb[14].mxu0 }
 0x39f   : > { %v8717_v28 = vadd.f32 %v11473_v12, %v14901_v0  ;;  %v11475_v62 = vadd.f32 %v11348_v44, %v14776_v51  ;;  %v8428_v18 = vpop.f32.mrb[15].mxu0 }
 0x3a0   : > { %v8715_v47 = vadd.f32 %v11474_v27, %v14901_v0  ;;  %v11476_v52 = vadd.f32 %v8428_v18, %v14779_v7 }
 0x3a1   : > { %v8718_v61 = vadd.f32 %v11475_v62, %v14901_v0  ;;  %v8781_v10 = vmax.f32 %v8717_v28, 0.0 }
 0x3a2   : > { %v8716_v60 = vadd.f32 %v11476_v52, %v14901_v0  ;;  %v8779_v37 = vmax.f32 %v8715_v47, 0.0 }
 0x3a3   : > { %v8782_v19 = vmax.f32 %v8718_v61, 0.0 }
 0x3a4   : > { %v8780_v34 = vmax.f32 %v8716_v60, 0.0  ;;  %v11351_v17 = vpop.f32.mrb[16].mxu0 }
 0x3a5   : > { %v14947_v2 = vpack.c.bf16 %v8782_v19, %v8781_v10  ;;  %v11477_v32 = vadd.f32 %v11351_v17, %v14791_v58  ;;  %v8441_v42 = vpop.f32.mrb[17].mxu0 }
 0x3a6   : > { %v14950_v51 = vpack.c.bf16 %v8780_v34, %v8779_v37  ;;  %v11478_v49 = vadd.f32 %v8441_v42, %v14794_v11  ;;  %v11352_v23 = vpop.f32.mrb[18].mxu0 }
 0x3a7   : > { %v8721_v7 = vadd.f32 %v11477_v32, %v14901_v0  ;;  %v11479_v1 = vadd.f32 %v11352_v23, %v14796_v46  ;;  %v8444_v26 = vpop.f32.mrb[19].mxu0 }
 0x3a8   : > { %v8719_v12 = vadd.f32 %v11478_v49, %v14901_v0  ;;  %v11480_v59 = vadd.f32 %v8444_v26, %v14799_v20 }
 0x3a9   : > { %v8722_v27 = vadd.f32 %v11479_v1, %v14901_v0  ;;  %v8785_v58 = vmax.f32 %v8721_v7, 0.0 }
 0x3aa   : > { %v8720_v44 = vadd.f32 %v11480_v59, %v14901_v0  ;;  %v8783_v62 = vmax.f32 %v8719_v12, 0.0 }
 0x3ab   : > { %v8786_v28 = vmax.f32 %v8722_v27, 0.0 }
 0x3ac   : > { %v8784_v18 = vmax.f32 %v8720_v44, 0.0  ;;  %v11355_v47 = vpop.f32.mrb[20].mxu0 }
 0x3ad   : > { %v11481_v11 = vadd.f32 %v11355_v47, %v14806_v22  ;;  %v8457_v52 = vpop.f32.mrb[21].mxu0  ;;  %v11401_v61 = vpack.c.bf16 %v8786_v28, %v8785_v58 }
 0x3ae   : > { %v11482_v46 = vadd.f32 %v8457_v52, %v14808_v36  ;;  %v11356_v60 = vpop.f32.mrb[22].mxu0  ;;  %v11397_v10 = vpack.c.bf16 %v8784_v18, %v8783_v62 }
 0x3af   : > { %v8725_v19 = vadd.f32 %v11481_v11, %v14901_v0  ;;  %v11483_v20 = vadd.f32 %v11356_v60, %v14810_v40  ;;  %v8460_v37 = vpop.f32.mrb[23].mxu0 }
 0x3b0   : > { %v8723_v34 = vadd.f32 %v11482_v46, %v14901_v0  ;;  %v11484_v17 = vadd.f32 %v8460_v37, %v14813_v24  ;;  %11398 = vmatprep.subr.bf16.mxu1 %v11397_v10 }
 0x3b1   : > { %v8726_v32 = vadd.f32 %v11483_v20, %v14901_v0  ;;  %11400 = vmatpush3.bf16.msra.mxu1 %v14914_v15  ;;  %v8789_v36 = vmax.f32 %v8725_v19, 0.0 }
 0x3b2   : > { %v8724_v22 = vadd.f32 %v11484_v17, %v14901_v0  ;;  %11402 = vmatprep.subr.bf16.mxu1 %v11401_v61  ;;  %v8787_v49 = vmax.f32 %v8723_v34, 0.0 }
 0x3b3   : > { %v8790_v42 = vmax.f32 %v8726_v32, 0.0 }
 0x3b4   : > { %v8788_v23 = vmax.f32 %v8724_v22, 0.0  ;;  %v11359_v7 = vpop.f32.mrb[24].mxu0 }
 0x3b5   : > { %v11485_v40 = vadd.f32 %v11359_v7, %v14815_v63  ;;  %v8473_v1 = vpop.f32.mrb[25].mxu0  ;;  %11404 = vmatpush3.bf16.msra.mxu1 %v14911_v41  ;;  %v11409_v26 = vpack.c.bf16 %v8790_v42, %v8789_v36 }
 0x3b6   : > { %v11486_v24 = vadd.f32 %v8473_v1, %v14817_v25  ;;  %v11360_v12 = vpop.f32.mrb[26].mxu0  ;;  %v11405_v59 = vpack.c.bf16 %v8788_v23, %v8787_v49 }
 0x3b7   : > { %v8729_v15 = vadd.f32 %v11485_v40, %v14901_v0  ;;  %v11487_v27 = vadd.f32 %v11360_v12, %v14819_v50  ;;  %v8476_v44 = vpop.f32.mrb[27].mxu0 }
 0x3b8   : > { %v8727_v58 = vadd.f32 %v11486_v24, %v14901_v0  ;;  %v11488_v28 = vadd.f32 %v8476_v44, %v14821_v48  ;;  %11406 = vmatprep.subr.bf16.mxu1 %v11405_v59 }
 0x3b9   : > { %v8730_v63 = vadd.f32 %v11487_v27, %v14901_v0  ;;  %11408 = vmatpush3.bf16.msra.mxu1 %v14926_v21  ;;  %v8793_v25 = vmax.f32 %v8729_v15, 0.0 }
 0x3ba   : > { %v8728_v41 = vadd.f32 %v11488_v28, %v14901_v0  ;;  %11410 = vmatprep.subr.bf16.mxu1 %v11409_v26  ;;  %v8791_v18 = vmax.f32 %v8727_v58, 0.0 }
 0x3bb   : > { %v8794_v62 = vmax.f32 %v8730_v63, 0.0  ;;  %v8836_v63 = vld [vmem:[%s15386_s3 + $0x28] sm:$0xff] }
 0x3bc   : > { %v8792_v47 = vmax.f32 %v8728_v41, 0.0  ;;  %v11363_v11 = vpop.f32.mrb[28].mxu0 }
 0x3bd   : > { %v11489_v50 = vadd.f32 %v11363_v11, %v14823_v38  ;;  %v8489_v52 = vpop.f32.mrb[29].mxu0  ;;  %11412 = vmatpush3.bf16.msra.mxu1 %v14923_v9  ;;  %v11417_v61 = vpack.c.bf16 %v8794_v62, %v8793_v25  ;;  %v8840_v11 = vld [vmem:[%s15386_s3 + $0x48] sm:$0xff] }
 0x3be   : > { %v11490_v48 = vadd.f32 %v8489_v52, %v14825_v13  ;;  %v11364_v46 = vpop.f32.mrb[30].mxu0  ;;  %v11413_v60 = vpack.c.bf16 %v8792_v47, %v8791_v18 }
 0x3bf   : > { %v8733_v21 = vadd.f32 %v11489_v50, %v14901_v0  ;;  %v11491_v10 = vadd.f32 %v11364_v46, %v14827_v35  ;;  %v8492_v19 = vpop.f32.mrb[31].mxu0 }
 0x3c0   : > { %v8731_v20 = vadd.f32 %v11490_v48, %v14901_v0  ;;  %v11492_v37 = vadd.f32 %v8492_v19, %v14829_v43  ;;  %11414 = vmatprep.subr.bf16.mxu1 %v11413_v60 }
 0x3c1   : > { %v8734_v38 = vadd.f32 %v11491_v10, %v14901_v0  ;;  %11416 = vmatpush3.bf16.msra.mxu1 %v14938_v54  ;;  %v8797_v13 = vmax.f32 %v8733_v21, 0.0  ;;  %v8839_v21 = vld [vmem:[%s15386_s3 + $0x40] sm:$0xff] }
 0x3c2   : > { %v8732_v9 = vadd.f32 %v11492_v37, %v14901_v0  ;;  %11418 = vmatprep.subr.bf16.mxu1 %v11417_v61  ;;  %v8795_v17 = vmax.f32 %v8731_v20, 0.0  ;;  %v8844_v37 = vld [vmem:[%s15386_s3 + $0x68] sm:$0xff] }
 0x3c3   : > { %v8798_v34 = vmax.f32 %v8734_v38, 0.0 }
 0x3c4   : > { %v8796_v32 = vmax.f32 %v8732_v9, 0.0  ;;  %v11367_v22 = vpop.f32.mrb[32].mxu0 }
 0x3c5   : > { %v11493_v35 = vadd.f32 %v11367_v22, %v14831_v45  ;;  %v8505_v36 = vpop.f32.mrb[33].mxu0  ;;  %11420 = vmatpush3.bf16.msra.mxu1 %v14935_v14  ;;  %v11425_v42 = vpack.c.bf16 %v8798_v34, %v8797_v13  ;;  %v8848_v22 = vld [vmem:[%s15386_s3 + $0x88] sm:$0xff] }
 0x3c6   : > { %v11494_v43 = vadd.f32 %v8505_v36, %v14833_v33  ;;  %v11368_v49 = vpop.f32.mrb[34].mxu0  ;;  %v11421_v23 = vpack.c.bf16 %v8796_v32, %v8795_v17 }
 0x3c7   : > { %v8737_v54 = vadd.f32 %v11493_v35, %v14901_v0  ;;  %v11495_v7 = vadd.f32 %v11368_v49, %v14835_v56  ;;  %v8508_v40 = vpop.f32.mrb[35].mxu0 }
 0x3c8   : > { %v8735_v1 = vadd.f32 %v11494_v43, %v14901_v0  ;;  %v11496_v26 = vadd.f32 %v8508_v40, %v14837_v53  ;;  %11422 = vmatprep.subr.bf16.mxu1 %v11421_v23  ;;  %v8831_v53 = vld [vmem:[%s15386_s3] sm:$0xff] }
 0x3c9   : > { %v8738_v45 = vadd.f32 %v11495_v7, %v14901_v0  ;;  %11424 = vmatpush3.bf16.msra.mxu1 %v14950_v51  ;;  %v8801_v33 = vmax.f32 %v8737_v54, 0.0  ;;  %v8847_v54 = vld [vmem:[%s15386_s3 + $0x80] sm:$0xff] }
 0x3ca   : > { %v8736_v14 = vadd.f32 %v11496_v26, %v14901_v0  ;;  %11426 = vmatprep.subr.bf16.mxu1 %v11425_v42  ;;  %v8799_v12 = vmax.f32 %v8735_v1, 0.0  ;;  %v8852_v26 = vld [vmem:[%s15386_s3 + $0xa8] sm:$0xff] }
 0x3cb   : > { %v8802_v24 = vmax.f32 %v8738_v45, 0.0 }
 0x3cc   : > { %v8800_v59 = vmax.f32 %v8736_v14, 0.0  ;;  %v11371_v15 = vpop.f32.mrb[36].mxu0 }
 0x3cd   : > { %v14998_v27 = vpack.c.bf16 %v8802_v24, %v8801_v33  ;;  %v11497_v56 = vadd.f32 %v11371_v15, %v14839_v57  ;;  %v8521_v44 = vpop.f32.mrb[37].mxu0  ;;  %11428 = vmatpush3.bf16.msra.mxu1 %v14947_v2  ;;  %v8856_v15 = vld [vmem:[%s15386_s3 + $0xc8] sm:$0xff] }
 0x3ce   : > { %v15005_v51 = vpack.c.bf16 %v8800_v59, %v8799_v12  ;;  %v11498_v58 = vadd.f32 %v8521_v44, %v14841_v4  ;;  %v11372_v28 = vpop.f32.mrb[38].mxu0  ;;  %v8835_v4 = vld [vmem:[%s15386_s3 + $0x20] sm:$0xff] }
 0x3cf   : > { %v8741_v41 = vadd.f32 %v11497_v56, %v14901_v0  ;;  %v11499_v57 = vadd.f32 %v11372_v28, %v14843_v39  ;;  %v8524_v25 = vpop.f32.mrb[39].mxu0  ;;  %v15450_v28 = vld [vmem:[#allocation6_spill] sm:$0xff] }
 0x3d0   : > { %v8739_v2 = vadd.f32 %v11498_v58, %v14901_v0  ;;  %v11500_v62 = vadd.f32 %v8524_v25, %v14845_v5  ;;  %8960 = vmatmul.mubr.f32.vlgmr.msra.gmra.mrb[64].mxu1 %v8831_v53 }
 0x3d1   : > { %v8742_v18 = vadd.f32 %v11499_v57, %v14901_v0  ;;  %8964 = vmatprep.mubr.f32.mxu1 %v8836_v63  ;;  %v8805_v39 = vmax.f32 %v8741_v41, 0.0  ;;  %v8855_v57 = vld [vmem:[%s15386_s3 + $0xc0] sm:$0xff] }
 0x3d2   : > { %v8740_v47 = vadd.f32 %v11500_v62, %v14901_v0  ;;  %v8803_v52 = vmax.f32 %v8739_v2, 0.0  ;;  %v15451_v2 = vld [vmem:[#allocation7_spill] sm:$0xff] }
 0x3d3   : > { %v8806_v50 = vmax.f32 %v8742_v18, 0.0 }
 0x3d4   : > { %v8804_v61 = vmax.f32 %v8740_v47, 0.0  ;;  %v11375_v48 = vpop.f32.mrb[40].mxu0  ;;  %8965 = vmatmul.mubr.f32.gmra.mrb[66].mxu1 %v8835_v4  ;;  %v8860_v4 = vld [vmem:[%s15386_s3 + $0xe8] sm:$0xff] }
 0x3d5   : > { %v15023_v5 = vpack.c.bf16 %v8806_v50, %v8805_v39  ;;  %v11501_v46 = vadd.f32 %v11375_v48, %v14847_v8  ;;  %v8537_v60 = vpop.f32.mrb[41].mxu0  ;;  %8969 = vmatprep.mubr.f32.mxu1 %v8840_v11  ;;  %v15452_v11 = vld [vmem:[#allocation8_spill] sm:$0xff] }
 0x3d6   : > { %v15029_v10 = vpack.c.bf16 %v8804_v61, %v8803_v52  ;;  %v11502_v19 = vadd.f32 %v8537_v60, %v14852_v30  ;;  %v11376_v20 = vpop.f32.mrb[42].mxu0  ;;  %v8843_v30 = vld [vmem:[%s15386_s3 + $0x60] sm:$0xff] }
 0x3d7   : > { %v8745_v38 = vadd.f32 %v11501_v46, %v14901_v0  ;;  %v11503_v9 = vadd.f32 %v11376_v20, %v14854_v6  ;;  %v8540_v8 = vpop.f32.mrb[43].mxu0  ;;  %v15453_v61 = vld [vmem:[#allocation9_spill] sm:$0xff] }
 0x3d8   : > { %v8743_v13 = vadd.f32 %v11502_v19, %v14901_v0  ;;  %v11504_v34 = vadd.f32 %v8540_v8, %v14856_v55  ;;  %8970 = vmatmul.mubr.f32.gmra.mrb[68].mxu1 %v8839_v21  ;;  %v8859_v60 = vld [vmem:[%s15386_s3 + $0xe0] sm:$0xff]  ;;  %v8864_v19 = vld [vmem:[%s15386_s3 + $0x108] sm:$0xff] }
 0x3d9   : > { %v8746_v17 = vadd.f32 %v11503_v9, %v14901_v0  ;;  %8974 = vmatprep.mubr.f32.mxu1 %v8844_v37  ;;  %v8809_v6 = vmax.f32 %v8745_v38, 0.0 }
 0x3da   : > { %v8744_v32 = vadd.f32 %v11504_v34, %v14901_v0  ;;  %v8807_v36 = vmax.f32 %v8743_v13, 0.0  ;;  %v15454_v13 = vld [vmem:[#allocation10_spill] sm:$0xff] }
 0x3db   : > { %v8810_v35 = vmax.f32 %v8746_v17, 0.0 }
 0x3dc   : > { %v8808_v42 = vmax.f32 %v8744_v32, 0.0  ;;  %v11379_v43 = vpop.f32.mrb[44].mxu0  ;;  %8975 = vmatmul.mubr.f32.gmra.mrb[70].mxu1 %v8843_v30  ;;  %v8863_v32 = vld [vmem:[%s15386_s3 + $0x100] sm:$0xff] }
 0x3dd   : > { %v15047_v55 = vpack.c.bf16 %v8810_v35, %v8809_v6  ;;  %v11505_v49 = vadd.f32 %v11379_v43, %v14858_v3  ;;  %v8553_v23 = vpop.f32.mrb[45].mxu0  ;;  %8979 = vmatprep.mubr.f32.mxu1 %v8848_v22  ;;  %v15455_v22 = vld [vmem:[#allocation11_spill] sm:$0xff] }
 0x3de   : > { %v15053_v7 = vpack.c.bf16 %v8808_v42, %v8807_v36  ;;  %v11506_v40 = vadd.f32 %v8553_v23, %v14860_v16  ;;  %v11380_v1 = vpop.f32.mrb[46].mxu0  ;;  %v8851_v16 = vld [vmem:[%s15386_s3 + $0xa0] sm:$0xff]  ;;  %v8868_v42 = vld [vmem:[%s15386_s3 + $0x128] sm:$0xff] }
 0x3df   : > { %v8749_v45 = vadd.f32 %v11505_v49, %v14901_v0  ;;  %v11507_v14 = vadd.f32 %v11380_v1, %v14862_v29  ;;  %v8556_v3 = vpop.f32.mrb[47].mxu0  ;;  %v15456_v49 = vld [vmem:[#allocation12_spill] sm:$0xff]  ;;  %v15457_v1 = vld [vmem:[#allocation13_spill] sm:$0xff] }
 0x3e0   : > { %v8747_v33 = vadd.f32 %v11506_v40, %v14901_v0  ;;  %v11508_v24 = vadd.f32 %v8556_v3, %v14864_v31  ;;  %8980 = vmatmul.mubr.f32.gmra.mrb[72].mxu1 %v8847_v54 }
 0x3e1   : > { %v8750_v12 = vadd.f32 %v11507_v14, %v14901_v0  ;;  %8984 = vmatprep.mubr.f32.mxu1 %v8852_v26  ;;  %v8813_v29 = vmax.f32 %v8749_v45, 0.0  ;;  %v8867_v14 = vld [vmem:[%s15386_s3 + $0x120] sm:$0xff] }
 0x3e2   : > { %v8748_v59 = vadd.f32 %v11508_v24, %v14901_v0  ;;  %v8811_v44 = vmax.f32 %v8747_v33, 0.0  ;;  %v8872_v33 = vld [vmem:[%s15386_s3 + $0x148] sm:$0xff] }
 0x3e3   : > { %v8814_v56 = vmax.f32 %v8750_v12, 0.0 }
 0x3e4   : > { %v8812_v53 = vmax.f32 %v8748_v59, 0.0  ;;  %v11383_v58 = vpop.f32.mrb[48].mxu0  ;;  %8985 = vmatmul.mubr.f32.gmra.mrb[74].mxu1 %v8851_v16 }
 0x3e5   : > { %v15071_v31 = vpack.c.bf16 %v8814_v56, %v8813_v29  ;;  %v11509_v63 = vadd.f32 %v11383_v58, %v15450_v28  ;;  %v8569_v41 = vpop.f32.mrb[49].mxu0  ;;  %8989 = vmatprep.mubr.f32.mxu1 %v8856_v15  ;;  %v15458_v29 = vld [vmem:[#allocation14_spill] sm:$0xff]  ;;  %v15459_v58 = vld [vmem:[#allocation15_spill] sm:$0xff] }
 0x3e6   : > { %v15077_v25 = vpack.c.bf16 %v8812_v53, %v8811_v44  ;;  %v11510_v62 = vadd.f32 %v8569_v41, %v15451_v2  ;;  %v11384_v18 = vpop.f32.mrb[50].mxu0  ;;  %v8871_v53 = vld [vmem:[%s15386_s3 + $0x140] sm:$0xff] }
 0x3e7   : > { %v8753_v47 = vadd.f32 %v11509_v63, %v14901_v0  ;;  %v11511_v39 = vadd.f32 %v11384_v18, %v15452_v11  ;;  %v8572_v50 = vpop.f32.mrb[51].mxu0 }
 0x3e8   : > { %v8751_v52 = vadd.f32 %v11510_v62, %v14901_v0  ;;  %v11512_v48 = vadd.f32 %v8572_v50, %v15453_v61  ;;  %8990 = vmatmul.mubr.f32.gmra.mrb[76].mxu1 %v8855_v57  ;;  %v8876_v57 = vld [vmem:[%s15386_s3 + $0x168] sm:$0xff]  ;;  %v15460_v62 = vld [vmem:[#allocation16_spill] sm:$0xff]  ;;  %v8875_v50 = vld [vmem:[%s15386_s3 + $0x160] sm:$0xff] }
 0x3e9   : > { %v8754_v46 = vadd.f32 %v11511_v39, %v14901_v0  ;;  %8994 = vmatprep.mubr.f32.mxu1 %v8860_v4  ;;  %v8817_v20 = vmax.f32 %v8753_v47, 0.0  ;;  %v15461_v47 = vld [vmem:[#allocation17_spill] sm:$0xff]  ;;  %v8880_v61 = vld [vmem:[%s15386_s3 + $0x188] sm:$0xff] }
 0x3ea   : > { %v8752_v21 = vadd.f32 %v11512_v48, %v14901_v0  ;;  %v8815_v38 = vmax.f32 %v8751_v52, 0.0 }
 0x3eb   : > { %v8818_v37 = vmax.f32 %v8754_v46, 0.0 }
 0x3ec   : > { %v8816_v9 = vmax.f32 %v8752_v21, 0.0  ;;  %v11387_v8 = vpop.f32.mrb[52].mxu0  ;;  %8995 = vmatmul.mubr.f32.gmra.mrb[78].mxu1 %v8859_v60 }
 0x3ed   : > { %v11513_v34 = vadd.f32 %v11387_v8, %v15454_v13  ;;  %v8585_v17 = vpop.f32.mrb[53].mxu0  ;;  %v11433_v30 = vpack.c.bf16 %v8818_v37, %v8817_v20  ;;  %8999 = vmatprep.mubr.f32.mxu1 %v8864_v19  ;;  %v15462_v20 = vld [vmem:[#allocation5_spill] sm:$0xff]  ;;  %v15463_v8 = vld [vmem:[#allocation18_spill] sm:$0xff] }
 0x3ee   : > { %v11514_v6 = vadd.f32 %v8585_v17, %v15455_v22  ;;  %v11388_v35 = vpop.f32.mrb[54].mxu0  ;;  %v11429_v36 = vpack.c.bf16 %v8816_v9, %v8815_v38  ;;  %v8879_v9 = vld [vmem:[%s15386_s3 + $0x180] sm:$0xff]  ;;  %v15464_v22 = vld [vmem:[#allocation19_spill] sm:$0xff] }
 0x3ef   : > { %v8757_v43 = vadd.f32 %v11513_v34, %v14901_v0  ;;  %v11515_v23 = vadd.f32 %v11388_v35, %v15456_v49  ;;  %v8588_v54 = vpop.f32.mrb[55].mxu0  ;;  %v8883_v49 = vld [vmem:[%s15386_s3 + $0x1a0] sm:$0xff] }
 0x3f0   : > { %v8755_v40 = vadd.f32 %v11514_v6, %v14901_v0  ;;  %v11516_v26 = vadd.f32 %v8588_v54, %v15457_v1  ;;  %11430 = vmatprep.subr.bf16.mxu1 %v11429_v36  ;;  %9000 = vmatmul.mubr.f32.gmra.mrb[80].mxu1 %v8863_v32  ;;  %v15465_v36 = vld [vmem:[#allocation20_spill] sm:$0xff]  ;;  %v8888_v54 = vld [vmem:[%s15386_s3 + $0x1c8] sm:$0xff] }
 0x3f1   : > { %v8758_v45 = vadd.f32 %v11515_v23, %v14901_v0  ;;  %11432 = vmatpush3.bf16.msra.mxu1 %v15005_v51  ;;  %9004 = vmatprep.mubr.f32.mxu1 %v8868_v42  ;;  %v8821_v24 = vmax.f32 %v8757_v43, 0.0 }
 0x3f2   : > { %v8756_v3 = vadd.f32 %v11516_v26, %v14901_v0  ;;  %11434 = vmatprep.subr.bf16.mxu1 %v11433_v30  ;;  %v8819_v16 = vmax.f32 %v8755_v40, 0.0  ;;  %v8884_v30 = vld [vmem:[%s15386_s3 + $0x1a8] sm:$0xff] }
 0x3f3   : > { %v8822_v12 = vmax.f32 %v8758_v45, 0.0 }
 0x3f4   : > { %v8820_v59 = vmax.f32 %v8756_v3, 0.0  ;;  %v11391_v15 = vpop.f32.mrb[56].mxu0  ;;  %9005 = vmatmul.mubr.f32.gmra.mrb[82].mxu1 %v8867_v14  ;;  %v8887_v14 = vld [vmem:[%s15386_s3 + $0x1c0] sm:$0xff] }
 0x3f5   : > { %v11517_v51 = vadd.f32 %v11391_v15, %v15458_v29  ;;  %v8601_v56 = vpop.f32.mrb[57].mxu0  ;;  %11436 = vmatpush3.bf16.msra.mxu1 %v14998_v27  ;;  %v11441_v44 = vpack.c.bf16 %v8822_v12, %v8821_v24  ;;  %9009 = vmatprep.mubr.f32.mxu1 %v8872_v33  ;;  %v8834_v33 = vld [vmem:[%s15386_s3 + $0x18] sm:$0xff]  ;;  %v8833_v24 = vld [vmem:[%s15386_s3 + $0x10] sm:$0xff] }
 0x3f6   : > { %v11518_v28 = vadd.f32 %v8601_v56, %v15459_v58  ;;  %v11392_v63 = vpop.f32.mrb[58].mxu0  ;;  %v11437_v41 = vpack.c.bf16 %v8820_v59, %v8819_v16  ;;  %v8837_v12 = vld [vmem:[%s15386_s3 + $0x30] sm:$0xff]  ;;  %v8842_v16 = vld [vmem:[%s15386_s3 + $0x58] sm:$0xff] }
 0x3f7   : > { %v8761_v2 = vadd.f32 %v11517_v51, %v14901_v0  ;;  %v11519_v18 = vadd.f32 %v11392_v63, %v15460_v62  ;;  %v8604_v4 = vpop.f32.mrb[59].mxu0  ;;  %v8846_v59 = vld [vmem:[%s15386_s3 + $0x78] sm:$0xff]  ;;  %v8845_v15 = vld [vmem:[%s15386_s3 + $0x70] sm:$0xff] }
 0x3f8   : > { %v8759_v27 = vadd.f32 %v11518_v28, %v14901_v0  ;;  %v11520_v11 = vadd.f32 %v8604_v4, %v15461_v47  ;;  %11438 = vmatprep.subr.bf16.mxu1 %v11437_v41  ;;  %9010 = vmatmul.mubr.f32.gmra.mrb[84].mxu1 %v8871_v53  ;;  %v8850_v29 = vld [vmem:[%s15386_s3 + $0x98] sm:$0xff]  ;;  %v8849_v51 = vld [vmem:[%s15386_s3 + $0x90] sm:$0xff] }
 0x3f9   : > { %v8762_v39 = vadd.f32 %v11519_v18, %v14901_v0  ;;  %11440 = vmatpush3.bf16.msra.mxu1 %v15029_v10  ;;  %9014 = vmatprep.mubr.f32.mxu1 %v8876_v57  ;;  %v8825_v48 = vmax.f32 %v8761_v2, 0.0  ;;  %v8854_v56 = vld [vmem:[%s15386_s3 + $0xb8] sm:$0xff]  ;;  %v8857_v58 = vld [vmem:[%s15386_s3 + $0xd0] sm:$0xff] }
 0x3fa   : > { %v8760_v52 = vadd.f32 %v11520_v11, %v14901_v0  ;;  %11442 = vmatprep.subr.bf16.mxu1 %v11441_v44  ;;  %v8823_v60 = vmax.f32 %v8759_v27, 0.0  ;;  %v8853_v44 = vld [vmem:[%s15386_s3 + $0xb0] sm:$0xff]  ;;  %v8858_v53 = vld [vmem:[%s15386_s3 + $0xd8] sm:$0xff] }
 0x3fb   : > { %v8826_v46 = vmax.f32 %v8762_v39, 0.0  ;;  %v8862_v28 = vld [vmem:[%s15386_s3 + $0xf8] sm:$0xff]  ;;  %v8861_v63 = vld [vmem:[%s15386_s3 + $0xf0] sm:$0xff] }
 0x3fc   : > { %v8824_v21 = vmax.f32 %v8760_v52, 0.0  ;;  %v11395_v19 = vpop.f32.mrb[60].mxu0  ;;  %9015 = vmatmul.mubr.f32.gmra.mrb[86].mxu1 %v8875_v50  ;;  %v8866_v41 = vld [vmem:[%s15386_s3 + $0x118] sm:$0xff]  ;;  %v8865_v57 = vld [vmem:[%s15386_s3 + $0x110] sm:$0xff] }
 0x3fd   : > { %v11521_v10 = vadd.f32 %v11395_v19, %v15462_v20  ;;  %v8617_v37 = vpop.f32.mrb[61].mxu0  ;;  %11444 = vmatpush3.bf16.msra.mxu1 %v15023_v5  ;;  %v11449_v38 = vpack.c.bf16 %v8826_v46, %v8825_v48  ;;  %9019 = vmatprep.mubr.f32.mxu1 %v8880_v61  ;;  %v8870_v2 = vld [vmem:[%s15386_s3 + $0x138] sm:$0xff]  ;;  %v8869_v62 = vld [vmem:[%s15386_s3 + $0x130] sm:$0xff] }
 0x3fe   : > { %v11522_v13 = vadd.f32 %v8617_v37, %v15463_v8  ;;  %v11396_v34 = vpop.f32.mrb[62].mxu0  ;;  %v11445_v17 = vpack.c.bf16 %v8824_v21, %v8823_v60  ;;  %v8874_v18 = vld [vmem:[%s15386_s3 + $0x158] sm:$0xff]  ;;  %v8873_v4 = vld [vmem:[%s15386_s3 + $0x150] sm:$0xff] }
 0x3ff   : > { %v8765_v32 = vadd.f32 %v11521_v10, %v14901_v0  ;;  %v11523_v6 = vadd.f32 %v11396_v34, %v15464_v22  ;;  %v8620_v35 = vpop.f32.mrb[63].mxu0  ;;  %v8878_v27 = vld [vmem:[%s15386_s3 + $0x178] sm:$0xff]  ;;  %v8877_v47 = vld [vmem:[%s15386_s3 + $0x170] sm:$0xff] }
 0x400   : > { %v8763_v5 = vadd.f32 %v11522_v13, %v14901_v0  ;;  %v11524_v42 = vadd.f32 %v8620_v35, %v15465_v36  ;;  %11446 = vmatprep.subr.bf16.mxu1 %v11445_v17  ;;  %9020 = vmatmul.mubr.f32.gmra.mrb[88].mxu1 %v8879_v9  ;;  %v8882_v11 = vld [vmem:[%s15386_s3 + $0x198] sm:$0xff]  ;;  %v8881_v39 = vld [vmem:[%s15386_s3 + $0x190] sm:$0xff] }
 0x401   : > { %v8766_v43 = vadd.f32 %v11523_v6, %v14901_v0  ;;  %11448 = vmatpush3.bf16.msra.mxu1 %v15053_v7  ;;  %9024 = vmatprep.mubr.f32.mxu1 %v8884_v30  ;;  %v8829_v40 = vmax.f32 %v8765_v32, 0.0  ;;  %v8886_v50 = vld [vmem:[%s15386_s3 + $0x1b8] sm:$0xff]  ;;  %v8885_v52 = vld [vmem:[%s15386_s3 + $0x1b0] sm:$0xff] }
 0x402   : > { %v8764_v23 = vadd.f32 %v11524_v42, %v14901_v0  ;;  %11450 = vmatprep.subr.bf16.mxu1 %v11449_v38  ;;  %v8827_v26 = vmax.f32 %v8763_v5, 0.0  ;;  %v8892_v0 = vld [vmem:[%s15386_s3 + $0x1e8] sm:$0xff]  ;;  %v8890_v61 = vld [vmem:[%s15386_s3 + $0x1d8] sm:$0xff]  ;;  %v8889_v48 = vld [vmem:[%s15386_s3 + $0x1d0] sm:$0xff] }
 0x403   : > { %v8830_v1 = vmax.f32 %v8766_v43, 0.0  ;;  %v8894_v46 = vld [vmem:[%s15386_s3 + $0x1f8] sm:$0xff]  ;;  %v8893_v60 = vld [vmem:[%s15386_s3 + $0x1f0] sm:$0xff] }
 0x404   : > { %v8828_v45 = vmax.f32 %v8764_v23, 0.0  ;;  %9025 = vmatmul.mubr.f32.gmra.mrb[90].mxu1 %v8883_v49 }
 0x405   : > { %11452 = vmatpush3.bf16.msra.mxu1 %v15047_v55  ;;  %v11457_v7 = vpack.c.bf16 %v8830_v1, %v8829_v40  ;;  %9029 = vmatprep.mubr.f32.mxu1 %v8888_v54  ;;  %v8891_v55 = vld [vmem:[%s15386_s3 + $0x1e0] sm:$0xff] }
 0x406   : > { %v11453_v3 = vpack.c.bf16 %v8828_v45, %v8827_v26 }
 0x408   : > { %11454 = vmatprep.subr.bf16.mxu1 %v11453_v3  ;;  %9030 = vmatmul.mubr.f32.gmra.mrb[92].mxu1 %v8887_v14 }
 0x409   : > { %11456 = vmatpush3.bf16.msra.mxu1 %v15077_v25  ;;  %9034 = vmatprep.mubr.f32.mxu1 %v8892_v0  ;;  %v8838_v25 = vld [vmem:[%s15386_s3 + $0x38] sm:$0xff] }
 0x40a   : > { %11458 = vmatprep.subr.bf16.mxu1 %v11457_v7 }
 0x40c   : > { %9035 = vmatmul.mubr.f32.gmra.mrb[94].mxu1 %v8891_v55 }
 0x40d   : > { %11460 = vmatpush3.bf16.msra.mxu1 %v15071_v31  ;;  %9104 = vmatprep.mubr.f32.mxu1 %v8834_v33  ;;  %v8841_v31 = vld [vmem:[%s15386_s3 + $0x50] sm:$0xff] }
 0x410   : > { %9105 = vmatmul.mubr.f32.vlgmr.msra.gmra.mrb[96].mxu1 %v8833_v24 }
 0x411   : > { %9109 = vmatprep.mubr.f32.mxu1 %v8838_v25 }
 0x414   : > { %9110 = vmatmul.mubr.f32.gmra.mrb[98].mxu1 %v8837_v12 }
 0x415   : > { %9114 = vmatprep.mubr.f32.mxu1 %v8842_v16 }
 0x418   : > { %9115 = vmatmul.mubr.f32.gmra.mrb[100].mxu1 %v8841_v31 }
 0x419   : > { %9119 = vmatprep.mubr.f32.mxu1 %v8846_v59 }
 0x41c   : > { %9120 = vmatmul.mubr.f32.gmra.mrb[102].mxu1 %v8845_v15 }
 0x41d   : > { %9124 = vmatprep.mubr.f32.mxu1 %v8850_v29 }
 0x420   : > { %9125 = vmatmul.mubr.f32.gmra.mrb[104].mxu1 %v8849_v51 }
 0x421   : > { %9129 = vmatprep.mubr.f32.mxu1 %v8854_v56 }
 0x424   : > { %9130 = vmatmul.mubr.f32.gmra.mrb[106].mxu1 %v8853_v44 }
 0x425   : > { %9134 = vmatprep.mubr.f32.mxu1 %v8858_v53 }
 0x428   : > { %9135 = vmatmul.mubr.f32.gmra.mrb[108].mxu1 %v8857_v58 }
 0x429   : > { %9139 = vmatprep.mubr.f32.mxu1 %v8862_v28 }
 0x42c   : > { %9140 = vmatmul.mubr.f32.gmra.mrb[110].mxu1 %v8861_v63 }
 0x42d   : > { %9144 = vmatprep.mubr.f32.mxu1 %v8866_v41 }
 0x430   : > { %9145 = vmatmul.mubr.f32.gmra.mrb[112].mxu1 %v8865_v57 }
 0x431   : > { %9149 = vmatprep.mubr.f32.mxu1 %v8870_v2 }
 0x434   : > { %9150 = vmatmul.mubr.f32.gmra.mrb[114].mxu1 %v8869_v62 }
 0x435   : > { %9154 = vmatprep.mubr.f32.mxu1 %v8874_v18 }
 0x438   : > { %9155 = vmatmul.mubr.f32.gmra.mrb[116].mxu1 %v8873_v4 }
 0x439   : > { %9159 = vmatprep.mubr.f32.mxu1 %v8878_v27 }
 0x43c   : > { %9160 = vmatmul.mubr.f32.gmra.mrb[118].mxu1 %v8877_v47 }
 0x43d   : > { %9164 = vmatprep.mubr.f32.mxu1 %v8882_v11 }
 0x440   : > { %9165 = vmatmul.mubr.f32.gmra.mrb[120].mxu1 %v8881_v39 }
 0x441   : > { %9169 = vmatprep.mubr.f32.mxu1 %v8886_v50 }
 0x444   : > { %9170 = vmatmul.mubr.f32.gmra.mrb[122].mxu1 %v8885_v52 }
 0x445   : > { %9174 = vmatprep.mubr.f32.mxu1 %v8890_v61 }
 0x448   : > { %9175 = vmatmul.mubr.f32.gmra.mrb[124].mxu1 %v8889_v48 }
 0x449   : > { %9179 = vmatprep.mubr.f32.mxu1 %v8894_v46 }
 0x44c   : > { %9180 = vmatmul.mubr.f32.gmra.mrb[126].mxu1 %v8893_v60 }
 0x4a3   : > { %v10657_v21 = vpop.f32.mrb[64].mxu1 }
 0x4a4   : > { %v10658_v19 = vpop.f32.mrb[65].mxu1 }
 0x4a5   : > { %v10659_v20 = vadd.f32 %v10658_v19, %v10657_v21 }
 0x4a7   : > { %v10660_v10 = vpop.f32.mrb[66].mxu1 }
 0x4a8   : > { %v10661_v37 = vpop.f32.mrb[67].mxu1 }
 0x4a9   : > { %v10662_v38 = vadd.f32 %v10661_v37, %v10660_v10 }
 0x4ab   : > { %v10663_v9 = vpop.f32.mrb[68].mxu1 }
 0x4ac   : > { %v10664_v8 = vpop.f32.mrb[69].mxu1 }
 0x4ad   : > { %v10665_v13 = vadd.f32 %v10664_v8, %v10663_v9 }
 0x4af   : > { %v10666_v34 = vpop.f32.mrb[70].mxu1 }
 0x4b0   : > { %v10667_v17 = vpop.f32.mrb[71].mxu1 }
 0x4b1   : > { %v10668_v30 = vadd.f32 %v10667_v17, %v10666_v34 }
 0x4b3   : > { %v10669_v32 = vpop.f32.mrb[72].mxu1 }
 0x4b4   : > { %v10670_v22 = vpop.f32.mrb[73].mxu1 }
 0x4b5   : > { %v10671_v6 = vadd.f32 %v10670_v22, %v10669_v32 }
 0x4b7   : > { %v10672_v35 = vpop.f32.mrb[74].mxu1 }
 0x4b8   : > { %v10673_v5 = vpop.f32.mrb[75].mxu1 }
 0x4b9   : > { %v10674_v36 = vadd.f32 %v10673_v5, %v10672_v35 }
 0x4bb   : > { %v10675_v42 = vpop.f32.mrb[76].mxu1 }
 0x4bc   : > { %v10676_v43 = vpop.f32.mrb[77].mxu1 }
 0x4bd   : > { %v15268_v49 = vadd.f32 %v10676_v43, %v10675_v42 }
 0x4bf   : > { %v10678_v23 = vpop.f32.mrb[78].mxu1 }
 0x4c0   : > { %v10679_v54 = vpop.f32.mrb[79].mxu1 }
 0x4c1   : > { %v15270_v40 = vadd.f32 %v10679_v54, %v10678_v23 }
 0x4c3   : > { %v10681_v1 = vpop.f32.mrb[80].mxu1 }
 0x4c4   : > { %v10682_v26 = vpop.f32.mrb[81].mxu1 }
 0x4c5   : > { %v15272_v45 = vadd.f32 %v10682_v26, %v10681_v1 }
 0x4c7   : > { %v10684_v7 = vpop.f32.mrb[82].mxu1 }
 0x4c8   : > { %v10685_v14 = vpop.f32.mrb[83].mxu1 }
 0x4c9   : > { %v15274_v3 = vadd.f32 %v10685_v14, %v10684_v7 }
 0x4cb   : > { %v10687_v0 = vpop.f32.mrb[84].mxu1 }
 0x4cc   : > { %v10688_v55 = vpop.f32.mrb[85].mxu1 }
 0x4cd   : > { %v15276_v33 = vadd.f32 %v10688_v55, %v10687_v0 }
 0x4cf   : > { %v10690_v24 = vpop.f32.mrb[86].mxu1 }
 0x4d0   : > { %v10691_v25 = vpop.f32.mrb[87].mxu1 }
 0x4d1   : > { %v15278_v12 = vadd.f32 %v10691_v25, %v10690_v24 }
 0x4d3   : > { %v10693_v16 = vpop.f32.mrb[88].mxu1 }
 0x4d4   : > { %v10694_v31 = vpop.f32.mrb[89].mxu1 }
 0x4d5   : > { %v15280_v59 = vadd.f32 %v10694_v31, %v10693_v16 }
 0x4d7   : > { %v10696_v15 = vpop.f32.mrb[90].mxu1 }
 0x4d8   : > { %v10697_v29 = vpop.f32.mrb[91].mxu1 }
 0x4d9   : > { %v15282_v51 = vadd.f32 %v10697_v29, %v10696_v15 }
 0x4db   : > { %v10699_v56 = vpop.f32.mrb[92].mxu1 }
 0x4dc   : > { %v10700_v44 = vpop.f32.mrb[93].mxu1 }
 0x4dd   : > { %v15284_v53 = vadd.f32 %v10700_v44, %v10699_v56 }
 0x4df   : > { %v10702_v58 = vpop.f32.mrb[94].mxu1 }
 0x4e0   : > { %v10703_v28 = vpop.f32.mrb[95].mxu1 }
 0x4e1   : > { %v15287_v63 = vadd.f32 %v10703_v28, %v10702_v58 }
 0x4e3   : > { %v10737_v41 = vpop.f32.mrb[96].mxu1 }
 0x4e4   : > { %v10738_v57 = vpop.f32.mrb[97].mxu1 }
 0x4e5   : > { %v10739_v2 = vadd.f32 %v10738_v57, %v10737_v41 }
 0x4e7   : > { %v9107_v62 = vadd.f32 %v10739_v2, %v10659_v20  ;;  %v10740_v18 = vpop.f32.mrb[98].mxu1 }
 0x4e8   : > { %v10741_v4 = vpop.f32.mrb[99].mxu1 }
 0x4e9   : > { %9185 = vst [vmem:[%s15291_s23] sm:$0xff] %v9107_v62  ;;  %v10742_v27 = vadd.f32 %v10741_v4, %v10740_v18 }
 0x4eb   : > { %v9112_v47 = vadd.f32 %v10742_v27, %v10662_v38  ;;  %v10743_v11 = vpop.f32.mrb[100].mxu1 }
 0x4ec   : > { %v10744_v39 = vpop.f32.mrb[101].mxu1 }
 0x4ed   : > { %9186 = vst [vmem:[%s15291_s23 + $0x8] sm:$0xff] %v9112_v47  ;;  %v10745_v50 = vadd.f32 %v10744_v39, %v10743_v11 }
 0x4ef   : > { %v9117_v52 = vadd.f32 %v10745_v50, %v10665_v13  ;;  %v10746_v61 = vpop.f32.mrb[102].mxu1 }
 0x4f0   : > { %v10747_v48 = vpop.f32.mrb[103].mxu1 }
 0x4f1   : > { %9187 = vst [vmem:[%s15291_s23 + $0x10] sm:$0xff] %v9117_v52  ;;  %v10748_v46 = vadd.f32 %v10747_v48, %v10746_v61 }
 0x4f3   : > { %v9122_v60 = vadd.f32 %v10748_v46, %v10668_v30  ;;  %v10749_v21 = vpop.f32.mrb[104].mxu1 }
 0x4f4   : > { %v10750_v19 = vpop.f32.mrb[105].mxu1 }
 0x4f5   : > { %9188 = vst [vmem:[%s15291_s23 + $0x18] sm:$0xff] %v9122_v60  ;;  %v10751_v20 = vadd.f32 %v10750_v19, %v10749_v21 }
 0x4f7   : > { %v9127_v10 = vadd.f32 %v10751_v20, %v10671_v6  ;;  %v10752_v37 = vpop.f32.mrb[106].mxu1 }
 0x4f8   : > { %v10753_v38 = vpop.f32.mrb[107].mxu1 }
 0x4f9   : > { %9189 = vst [vmem:[%s15291_s23 + $0x20] sm:$0xff] %v9127_v10  ;;  %v10754_v9 = vadd.f32 %v10753_v38, %v10752_v37 }
 0x4fb   : > { %v9132_v8 = vadd.f32 %v10754_v9, %v10674_v36  ;;  %v10755_v34 = vpop.f32.mrb[108].mxu1 }
 0x4fc   : > { %v10756_v13 = vpop.f32.mrb[109].mxu1 }
 0x4fd   : > { %9190 = vst [vmem:[%s15291_s23 + $0x28] sm:$0xff] %v9132_v8  ;;  %v10757_v17 = vadd.f32 %v10756_v13, %v10755_v34 }
 0x4ff   : > { %v9137_v32 = vadd.f32 %v10757_v17, %v15268_v49  ;;  %v10758_v30 = vpop.f32.mrb[110].mxu1 }
 0x500   : > { %v10759_v22 = vpop.f32.mrb[111].mxu1 }
 0x501   : > { %9191 = vst [vmem:[%s15291_s23 + $0x30] sm:$0xff] %v9137_v32  ;;  %v10760_v35 = vadd.f32 %v10759_v22, %v10758_v30 }
 0x503   : > { %v9142_v6 = vadd.f32 %v10760_v35, %v15270_v40  ;;  %v10761_v5 = vpop.f32.mrb[112].mxu1 }
 0x504   : > { %v10762_v42 = vpop.f32.mrb[113].mxu1 }
 0x505   : > { %9192 = vst [vmem:[%s15291_s23 + $0x38] sm:$0xff] %v9142_v6  ;;  %v10763_v43 = vadd.f32 %v10762_v42, %v10761_v5 }
 0x507   : > { %v9147_v36 = vadd.f32 %v10763_v43, %v15272_v45  ;;  %v10764_v23 = vpop.f32.mrb[114].mxu1 }
 0x508   : > { %v10765_v54 = vpop.f32.mrb[115].mxu1 }
 0x509   : > { %9193 = vst [vmem:[%s15291_s23 + $0x40] sm:$0xff] %v9147_v36  ;;  %v10766_v1 = vadd.f32 %v10765_v54, %v10764_v23 }
 0x50b   : > { %v9152_v49 = vadd.f32 %v10766_v1, %v15274_v3  ;;  %v10767_v26 = vpop.f32.mrb[116].mxu1 }
 0x50c   : > { %v10768_v7 = vpop.f32.mrb[117].mxu1 }
 0x50d   : > { %9194 = vst [vmem:[%s15291_s23 + $0x48] sm:$0xff] %v9152_v49  ;;  %v10769_v14 = vadd.f32 %v10768_v7, %v10767_v26 }
 0x50f   : > { %v9157_v40 = vadd.f32 %v10769_v14, %v15276_v33  ;;  %v10770_v0 = vpop.f32.mrb[118].mxu1 }
 0x510   : > { %v10771_v55 = vpop.f32.mrb[119].mxu1 }
 0x511   : > { %9195 = vst [vmem:[%s15291_s23 + $0x50] sm:$0xff] %v9157_v40  ;;  %v10772_v45 = vadd.f32 %v10771_v55, %v10770_v0 }
 0x513   : > { %v9162_v24 = vadd.f32 %v10772_v45, %v15278_v12  ;;  %v10773_v25 = vpop.f32.mrb[120].mxu1 }
 0x514   : > { %v10774_v16 = vpop.f32.mrb[121].mxu1 }
 0x515   : > { %9196 = vst [vmem:[%s15291_s23 + $0x58] sm:$0xff] %v9162_v24  ;;  %v10775_v3 = vadd.f32 %v10774_v16, %v10773_v25 }
 0x517   : > { %v9167_v31 = vadd.f32 %v10775_v3, %v15280_v59  ;;  %v10776_v15 = vpop.f32.mrb[122].mxu1 }
 0x518   : > { %v10777_v29 = vpop.f32.mrb[123].mxu1 }
 0x519   : > { %9197 = vst [vmem:[%s15291_s23 + $0x60] sm:$0xff] %v9167_v31  ;;  %v10778_v33 = vadd.f32 %v10777_v29, %v10776_v15 }
 0x51b   : > { %v9172_v56 = vadd.f32 %v10778_v33, %v15282_v51  ;;  %v10779_v44 = vpop.f32.mrb[124].mxu1 }
 0x51c   : > { %v10780_v12 = vpop.f32.mrb[125].mxu1 }
 0x51d   : > { %9198 = vst [vmem:[%s15291_s23 + $0x68] sm:$0xff] %v9172_v56  ;;  %v10781_v58 = vadd.f32 %v10780_v12, %v10779_v44 }
 0x51f   : > { %v9177_v59 = vadd.f32 %v10781_v58, %v15284_v53  ;;  %v10782_v28 = vpop.f32.mrb[126].mxu1 }
 0x520   : > { %v10783_v41 = vpop.f32.mrb[127].mxu1 }
 0x521   : > { %9199 = vst [vmem:[%s15291_s23 + $0x70] sm:$0xff] %v9177_v59  ;;  %v10784_v57 = vadd.f32 %v10783_v41, %v10782_v28 }
 0x523   : > { %v9182_v51 = vadd.f32 %v10784_v57, %v15287_v63 }
 0x525   : > { %9200 = vst [vmem:[%s15291_s23 + $0x78] sm:$0xff] %v9182_v51 }
 0x526   : > { %12337 = shalt.err (!%p12334_p6)
}
 0x527   : > { %s12338_s9 = scalar_lea.hbm %s15323_s8, 2048  ;;  %s12342_s27 = scalar_lea.hbm %s15387_s4, 8192 }
 0x528   : > { %p12339_p7 = scmp.ne.s32.totalorder %s15323_s8, %s12338_s9  ;;  %p12343_p11 = scmp.lt.u32.totalorder %s15323_s8, %s15387_s4 }
 0x529   : > { %p12344_p12 = scmp.lt.u32.totalorder %s12342_s27, %s12338_s9  ;;  %p12346_p0 = scmp.lt.u32.totalorder %s12338_s9, %s15323_s8 }
 0x52a   : > { %p12340_p9 = pnand %p12339_p7, %p12499_p3 }
 0x52b   : > { %p12345_p13 = por %p12344_p12, %p12343_p11 }
 0x52c   : > { %p12341_p10 = pneg %p12340_p9 }
 0x52d   : > { %p12347_p1 = por %p12346_p0, %p12345_p13 }
 0x52f   : > { %p12348_p2 = pnand %p12347_p1, %p12341_p10 }
 0x531   : > { %12351 = shalt.err (!%p12348_p2)
}
 0x532   : > { %s12421_s18 = smov 128   ;;  %s12422_s19 = smov 8  }
 0x533   : > { %11974 = dma.vmem_to_hbm [thread:$0]  (%p12499_p3), %s15325_s6, 2048, %s15323_s8, %s15331_s10, %s12421_s18, %s12421_s18, %s12422_s19  }
 0x534 PF: > { %p11980_p4 = scmp.ge.s32.totalorder %s12418_s22, 2  ;;  %s9232_s11 = sand.u32 1, %s12390_s15  }
 0x535   : > { %s9233_s12 = scalar_lea.sflag [#allocation3], %s9232_s11 }
 0x536   : > { %p11977_p5 = pnand %p11980_p4, %p12508_p8 }
 0x538   : > { %12385 = dma.done.wait (!%p11977_p5), %s9233_s12, 2048  }
 0x539   : > { %12387 = vsyncadd (!%p11977_p5), %s9233_s12, 4294965248  ;;  %s17_s22 = sadd.s32 1, %s12418_s22   ;;  %s15466_s15 = smov %s12394_s16 }
 0x53a   : > { %p14_p6 = scmp.ge.s32.totalorder %s17_s22, 6   ;;  %s15467_s16 = smov %s12398_s17 }
 0x53b   : > { %s15468_s17 = smov %s12517_s7  ;;  %s15469_s18 = smov %s12410_s20 }
 0x53c   : > { %s15470_s19 = smov %s12414_s21  ;;  %s15471_s20 = smov %s15474_s25 }
 0x53d   : > { %s15472_s21 = smov %s15478_s26  ;;  %16 = sbr.rel (!%p14_p6) target bundleno = 5 (0x5), region = 82 }
 0x544   :  { %9238 = vsyncpa [#allocation3], 1 }
 0x545   :  { %9240 = vsyncpa [#allocation3 + $0x1], 1 }

</bundles_post_ra>
